<compile_context>
chip_gen: v7x
topology: tpu7x:2x2x1
jax: 0.10.0
libtpu: 0.0.40
codegen_flags: <defaults>
</compile_context>

<pallas_src>
import functools

import jax
import jax.numpy as jnp
from jax.experimental import pallas as pl
from jax.experimental.pallas import tpu as pltpu

LANE = 128


def _align8(n):
    return ((n + 7) // 8) * 8


def fibinet_kernel(x_ref, head_ref, fd_ref, rep_ref, o_ref, *, F, FD, FFD, off, lane):
    x = x_ref[...]                                                  # (tb, FD) lane-dense f32

    # ---------------- SENET (mean-pool + field expansion folded into MXU weights) ----
    m1 = head_ref[off["m1"]:off["m1"] + FD, :]                      # (FD, lane)
    b1s = head_ref[off["b1s"]:off["b1s"] + 1, :]                    # (1, lane)
    a1 = jnp.maximum(
        jnp.dot(x, m1, preferred_element_type=jnp.float32) + b1s, 0.0)   # (tb, lane)

    w2e = fd_ref[off["w2e"]:off["w2e"] + lane, :]                   # (lane, FD)
    b2e = fd_ref[off["b2e"]:off["b2e"] + 1, :]                      # (1, FD)
    a2d = jnp.maximum(
        jnp.dot(a1, w2e, preferred_element_type=jnp.float32) + b2e, 0.0)  # (tb, FD)
    v = x * a2d                                                     # SENET output, lane-dense

    # ------------- BiLinear 'field_all' (both branches, pair replication folded) -----
    w_emb = rep_ref[0:FD, :]                                        # (FD, F*FD)
    w_sen = rep_ref[FD:2 * FD, :]                                   # (FD, F*FD)
    pe = jnp.dot(x, w_emb, preferred_element_type=jnp.float32) * jnp.tile(x, (1, F))
    ps = jnp.dot(v, w_sen, preferred_element_type=jnp.float32) * jnp.tile(v, (1, F))

    # ------------- DNN head (pair selection / concat folded into zero rows of w1) ----
    w1e = head_ref[off["w1e"]:off["w1e"] + FFD, :]                  # (F*FD, lane)
    w1s = head_ref[off["w1s"]:off["w1s"] + FFD, :]                  # (F*FD, lane)
    b1d = head_ref[off["b1d"]:off["b1d"] + 1, :]                    # (1, lane)
    h1 = jnp.maximum(
        jnp.dot(pe, w1e, preferred_element_type=jnp.float32)
        + jnp.dot(ps, w1s, preferred_element_type=jnp.float32) + b1d, 0.0)

    w2d = head_ref[off["w2d"]:off["w2d"] + lane, :]                 # (lane, lane)
    b2d = head_ref[off["b2d"]:off["b2d"] + 1, :]                    # (1, lane)
    out = jnp.dot(h1, w2d, preferred_element_type=jnp.float32) + b2d
    o_ref[...] = out.astype(o_ref.dtype)


def _pack_params(p, F, D, lane=LANE):
    """Fold reshapes/broadcasts/pair-selection into MXU weights; pack constants."""
    f32 = jnp.float32
    R = p["se_w1"].shape[1]
    H1 = p["dnn_w1"].shape[1]
    out_dim = p["dnn_w2"].shape[1]
    FD = F * D
    FFD = F * FD
    P = F * (F - 1) // 2
    assert max(R, F, H1, out_dim) <= lane, "dims must fit a 128-lane pad"
    assert p["dnn_w1"].shape[0] == 2 * P * D, "dnn_w1 rows must be 2*P*D"

    eyeF = jnp.eye(F, dtype=f32)

    # SENET: mean-pool folded into se_w1; field-gate expansion folded into se_w2
    # (relu commutes with the 0/1 replication matrix E = kron(I_F, ones(1,D))).
    pool = jnp.kron(eyeF, jnp.ones((D, 1), f32) / D)                # (FD, F)
    M1 = pool @ p["se_w1"].astype(f32)                              # (FD, R)
    expand = jnp.kron(eyeF, jnp.ones((1, D), f32))                  # (F, FD)
    W2E = p["se_w2"].astype(f32) @ expand                           # (R, FD)
    b2E = p["se_b2"].astype(f32).reshape(1, F) @ expand             # (1, FD)

    # Bilinear 'field_all' weights with per-pair lane replication folded in:
    # (x @ W_rep)[:, i*FD + j*D + d] = vid[:, i, d]  for every pair slot (i, j).
    W_emb_rep = jnp.kron(eyeF, jnp.kron(jnp.ones((1, F), f32), p["bi_emb_w"].astype(f32)))
    W_sen_rep = jnp.kron(eyeF, jnp.kron(jnp.ones((1, F), f32), p["bi_sen_w"].astype(f32)))
    rep_pack = jnp.concatenate([W_emb_rep, W_sen_rep], axis=0)      # (2*FD, F*FD)

    # DNN layer-1 weight scattered to (i, j) pair rows (zero for i >= j), H1 lane-padded.
    w1 = p["dnn_w1"].astype(f32)
    w1e = jnp.zeros((F, F, D, lane), f32)
    w1s = jnp.zeros((F, F, D, lane), f32)
    pidx = 0
    for i in range(F):
        for j in range(i + 1, F):
            w1e = w1e.at[i, j, :, :H1].set(w1[pidx * D:(pidx + 1) * D])
            w1s = w1s.at[i, j, :, :H1].set(w1[P * D + pidx * D:P * D + (pidx + 1) * D])
            pidx += 1
    w1e = w1e.reshape(FFD, lane)
    w1s = w1s.reshape(FFD, lane)

    # ---- head pack: every lane-width-128 constant, 8-row-aligned static slices ----
    o_m1 = 0
    o_b1s = _align8(o_m1 + FD)
    o_w1e = _align8(o_b1s + 1)
    o_w1s = _align8(o_w1e + FFD)
    o_b1d = _align8(o_w1s + FFD)
    o_w2d = _align8(o_b1d + 1)
    o_b2d = _align8(o_w2d + lane)
    n_rows = _align8(o_b2d + 1)

    head = jnp.zeros((n_rows, lane), f32)
    head = head.at[o_m1:o_m1 + FD, :R].set(M1)
    head = head.at[o_b1s, :R].set(p["se_b1"].reshape(-1).astype(f32))
    head = head.at[o_w1e:o_w1e + FFD, :].set(w1e)
    head = head.at[o_w1s:o_w1s + FFD, :].set(w1s)
    head = head.at[o_b1d, :H1].set(p["dnn_b1"].reshape(-1).astype(f32))
    head = head.at[o_w2d:o_w2d + H1, :out_dim].set(p["dnn_w2"].astype(f32))
    head = head.at[o_b2d, :out_dim].set(p["dnn_b2"].reshape(-1).astype(f32))

    # ---- fd pack: lane-width-FD constants ----
    o_w2e = 0
    o_b2e = _align8(o_w2e + lane)
    fd_rows = _align8(o_b2e + 1)
    fd_pack = jnp.zeros((fd_rows, FD), f32)
    fd_pack = fd_pack.at[o_w2e:o_w2e + R, :].set(W2E)
    fd_pack = fd_pack.at[o_b2e, :].set(b2E.reshape(-1))

    off = {"m1": o_m1, "b1s": o_b1s, "w1e": o_w1e, "w1s": o_w1s,
           "b1d": o_b1d, "w2d": o_w2d, "b2d": o_b2d,
           "w2e": o_w2e, "b2e": o_b2e}
    return head, fd_pack, rep_pack, off, out_dim


def fibinet_forward(x, params, *, tb=256):
    """x: (B, F, D) float32.  params: dict of raw weight arrays (torch layout).

    tb=256 -> grid of B//tb "parallel" steps: 2 steps at B=512, which keeps both
    v7x TensorCores busy while amortizing per-step overhead on v5e/v6e.  Use
    tb=512 (grid=1) on single-TensorCore chips if squeezing the last ~0.35 us.
    """
    B, F, D = x.shape
    FD, FFD = F * D, F * F * D
    tb = min(tb, B)
    assert B % tb == 0 and tb % 8 == 0, "batch must tile cleanly"

    head, fd_pack, rep_pack, off, out_dim = _pack_params(params, F, D, lane=LANE)
    x2 = x.reshape(B, FD).astype(jnp.float32)            # lane-dense input layout

    kernel = functools.partial(fibinet_kernel, F=F, FD=FD, FFD=FFD, off=off, lane=LANE)
    out_padded = pl.pallas_call(
        kernel,
        out_shape=jax.ShapeDtypeStruct((B, LANE), jnp.float32),
        grid_spec=pltpu.PrefetchScalarGridSpec(
            num_scalar_prefetch=0,
            grid=(B // tb,),
            in_specs=[
                pl.BlockSpec((tb, FD), lambda b: (b, 0)),
                pl.BlockSpec(head.shape, lambda b: (0, 0)),
                pl.BlockSpec(fd_pack.shape, lambda b: (0, 0)),
                pl.BlockSpec(rep_pack.shape, lambda b: (0, 0)),
            ],
            out_specs=pl.BlockSpec((tb, LANE), lambda b: (b, 0)),
        ),
        compiler_params=pltpu.CompilerParams(
            dimension_semantics=("parallel",),
            vmem_limit_bytes=32 * 1024 * 1024,
        ),
    )(x2, head, fd_pack, rep_pack)
    return out_padded[:, :out_dim]


def make_params(key, fields, n_dim, reduction_ratio, hidden_units):
    """Deterministic synthetic parameters (shapes follow the torch module)."""
    r = max(1, fields // reduction_ratio)
    num_pairs = fields * (fields - 1) // 2
    proj_in = 2 * num_pairs * n_dim                      # projection_in_shape
    ks = jax.random.split(key, 10)
    s = 0.1
    return {
        # SENET: Linear(fields -> r), Linear(r -> fields), both with bias
        "se_w1": s * jax.random.normal(ks[0], (fields, r), jnp.float32),
        "se_b1": s * jax.random.normal(ks[1], (1, r), jnp.float32),
        "se_w2": s * jax.random.normal(ks[2], (r, fields), jnp.float32),
        "se_b2": s * jax.random.normal(ks[3], (1, fields), jnp.float32),
        # BiLinear 'field_all': single Linear(n_dim -> n_dim, bias=False) each
        "bi_emb_w": s * jax.random.normal(ks[4], (n_dim, n_dim), jnp.float32),
        "bi_sen_w": s * jax.random.normal(ks[5], (n_dim, n_dim), jnp.float32),
        # DNN: proj_in -> hidden_units[0] -> hidden_units[1]
        "dnn_w1": s * jax.random.normal(ks[6], (proj_in, hidden_units[0]), jnp.float32),
        "dnn_b1": s * jax.random.normal(ks[7], (1, hidden_units[0]), jnp.float32),
        "dnn_w2": s * jax.random.normal(ks[8], (hidden_units[0], hidden_units[1]), jnp.float32),
        "dnn_b2": s * jax.random.normal(ks[9], (1, hidden_units[1]), jnp.float32),
    }


def fibinet_reference(x, p):
    """Pure-JAX reference of the torch forward pass (for sanity check)."""
    B, F, D = x.shape
    z = jnp.mean(x, axis=-1)
    a1 = jax.nn.relu(z @ p["se_w1"] + p["se_b1"])
    a2 = jax.nn.relu(a1 @ p["se_w2"] + p["se_b2"])
    v = x * a2[:, :, None]
    vid_e = jnp.einsum("bfd,de->bfe", x, p["bi_emb_w"])
    vid_s = jnp.einsum("bfd,de->bfe", v, p["bi_sen_w"])
    emb_pairs, sen_pairs = [], []
    for i in range(F):
        for j in range(i + 1, F):
            emb_pairs.append(vid_e[:, i, :] * x[:, j, :])
            sen_pairs.append(vid_s[:, i, :] * v[:, j, :])
    combined = jnp.concatenate(emb_pairs + sen_pairs, axis=-1)
    h1 = jax.nn.relu(combined @ p["dnn_w1"] + p["dnn_b1"])
    return h1 @ p["dnn_w2"] + p["dnn_b2"]                # apply_final_act=False


if __name__ == "__main__":
    # (batch, fields, n_dim) consistent with the module; F*D = 128 keeps the
    # activation layout exactly one vreg lane-group wide.
    B, F, D = 512, 4, 32
    reduction_ratio = 2
    hidden_units = [4, 1]

    key = jax.random.PRNGKey(0)
    kx, kp = jax.random.split(key)
    x = jax.random.normal(kx, (B, F, D), jnp.float32)
    params = make_params(kp, F, D, reduction_ratio, hidden_units)

    fwd = jax.jit(functools.partial(fibinet_forward, tb=256))
    out = jax.block_until_ready(fwd(x, params))

    ref = jax.block_until_ready(fibinet_reference(x, params))
    assert out.shape == (B, hidden_units[-1])
    assert jnp.allclose(out, ref, atol=5e-4, rtol=5e-4), "mismatch vs reference"

    print("KERNEL_OK")
</pallas_src>

<mosaic_0001>
module attributes {stable_mosaic.version = 11 : i64} {
  func.func @fibinet_kernel(%arg0: i32, %arg1: memref<256x128xf32, #tpu.memory_space<vmem>>, %arg2: memref<1304x128xf32, #tpu.memory_space<vmem>>, %arg3: memref<136x128xf32, #tpu.memory_space<vmem>>, %arg4: memref<256x512xf32, #tpu.memory_space<vmem>>, %arg5: memref<256x128xf32, #tpu.memory_space<vmem>>) attributes {dimension_semantics = [#tpu.dimension_semantics<parallel>], iteration_bounds = array<i64: 2>, scalar_prefetch = 0 : i64, scratch_operands = 0 : i64, tpu.core_type = #tpu.core_type<tc>, window_params = [{transform_indices = @transform_0, window_bounds = array<i64: 256, 128>}, {pipeline_mode = #tpu.pipeline_mode<synchronous>, transform_indices = @transform_1, window_bounds = array<i64: 1304, 128>}, {pipeline_mode = #tpu.pipeline_mode<synchronous>, transform_indices = @transform_2, window_bounds = array<i64: 136, 128>}, {pipeline_mode = #tpu.pipeline_mode<synchronous>, transform_indices = @transform_3, window_bounds = array<i64: 256, 512>}, {transform_indices = @transform_4, window_bounds = array<i64: 256, 128>}]} {
    %c0 = arith.constant 0 : index
    %c0_0 = arith.constant 0 : index
    %0 = vector.load %arg1[%c0, %c0_0] : memref<256x128xf32, #tpu.memory_space<vmem>>, vector<256x128xf32>
    %c0_1 = arith.constant 0 : index
    %c0_2 = arith.constant 0 : index
    %1 = vector.load %arg2[%c0_1, %c0_2] : memref<1304x128xf32, #tpu.memory_space<vmem>>, vector<128x128xf32>
    %c128 = arith.constant 128 : index
    %c0_3 = arith.constant 0 : index
    %2 = vector.load %arg2[%c128, %c0_3] : memref<1304x128xf32, #tpu.memory_space<vmem>>, vector<1x128xf32>
    %cst = arith.constant dense<0.000000e+00> : vector<256x128xf32>
    %3 = tpu.matmul %0, %1, %cst {dimension_numbers = #tpu.dot_dimension_numbers<[1], [0], [0], [1], [0, 0, 1, 1], [], []>} : vector<256x128xf32>, vector<128x128xf32>, vector<256x128xf32> -> vector<256x128xf32>
    %4 = vector.broadcast %2 : vector<1x128xf32> to vector<256x128xf32>
    %5 = arith.addf %3, %4 : vector<256x128xf32>
    %cst_4 = arith.constant 0.000000e+00 : f32
    %6 = vector.broadcast %cst_4 : f32 to vector<256x128xf32>
    %7 = arith.maximumf %5, %6 : vector<256x128xf32>
    %c0_5 = arith.constant 0 : index
    %c0_6 = arith.constant 0 : index
    %8 = vector.load %arg3[%c0_5, %c0_6] : memref<136x128xf32, #tpu.memory_space<vmem>>, vector<128x128xf32>
    %c128_7 = arith.constant 128 : index
    %c0_8 = arith.constant 0 : index
    %9 = vector.load %arg3[%c128_7, %c0_8] : memref<136x128xf32, #tpu.memory_space<vmem>>, vector<1x128xf32>
    %cst_9 = arith.constant dense<0.000000e+00> : vector<256x128xf32>
    %10 = tpu.matmul %7, %8, %cst_9 {dimension_numbers = #tpu.dot_dimension_numbers<[1], [0], [0], [1], [0, 0, 1, 1], [], []>} : vector<256x128xf32>, vector<128x128xf32>, vector<256x128xf32> -> vector<256x128xf32>
    %11 = vector.broadcast %9 : vector<1x128xf32> to vector<256x128xf32>
    %12 = arith.addf %10, %11 : vector<256x128xf32>
    %cst_10 = arith.constant 0.000000e+00 : f32
    %13 = vector.broadcast %cst_10 : f32 to vector<256x128xf32>
    %14 = arith.maximumf %12, %13 : vector<256x128xf32>
    %15 = arith.mulf %0, %14 : vector<256x128xf32>
    %c0_11 = arith.constant 0 : index
    %c0_12 = arith.constant 0 : index
    %16 = vector.load %arg4[%c0_11, %c0_12] : memref<256x512xf32, #tpu.memory_space<vmem>>, vector<128x512xf32>
    %c128_13 = arith.constant 128 : index
    %c0_14 = arith.constant 0 : index
    %17 = vector.load %arg4[%c128_13, %c0_14] : memref<256x512xf32, #tpu.memory_space<vmem>>, vector<128x512xf32>
    %cst_15 = arith.constant dense<0.000000e+00> : vector<256x512xf32>
    %18 = tpu.matmul %0, %16, %cst_15 {dimension_numbers = #tpu.dot_dimension_numbers<[1], [0], [0], [1], [0, 0, 1, 1], [], []>} : vector<256x128xf32>, vector<128x512xf32>, vector<256x512xf32> -> vector<256x512xf32>
    %19 = tpu.concatenate %0, %0, %0, %0 in 1 : vector<256x128xf32>, vector<256x128xf32>, vector<256x128xf32>, vector<256x128xf32> -> vector<256x512xf32>
    %20 = arith.mulf %18, %19 : vector<256x512xf32>
    %cst_16 = arith.constant dense<0.000000e+00> : vector<256x512xf32>
    %21 = tpu.matmul %15, %17, %cst_16 {dimension_numbers = #tpu.dot_dimension_numbers<[1], [0], [0], [1], [0, 0, 1, 1], [], []>} : vector<256x128xf32>, vector<128x512xf32>, vector<256x512xf32> -> vector<256x512xf32>
    %22 = tpu.concatenate %15, %15, %15, %15 in 1 : vector<256x128xf32>, vector<256x128xf32>, vector<256x128xf32>, vector<256x128xf32> -> vector<256x512xf32>
    %23 = arith.mulf %21, %22 : vector<256x512xf32>
    %c136 = arith.constant 136 : index
    %c0_17 = arith.constant 0 : index
    %24 = vector.load %arg2[%c136, %c0_17] : memref<1304x128xf32, #tpu.memory_space<vmem>>, vector<512x128xf32>
    %c648 = arith.constant 648 : index
    %c0_18 = arith.constant 0 : index
    %25 = vector.load %arg2[%c648, %c0_18] : memref<1304x128xf32, #tpu.memory_space<vmem>>, vector<512x128xf32>
    %c1160 = arith.constant 1160 : index
    %c0_19 = arith.constant 0 : index
    %26 = vector.load %arg2[%c1160, %c0_19] : memref<1304x128xf32, #tpu.memory_space<vmem>>, vector<1x128xf32>
    %cst_20 = arith.constant dense<0.000000e+00> : vector<256x128xf32>
    %27 = tpu.matmul %20, %24, %cst_20 {dimension_numbers = #tpu.dot_dimension_numbers<[1], [0], [0], [1], [0, 0, 1, 1], [], []>} : vector<256x512xf32>, vector<512x128xf32>, vector<256x128xf32> -> vector<256x128xf32>
    %cst_21 = arith.constant dense<0.000000e+00> : vector<256x128xf32>
    %28 = tpu.matmul %23, %25, %cst_21 {dimension_numbers = #tpu.dot_dimension_numbers<[1], [0], [0], [1], [0, 0, 1, 1], [], []>} : vector<256x512xf32>, vector<512x128xf32>, vector<256x128xf32> -> vector<256x128xf32>
    %29 = arith.addf %27, %28 : vector<256x128xf32>
    %30 = vector.broadcast %26 : vector<1x128xf32> to vector<256x128xf32>
    %31 = arith.addf %29, %30 : vector<256x128xf32>
    %cst_22 = arith.constant 0.000000e+00 : f32
    %32 = vector.broadcast %cst_22 : f32 to vector<256x128xf32>
    %33 = arith.maximumf %31, %32 : vector<256x128xf32>
    %c1168 = arith.constant 1168 : index
    %c0_23 = arith.constant 0 : index
    %34 = vector.load %arg2[%c1168, %c0_23] : memref<1304x128xf32, #tpu.memory_space<vmem>>, vector<128x128xf32>
    %c1296 = arith.constant 1296 : index
    %c0_24 = arith.constant 0 : index
    %35 = vector.load %arg2[%c1296, %c0_24] : memref<1304x128xf32, #tpu.memory_space<vmem>>, vector<1x128xf32>
    %cst_25 = arith.constant dense<0.000000e+00> : vector<256x128xf32>
    %36 = tpu.matmul %33, %34, %cst_25 {dimension_numbers = #tpu.dot_dimension_numbers<[1], [0], [0], [1], [0, 0, 1, 1], [], []>} : vector<256x128xf32>, vector<128x128xf32>, vector<256x128xf32> -> vector<256x128xf32>
    %37 = vector.broadcast %35 : vector<1x128xf32> to vector<256x128xf32>
    %38 = arith.addf %36, %37 : vector<256x128xf32>
    %c0_26 = arith.constant 0 : index
    %c0_27 = arith.constant 0 : index
    %39 = vector.load %arg5[%c0_26, %c0_27] : memref<256x128xf32, #tpu.memory_space<vmem>>, vector<256x128xf32>
    tpu.vector_store %arg5[%c0_26, %c0_27], %38 {strides = array<i32>} : memref<256x128xf32, #tpu.memory_space<vmem>>, vector<256x128xf32>,
    return
  }
  func.func @transform_0(%arg0: i32) -> (i32, i32) {
    %c0_i32 = arith.constant 0 : i32
    %c0_i32_0 = arith.constant 0 : i32
    return %arg0, %c0_i32 : i32, i32
  }
  func.func @transform_1(%arg0: i32) -> (i32, i32) {
    %c0_i32 = arith.constant 0 : i32
    %c0_i32_0 = arith.constant 0 : i32
    %c0_i32_1 = arith.constant 0 : i32
    return %c0_i32, %c0_i32_0 : i32, i32
  }
  func.func @transform_2(%arg0: i32) -> (i32, i32) {
    %c0_i32 = arith.constant 0 : i32
    %c0_i32_0 = arith.constant 0 : i32
    %c0_i32_1 = arith.constant 0 : i32
    return %c0_i32, %c0_i32_0 : i32, i32
  }
  func.func @transform_3(%arg0: i32) -> (i32, i32) {
    %c0_i32 = arith.constant 0 : i32
    %c0_i32_0 = arith.constant 0 : i32
    %c0_i32_1 = arith.constant 0 : i32
    return %c0_i32, %c0_i32_0 : i32, i32
  }
  func.func @transform_4(%arg0: i32) -> (i32, i32) {
    %c0_i32 = arith.constant 0 : i32
    %c0_i32_0 = arith.constant 0 : i32
    return %arg0, %c0_i32 : i32, i32
  }
}

</mosaic_0001>

<bundles_post_ra>
// kernel: fibinet_forward.1
= control target key start
LH: loop header
LB: loop body
LE: loop exit
PB: predicated region body
PF: predicated region fallthrough
CT: control target
= control target key end

     0   :  { %s4604_s15 = smov 0   ;;  %s7109_s0 = inlined_call_operand.vmem [shape: f32[512,128], index: 0, kind: input, shape index: {}]   ;;  %s7110_s1 = inlined_call_operand.vmem [shape: f32[1304,128], index: 1, kind: input, shape index: {}]   ;;  %s7111_s2 = inlined_call_operand.vmem [shape: f32[136,128], index: 2, kind: input, shape index: {}]   ;;  %s7112_s3 = inlined_call_operand.vmem [shape: f32[256,512], index: 3, kind: input, shape index: {}]   ;;  %s7113_s4 = inlined_call_operand.vmem [shape: f32[512,128], index: 4, kind: output, shape index: {}]  }
   0x1 LB: > { %s3664_s16 = sadd.s32 4294967295, %s4575_s15   ;;  %p3668_p0 = scmp.ge.s32.totalorder %s4575_s15, 1  ;;  %s4575_s15 = sphi %s4604_s15, %s14_s15  }
   0x2   : > { %p163_p1 = scmp.lt.s32.totalorder %s4575_s15, 3 }
   0x4   : > { %p164_p2 = pnand %p3668_p0, %p163_p1 }
   0x6   : > { %167 = sbr.rel (%p164_p2) target bundleno = 1389 (0x56d), region = 36 }
   0xd   : > { %v233_v0 = vld [vmem:[%s7110_s1] sm:$0xff]  ;;  %v234_v1 = vld [vmem:[%s7110_s1 + $0x8] sm:$0xff]  ;;  %v235_v2 = vld [vmem:[%s7110_s1 + $0x10] sm:$0xff]  ;;  %s3669_s23 = sshll.u32 %s3664_s16, 5 }
   0xe   : > { %v4063_v3 = vpack.c.bf16 %v234_v1, %v233_v0  ;;  %v236_v4 = vld [vmem:[%s7110_s1 + $0x18] sm:$0xff]  ;;  %p190_p3 = scmp.lt.s32.totalorder %s3669_s23, 63  ;;  %v237_v6 = vld [vmem:[%s7110_s1 + $0x20] sm:$0xff]  ;;  %v238_v7 = vld [vmem:[%s7110_s1 + $0x28] sm:$0xff] }
   0xf   : > { %v4067_v5 = vpack.c.bf16 %v236_v4, %v235_v2  ;;  %v4071_v8 = vpack.c.bf16 %v238_v7, %v237_v6  ;;  %v239_v9 = vld [vmem:[%s7110_s1 + $0x30] sm:$0xff]  ;;  %v240_v10 = vld [vmem:[%s7110_s1 + $0x38] sm:$0xff]  ;;  %v241_v13 = vld [vmem:[%s7110_s1 + $0x40] sm:$0xff] }
  0x10   : > { %4064 = vmatprep.subr.bf16.mxu0 %v4063_v3  ;;  %s7351_s23 = smov (!%p190_p3, %s3669_s23), 63  ;;  %4479 = vmatprep.subr.bf16.mxu1 %v4063_v3  ;;  %v4075_v12 = vpack.c.bf16 %v240_v10, %v239_v9  ;;  %v242_v14 = vld [vmem:[%s7110_s1 + $0x48] sm:$0xff]  ;;  %v243_v17 = vld [vmem:[%s7110_s1 + $0x50] sm:$0xff]  ;;  %v244_v18 = vld [vmem:[%s7110_s1 + $0x58] sm:$0xff] }
  0x11   : > { %4066 = vmatpush3.bf16.msra.mxu0 %v4063_v3  ;;  %4487 = vmatpush3.bf16.msra.mxu1 %v4063_v3  ;;  %s3670_s30 = sshll.u32 %s7351_s23, 3  ;;  %v4079_v16 = vpack.c.bf16 %v242_v14, %v241_v13  ;;  %v4083_v19 = vpack.c.bf16 %v244_v18, %v243_v17  ;;  %v245_v20 = vld [vmem:[%s7110_s1 + $0x60] sm:$0xff]  ;;  %v246_v21 = vld [vmem:[%s7110_s1 + $0x68] sm:$0xff]  ;;  %v247_v23 = vld [vmem:[%s7110_s1 + $0x70] sm:$0xff] }
  0x12   : > { %4068 = vmatprep.subr.bf16.mxu0 %v4067_v5  ;;  %4480 = vmatprep.subr.bf16.mxu1 %v4067_v5  ;;  %s4644_s11 = scalar_lea.vmem %s7109_s0, %s3670_s30  ;;  %v4087_v22 = vpack.c.bf16 %v246_v21, %v245_v20  ;;  %v248_v24 = vld [vmem:[%s7110_s1 + $0x78] sm:$0xff]  ;;  %v511_v26 = vld [vmem:[%s7111_s2] sm:$0xff]  ;;  %v512_v27 = vld [vmem:[%s7111_s2 + $0x8] sm:$0xff]  ;;  %s7040_s20 = scalar_lea.vmem %s7113_s4, %s3670_s30 }
  0x13   : > { %v4647_v11 = vld [vmem:[%s4644_s11] sm:$0xff]  ;;  %v4091_v25 = vpack.c.bf16 %v248_v24, %v247_v23  ;;  %v4095_v28 = vpack.c.bf16 %v512_v27, %v511_v26  ;;  %v513_v29 = vld [vmem:[%s7111_s2 + $0x10] sm:$0xff]  ;;  %v514_v30 = vld [vmem:[%s7111_s2 + $0x18] sm:$0xff] }
  0x14   : > { %3855 = vmatprep.mubr.f32.mxu0 %v4647_v11  ;;  %v4657_v15 = vld [vmem:[%s4644_s11 + $0x80] sm:$0xff]  ;;  %v4691_v31 = vld [vmem:[%s4644_s11 + $0x8] sm:$0xff]  ;;  %v4694_v32 = vld [vmem:[%s4644_s11 + $0x10] sm:$0xff]  ;;  %v4099_v35 = vpack.c.bf16 %v514_v30, %v513_v29 }
  0x15   : > { %4070 = vmatpush3.bf16.msra.mxu0 %v4067_v5  ;;  %4488 = vmatpush3.bf16.msra.mxu1 %v4067_v5  ;;  %v4697_v33 = vld [vmem:[%s4644_s11 + $0x88] sm:$0xff]  ;;  %v4700_v34 = vld [vmem:[%s4644_s11 + $0x90] sm:$0xff]  ;;  %v515_v36 = vld [vmem:[%s7111_s2 + $0x20] sm:$0xff] }
  0x16   : > { %4072 = vmatprep.subr.bf16.mxu0 %v4071_v8  ;;  %4481 = vmatprep.subr.bf16.mxu1 %v4071_v8  ;;  %v516_v37 = vld [vmem:[%s7111_s2 + $0x28] sm:$0xff]  ;;  %v4711_v38 = vld [vmem:[%s4644_s11 + $0x18] sm:$0xff]  ;;  %v4715_v39 = vld [vmem:[%s4644_s11 + $0x20] sm:$0xff] }
  0x17   : > { %3879 = vmatprep.mubr.f32.mxu1 %v4657_v15  ;;  %v4719_v40 = vld [vmem:[%s4644_s11 + $0x98] sm:$0xff]  ;;  %v4722_v41 = vld [vmem:[%s4644_s11 + $0xa0] sm:$0xff]  ;;  %v4103_v42 = vpack.c.bf16 %v516_v37, %v515_v36  ;;  %v517_v43 = vld [vmem:[%s7111_s2 + $0x30] sm:$0xff] }
  0x18   : > { %v518_v44 = vld [vmem:[%s7111_s2 + $0x38] sm:$0xff]  ;;  %v4733_v45 = vld [vmem:[%s4644_s11 + $0x28] sm:$0xff]  ;;  %v4737_v46 = vld [vmem:[%s4644_s11 + $0x30] sm:$0xff] }
  0x19   : > { %4074 = vmatpush3.bf16.msra.mxu0 %v4071_v8  ;;  %4489 = vmatpush3.bf16.msra.mxu1 %v4071_v8  ;;  %v4741_v47 = vld [vmem:[%s4644_s11 + $0xa8] sm:$0xff]  ;;  %v4744_v48 = vld [vmem:[%s4644_s11 + $0xb0] sm:$0xff]  ;;  %v4107_v49 = vpack.c.bf16 %v518_v44, %v517_v43  ;;  %v519_v50 = vld [vmem:[%s7111_s2 + $0x40] sm:$0xff] }
  0x1a   : > { %4076 = vmatprep.subr.bf16.mxu0 %v4075_v12  ;;  %4482 = vmatprep.subr.bf16.mxu1 %v4075_v12  ;;  %v520_v51 = vld [vmem:[%s7111_s2 + $0x48] sm:$0xff]  ;;  %v4755_v52 = vld [vmem:[%s4644_s11 + $0x38] sm:$0xff]  ;;  %v4759_v53 = vld [vmem:[%s4644_s11 + $0x40] sm:$0xff] }
  0x1b   : > { %v4763_v54 = vld [vmem:[%s4644_s11 + $0xb8] sm:$0xff]  ;;  %v4766_v55 = vld [vmem:[%s4644_s11 + $0xc0] sm:$0xff]  ;;  %v4111_v56 = vpack.c.bf16 %v520_v51, %v519_v50  ;;  %v521_v57 = vld [vmem:[%s7111_s2 + $0x50] sm:$0xff] }
  0x1c   : > { %v522_v58 = vld [vmem:[%s7111_s2 + $0x58] sm:$0xff]  ;;  %v4777_v59 = vld [vmem:[%s4644_s11 + $0x48] sm:$0xff]  ;;  %v4781_v60 = vld [vmem:[%s4644_s11 + $0x50] sm:$0xff] }
  0x1d   : > { %4078 = vmatpush3.bf16.msra.mxu0 %v4075_v12  ;;  %4490 = vmatpush3.bf16.msra.mxu1 %v4075_v12  ;;  %v4785_v61 = vld [vmem:[%s4644_s11 + $0xc8] sm:$0xff]  ;;  %v4788_v62 = vld [vmem:[%s4644_s11 + $0xd0] sm:$0xff]  ;;  %v4115_v63 = vpack.c.bf16 %v522_v58, %v521_v57  ;;  %v523_v0 = vld [vmem:[%s7111_s2 + $0x60] sm:$0xff] }
  0x1e   : > { %4080 = vmatprep.subr.bf16.mxu0 %v4079_v16  ;;  %4483 = vmatprep.subr.bf16.mxu1 %v4079_v16  ;;  %v524_v1 = vld [vmem:[%s7111_s2 + $0x68] sm:$0xff]  ;;  %v4799_v2 = vld [vmem:[%s4644_s11 + $0x58] sm:$0xff]  ;;  %v4803_v3 = vld [vmem:[%s4644_s11 + $0x60] sm:$0xff] }
  0x1f   : > { %v4807_v4 = vld [vmem:[%s4644_s11 + $0xd8] sm:$0xff]  ;;  %v4810_v5 = vld [vmem:[%s4644_s11 + $0xe0] sm:$0xff]  ;;  %v4119_v6 = vpack.c.bf16 %v524_v1, %v523_v0  ;;  %v4815_v7 = vld [vmem:[%s4644_s11 + $0x68] sm:$0xff] }
  0x20   : > { %v4819_v8 = vld [vmem:[%s4644_s11 + $0x70] sm:$0xff]  ;;  %v4823_v9 = vld [vmem:[%s4644_s11 + $0xe8] sm:$0xff]  ;;  %v4831_v12 = vld [vmem:[%s4644_s11 + $0x78] sm:$0xff] }
  0x21   : > { %4082 = vmatpush3.bf16.msra.mxu0 %v4079_v16  ;;  %4491 = vmatpush3.bf16.msra.mxu1 %v4079_v16  ;;  %v4826_v10 = vld [vmem:[%s4644_s11 + $0xf0] sm:$0xff]  ;;  %v4836_v13 = vld [vmem:[%s4644_s11 + $0xf8] sm:$0xff]  ;;  %v822_v21 = vld [vmem:[%s7112_s3 + $0x8] sm:$0xff] }
  0x22   : > { %4084 = vmatprep.subr.bf16.mxu0 %v4083_v19  ;;  %4484 = vmatprep.subr.bf16.mxu1 %v4083_v19  ;;  %v525_v14 = vld [vmem:[%s7111_s2 + $0x70] sm:$0xff]  ;;  %v526_v16 = vld [vmem:[%s7111_s2 + $0x78] sm:$0xff]  ;;  %v821_v23 = vld [vmem:[%s7112_s3] sm:$0xff] }
  0x23   : > { %v4123_v17 = vpack.c.bf16 %v526_v16, %v525_v14  ;;  %v824_v18 = vld [vmem:[%s7112_s3 + $0x18] sm:$0xff]  ;;  %v830_v27 = vld [vmem:[%s7112_s3 + $0x48] sm:$0xff]  ;;  %v829_v29 = vld [vmem:[%s7112_s3 + $0x40] sm:$0xff] }
  0x24   : > { %v838_v37 = vld [vmem:[%s7112_s3 + $0x88] sm:$0xff]  ;;  %v837_v43 = vld [vmem:[%s7112_s3 + $0x80] sm:$0xff] }
  0x25   : > { %4086 = vmatpush3.bf16.msra.mxu0 %v4083_v19  ;;  %4492 = vmatpush3.bf16.msra.mxu1 %v4083_v19  ;;  %v828_v19 = vld [vmem:[%s7112_s3 + $0x38] sm:$0xff]  ;;  %v846_v51 = vld [vmem:[%s7112_s3 + $0xc8] sm:$0xff]  ;;  %v845_v57 = vld [vmem:[%s7112_s3 + $0xc0] sm:$0xff] }
  0x26   : > { %4088 = vmatprep.subr.bf16.mxu0 %v4087_v22  ;;  %4485 = vmatprep.subr.bf16.mxu1 %v4087_v22  ;;  %v4159_v20 = vpack.c.bf16 %v828_v19, %v824_v18  ;;  %v854_v1 = vld [vmem:[%s7112_s3 + $0x108] sm:$0xff]  ;;  %v853_v14 = vld [vmem:[%s7112_s3 + $0x100] sm:$0xff] }
  0x27   : > { %v862_v19 = vld [vmem:[%s7112_s3 + $0x148] sm:$0xff] }
  0x29   : > { %4090 = vmatpush3.bf16.msra.mxu0 %v4087_v22  ;;  %4493 = vmatpush3.bf16.msra.mxu1 %v4087_v22  ;;  %v826_v22 = vld [vmem:[%s7112_s3 + $0x28] sm:$0xff] }
  0x2a   : > { %4092 = vmatprep.subr.bf16.mxu0 %v4091_v25  ;;  %4486 = vmatprep.subr.bf16.mxu1 %v4091_v25  ;;  %v4127_v24 = vpack.c.bf16 %v826_v22, %v822_v21  ;;  %v861_v21 = vld [vmem:[%s7112_s3 + $0x140] sm:$0xff] }
  0x2d   : > { %4094 = vmatpush3.bf16.msra.mxu0 %v4091_v25  ;;  %4494 = vmatpush3.bf16.msra.mxu1 %v4091_v25  ;;  %v825_v25 = vld [vmem:[%s7112_s3 + $0x20] sm:$0xff] }
  0x2e   : > { %4096 = vmatprep.subr.bf16.mxu1 %v4095_v28  ;;  %v4129_v26 = vpack.c.bf16 %v825_v25, %v821_v23  ;;  %4128 = vmatprep.subr.bf16.mxu0 %v4127_v24  ;;  %v865_v23 = vld [vmem:[%s7112_s3 + $0x160] sm:$0xff]  ;;  %v870_v25 = vld [vmem:[%s7112_s3 + $0x188] sm:$0xff] }
  0x2f   : > { %v4149_v24 = vpack.c.bf16 %v865_v23, %v861_v21 }
  0x30   : > { %3856 = vmatmul.mubr.f32.vlgmr.msra.gmra.mrb[0].mxu0 %v4691_v31  ;;  %3880 = vmatmul.mubr.f32.vlgmr.msra.gmra.mrb[0].mxu1 %v4697_v33 }
  0x31   : > { %3858 = vmatprep.mubr.f32.mxu0 %v4694_v32  ;;  %3882 = vmatprep.mubr.f32.mxu1 %v4700_v34 }
  0x32   : > { %4098 = vmatpush3.bf16.msra.mxu1 %v4095_v28  ;;  %4130 = vmatpush1.bf16.msra.mxu0 %v4129_v26  ;;  %v834_v28 = vld [vmem:[%s7112_s3 + $0x68] sm:$0xff] }
  0x33   : > { %4100 = vmatprep.subr.bf16.mxu1 %v4099_v35  ;;  %v4131_v30 = vpack.c.bf16 %v834_v28, %v830_v27  ;;  %v874_v26 = vld [vmem:[%s7112_s3 + $0x1a8] sm:$0xff]  ;;  %v869_v27 = vld [vmem:[%s7112_s3 + $0x180] sm:$0xff] }
  0x34   : > { %3859 = vmatmul.mubr.f32.gmra.mrb[2].mxu0 %v4711_v38  ;;  %3883 = vmatmul.mubr.f32.gmra.mrb[2].mxu1 %v4719_v40  ;;  %v4151_v28 = vpack.c.bf16 %v874_v26, %v870_v25  ;;  %v827_v25 = vld [vmem:[%s7112_s3 + $0x30] sm:$0xff] }
  0x35   : > { %3861 = vmatprep.mubr.f32.mxu0 %v4715_v39  ;;  %3885 = vmatprep.mubr.f32.mxu1 %v4722_v41 }
  0x36   : > { %4102 = vmatpush3.bf16.msra.mxu1 %v4099_v35  ;;  %v833_v35 = vld [vmem:[%s7112_s3 + $0x60] sm:$0xff]  ;;  %4132 = vmatprep.subr.bf16.mxu0 %v4131_v30 }
  0x37   : > { %4104 = vmatprep.subr.bf16.mxu1 %v4103_v42  ;;  %v4133_v36 = vpack.c.bf16 %v833_v35, %v829_v29  ;;  %v873_v29 = vld [vmem:[%s7112_s3 + $0x1a0] sm:$0xff]  ;;  %v878_v35 = vld [vmem:[%s7112_s3 + $0x1c8] sm:$0xff] }
  0x38   : > { %3862 = vmatmul.mubr.f32.gmra.mrb[4].mxu0 %v4733_v45  ;;  %3886 = vmatmul.mubr.f32.gmra.mrb[4].mxu1 %v4741_v47  ;;  %v4153_v30 = vpack.c.bf16 %v873_v29, %v869_v27  ;;  %v836_v29 = vld [vmem:[%s7112_s3 + $0x78] sm:$0xff] }
  0x39   : > { %3864 = vmatprep.mubr.f32.mxu0 %v4737_v46  ;;  %3888 = vmatprep.mubr.f32.mxu1 %v4744_v48 }
  0x3a   : > { %4106 = vmatpush3.bf16.msra.mxu1 %v4103_v42  ;;  %4134 = vmatpush1.bf16.msra.mxu0 %v4133_v36  ;;  %v842_v42 = vld [vmem:[%s7112_s3 + $0xa8] sm:$0xff] }
  0x3b   : > { %4108 = vmatprep.subr.bf16.mxu1 %v4107_v49  ;;  %v4135_v44 = vpack.c.bf16 %v842_v42, %v838_v37  ;;  %v882_v36 = vld [vmem:[%s7112_s3 + $0x1e8] sm:$0xff]  ;;  %v877_v37 = vld [vmem:[%s7112_s3 + $0x1c0] sm:$0xff] }
  0x3c   : > { %3865 = vmatmul.mubr.f32.gmra.mrb[6].mxu0 %v4755_v52  ;;  %3889 = vmatmul.mubr.f32.gmra.mrb[6].mxu1 %v4763_v54  ;;  %v4155_v42 = vpack.c.bf16 %v882_v36, %v878_v35 }
  0x3d   : > { %3867 = vmatprep.mubr.f32.mxu0 %v4759_v53  ;;  %3891 = vmatprep.mubr.f32.mxu1 %v4766_v55 }
  0x3e   : > { %4110 = vmatpush3.bf16.msra.mxu1 %v4107_v49  ;;  %v841_v49 = vld [vmem:[%s7112_s3 + $0xa0] sm:$0xff]  ;;  %4136 = vmatprep.subr.bf16.mxu0 %v4135_v44  ;;  %v7116_v44 = vmov 0.0  }
  0x3f   : > { %4112 = vmatprep.subr.bf16.mxu1 %v4111_v56  ;;  %v4137_v50 = vpack.c.bf16 %v841_v49, %v837_v43  ;;  %v881_v43 = vld [vmem:[%s7112_s3 + $0x1e0] sm:$0xff]  ;;  %v886_v49 = vld [vmem:[%s7112_s3 + $0x208] sm:$0xff] }
  0x40   : > { %3868 = vmatmul.mubr.f32.gmra.mrb[8].mxu0 %v4777_v59  ;;  %3892 = vmatmul.mubr.f32.gmra.mrb[8].mxu1 %v4785_v61 }
  0x41   : > { %3870 = vmatprep.mubr.f32.mxu0 %v4781_v60  ;;  %3894 = vmatprep.mubr.f32.mxu1 %v4788_v62 }
  0x42   : > { %4114 = vmatpush3.bf16.msra.mxu1 %v4111_v56  ;;  %4138 = vmatpush1.bf16.msra.mxu0 %v4137_v50  ;;  %v850_v56 = vld [vmem:[%s7112_s3 + $0xe8] sm:$0xff] }
  0x43   : > { %4116 = vmatprep.subr.bf16.mxu1 %v4115_v63  ;;  %v4139_v58 = vpack.c.bf16 %v850_v56, %v846_v51  ;;  %v890_v50 = vld [vmem:[%s7112_s3 + $0x228] sm:$0xff]  ;;  %v4157_v51 = vpack.c.bf16 %v881_v43, %v877_v37 }
  0x44   : > { %3871 = vmatmul.mubr.f32.gmra.mrb[10].mxu0 %v4799_v2  ;;  %3895 = vmatmul.mubr.f32.gmra.mrb[10].mxu1 %v4807_v4  ;;  %v4191_v56 = vpack.c.bf16 %v890_v50, %v886_v49  ;;  %v922_v43 = vld [vmem:[%s7112_s3 + $0x328] sm:$0xff] }
  0x45   : > { %3873 = vmatprep.mubr.f32.mxu0 %v4803_v3  ;;  %3897 = vmatprep.mubr.f32.mxu1 %v4810_v5 }
  0x46   : > { %4118 = vmatpush3.bf16.msra.mxu1 %v4115_v63  ;;  %v849_v63 = vld [vmem:[%s7112_s3 + $0xe0] sm:$0xff]  ;;  %4140 = vmatprep.subr.bf16.mxu0 %v4139_v58 }
  0x47   : > { %4120 = vmatprep.subr.bf16.mxu1 %v4119_v6  ;;  %v4141_v0 = vpack.c.bf16 %v849_v63, %v845_v57  ;;  %v885_v57 = vld [vmem:[%s7112_s3 + $0x200] sm:$0xff] }
  0x48   : > { %3874 = vmatmul.mubr.f32.gmra.mrb[12].mxu0 %v4815_v7  ;;  %3898 = vmatmul.mubr.f32.gmra.mrb[12].mxu1 %v4823_v9  ;;  %v889_v58 = vld [vmem:[%s7112_s3 + $0x220] sm:$0xff] }
  0x49   : > { %3876 = vmatprep.mubr.f32.mxu0 %v4819_v8  ;;  %3900 = vmatprep.mubr.f32.mxu1 %v4826_v10  ;;  %v4193_v63 = vpack.c.bf16 %v889_v58, %v885_v57  ;;  %v831_v57 = vld [vmem:[%s7112_s3 + $0x50] sm:$0xff] }
  0x4a   : > { %4122 = vmatpush3.bf16.msra.mxu1 %v4119_v6  ;;  %4142 = vmatpush1.bf16.msra.mxu0 %v4141_v0  ;;  %v858_v6 = vld [vmem:[%s7112_s3 + $0x128] sm:$0xff]  ;;  %v835_v58 = vld [vmem:[%s7112_s3 + $0x70] sm:$0xff] }
  0x4b   : > { %4124 = vmatprep.subr.bf16.mxu1 %v4123_v17  ;;  %v4143_v16 = vpack.c.bf16 %v858_v6, %v854_v1  ;;  %v894_v0 = vld [vmem:[%s7112_s3 + $0x248] sm:$0xff]  ;;  %v897_v6 = vld [vmem:[%s7112_s3 + $0x260] sm:$0xff] }
  0x4c   : > { %3877 = vmatmul.mubr.f32.gmra.mrb[14].mxu0 %v4831_v12  ;;  %3901 = vmatmul.mubr.f32.gmra.mrb[14].mxu1 %v4836_v13  ;;  %v898_v1 = vld [vmem:[%s7112_s3 + $0x268] sm:$0xff] }
  0x4d   : > { %4144 = vmatprep.subr.bf16.mxu0 %v4143_v16  ;;  %1013 = vmatprep.mubr.f32.mxu0 %v7116_v44  ;;  %v906_v16 = vld [vmem:[%s7112_s3 + $0x2a8] sm:$0xff] }
  0x4e   : > { %4126 = vmatpush3.bf16.msra.mxu1 %v4123_v17  ;;  %v857_v17 = vld [vmem:[%s7112_s3 + $0x120] sm:$0xff] }
  0x4f   : > { %4160 = vmatprep.subr.bf16.mxu1 %v4159_v20  ;;  %v4145_v18 = vpack.c.bf16 %v857_v17, %v853_v14  ;;  %v866_v20 = vld [vmem:[%s7112_s3 + $0x168] sm:$0xff] }
  0x50   : > { %v4147_v22 = vpack.c.bf16 %v866_v20, %v862_v19  ;;  %v5026_v20 = vld [vmem:[%s7110_s1 + $0x80] ss:$0 sm:$0xff] }
  0x51   : > { %4146 = vmatpush1.bf16.msra.mxu0 %v4145_v18  ;;  %v914_v18 = vld [vmem:[%s7112_s3 + $0x2e8] sm:$0xff] }
  0x52   : > { %4148 = vmatprep.subr.bf16.mxu0 %v4147_v22 }
  0x55   : > { %4150 = vmatpush1.bf16.msra.mxu0 %v4149_v24  ;;  %v823_v24 = vld [vmem:[%s7112_s3 + $0x10] sm:$0xff] }
  0x56   : > { %4152 = vmatprep.subr.bf16.mxu0 %v4151_v28  ;;  %v832_v28 = vld [vmem:[%s7112_s3 + $0x58] sm:$0xff]  ;;  %v4161_v37 = vpack.c.bf16 %v827_v25, %v823_v24 }
  0x59   : > { %4154 = vmatpush1.bf16.msra.mxu0 %v4153_v30 }
  0x5a   : > { %4156 = vmatprep.subr.bf16.mxu0 %v4155_v42  ;;  %v918_v42 = vld [vmem:[%s7112_s3 + $0x308] sm:$0xff] }
  0x5d   : > { %4158 = vmatpush1.bf16.msra.mxu0 %v4157_v51 }
  0x5e   : > { %4192 = vmatprep.subr.bf16.mxu0 %v4191_v56  ;;  %v4163_v56 = vpack.c.bf16 %v836_v29, %v832_v28 }
  0x60   : > { %1014 = vmatmul.mubr.f32.vlgmr.msra.gmra.mrb[16].mxu0 %v4647_v11  ;;  %v4195_v11 = vpack.c.bf16 %v898_v1, %v894_v0  ;;  %v4207_v0 = vpack.c.bf16 %v922_v43, %v918_v42  ;;  %v847_v42 = vld [vmem:[%s7112_s3 + $0xd0] sm:$0xff] }
  0x61   : > { %4194 = vmatpush1.bf16.msra.mxu0 %v4193_v63  ;;  %1019 = vmatprep.mubr.f32.mxu0 %v7116_v44 }
  0x62   : > { %4196 = vmatprep.subr.bf16.mxu0 %v4195_v11  ;;  %v840_v11 = vld [vmem:[%s7112_s3 + $0x98] sm:$0xff] }
  0x64   : > { %1020 = vmatmul.mubr.f32.gmra.mrb[18].mxu0 %v4691_v31 }
  0x65   : > { %1025 = vmatprep.mubr.f32.mxu0 %v7116_v44 }
  0x68   : > { %1026 = vmatmul.mubr.f32.gmra.mrb[20].mxu0 %v4694_v32  ;;  %v893_v32 = vld [vmem:[%s7112_s3 + $0x240] sm:$0xff] }
  0x69   : > { %1031 = vmatprep.mubr.f32.mxu0 %v7116_v44  ;;  %v4197_v14 = vpack.c.bf16 %v897_v6, %v893_v32  ;;  %v844_v32 = vld [vmem:[%s7112_s3 + $0xb8] sm:$0xff] }
  0x6b   : > { %4198 = vmatpush1.bf16.msra.mxu0 %v4197_v14 }
  0x6c   : > { %1032 = vmatmul.mubr.f32.gmra.mrb[22].mxu0 %v4711_v38  ;;  %v902_v38 = vld [vmem:[%s7112_s3 + $0x288] sm:$0xff] }
  0x6d   : > { %1037 = vmatprep.mubr.f32.mxu0 %v7116_v44 }
  0x70   : > { %1038 = vmatmul.mubr.f32.gmra.mrb[24].mxu0 %v4715_v39  ;;  %v4199_v39 = vpack.c.bf16 %v906_v16, %v902_v38  ;;  %v917_v38 = vld [vmem:[%s7112_s3 + $0x300] sm:$0xff] }
  0x71   : > { %1043 = vmatprep.mubr.f32.mxu0 %v7116_v44  ;;  %v921_v16 = vld [vmem:[%s7112_s3 + $0x320] sm:$0xff] }
  0x72   : > { %4200 = vmatprep.subr.bf16.mxu0 %v4199_v39 }
  0x74   : > { %1044 = vmatmul.mubr.f32.gmra.mrb[26].mxu0 %v4733_v45  ;;  %v901_v45 = vld [vmem:[%s7112_s3 + $0x280] sm:$0xff] }
  0x75   : > { %1049 = vmatprep.mubr.f32.mxu0 %v7116_v44 }
  0x78   : > { %1050 = vmatmul.mubr.f32.gmra.mrb[28].mxu0 %v4737_v46  ;;  %v905_v46 = vld [vmem:[%s7112_s3 + $0x2a0] sm:$0xff] }
  0x79   : > { %1055 = vmatprep.mubr.f32.mxu0 %v7116_v44  ;;  %v4201_v17 = vpack.c.bf16 %v905_v46, %v901_v45  ;;  %v4165_v46 = vpack.c.bf16 %v835_v58, %v831_v57 }
  0x7b   : > { %4202 = vmatpush1.bf16.msra.mxu0 %v4201_v17  ;;  %v4209_v17 = vpack.c.bf16 %v921_v16, %v917_v38  ;;  %v855_v38 = vld [vmem:[%s7112_s3 + $0x110] sm:$0xff] }
  0x7c   : > { %1056 = vmatmul.mubr.f32.gmra.mrb[30].mxu0 %v4755_v52  ;;  %v910_v52 = vld [vmem:[%s7112_s3 + $0x2c8] sm:$0xff] }
  0x7d   : > { %1061 = vmatprep.mubr.f32.mxu0 %v7116_v44 }
  0x80   : > { %1062 = vmatmul.mubr.f32.gmra.mrb[32].mxu0 %v4759_v53  ;;  %v4203_v53 = vpack.c.bf16 %v914_v18, %v910_v52 }
  0x81   : > { %1067 = vmatprep.mubr.f32.mxu0 %v7116_v44 }
  0x82   : > { %4204 = vmatprep.subr.bf16.mxu0 %v4203_v53  ;;  %v4167_v53 = vpack.c.bf16 %v844_v32, %v840_v11 }
  0x84   : > { %1068 = vmatmul.mubr.f32.gmra.mrb[34].mxu0 %v4777_v59  ;;  %v909_v59 = vld [vmem:[%s7112_s3 + $0x2c0] sm:$0xff] }
  0x85   : > { %1073 = vmatprep.mubr.f32.mxu0 %v7116_v44 }
  0x88   : > { %1074 = vmatmul.mubr.f32.gmra.mrb[36].mxu0 %v4781_v60  ;;  %v913_v60 = vld [vmem:[%s7112_s3 + $0x2e0] sm:$0xff] }
  0x89   : > { %1079 = vmatprep.mubr.f32.mxu0 %v7116_v44  ;;  %v4205_v19 = vpack.c.bf16 %v913_v60, %v909_v59  ;;  %v839_v59 = vld [vmem:[%s7112_s3 + $0x90] sm:$0xff] }
  0x8a   : > { %v843_v60 = vld [vmem:[%s7112_s3 + $0xb0] sm:$0xff] }
  0x8b   : > { %4206 = vmatpush1.bf16.msra.mxu0 %v4205_v19  ;;  %v4169_v29 = vpack.c.bf16 %v843_v60, %v839_v59  ;;  %v926_v60 = vld [vmem:[%s7112_s3 + $0x348] sm:$0xff] }
  0x8c   : > { %1080 = vmatmul.mubr.f32.gmra.mrb[38].mxu0 %v4799_v2  ;;  %4208 = vmatprep.subr.bf16.mxu0 %v4207_v0 }
  0x8d   : > { %1085 = vmatprep.mubr.f32.mxu0 %v7116_v44 }
  0x8f   : > { %4210 = vmatpush1.bf16.msra.mxu0 %v4209_v17  ;;  %v868_v17 = vld [vmem:[%s7112_s3 + $0x178] sm:$0xff] }
  0x90   : > { %1086 = vmatmul.mubr.f32.gmra.mrb[40].mxu0 %v4803_v3 }
  0x91   : > { %1091 = vmatprep.mubr.f32.mxu0 %v7116_v44 }
  0x94   : > { %1092 = vmatmul.mubr.f32.gmra.mrb[42].mxu0 %v4815_v7 }
  0x95   : > { %1097 = vmatprep.mubr.f32.mxu0 %v7116_v44 }
  0x98   : > { %1098 = vmatmul.mubr.f32.gmra.mrb[44].mxu0 %v4819_v8 }
  0x99   : > { %1103 = vmatprep.mubr.f32.mxu0 %v7116_v44 }
  0x9c   : > { %1104 = vmatmul.mubr.f32.gmra.mrb[46].mxu0 %v4831_v12 }
  0x9d   : > { %1109 = vmatprep.mubr.f32.mxu0 %v7116_v44 }
  0xa0   : > { %1110 = vmatmul.mubr.f32.gmra.mrb[48].mxu0 %v4657_v15  ;;  %v851_v15 = vld [vmem:[%s7112_s3 + $0xf0] sm:$0xff] }
  0xa1   : > { %1115 = vmatprep.mubr.f32.mxu0 %v7116_v44 }
  0xa4   : > { %1116 = vmatmul.mubr.f32.gmra.mrb[50].mxu0 %v4697_v33  ;;  %v859_v33 = vld [vmem:[%s7112_s3 + $0x130] sm:$0xff] }
  0xa5   : > { %1121 = vmatprep.mubr.f32.mxu0 %v7116_v44  ;;  %v4177_v59 = vpack.c.bf16 %v859_v33, %v855_v38  ;;  %v875_v38 = vld [vmem:[%s7112_s3 + $0x1b0] sm:$0xff] }
  0xa8   : > { %1122 = vmatmul.mubr.f32.gmra.mrb[52].mxu0 %v4700_v34 }
  0xa9   : > { %1127 = vmatprep.mubr.f32.mxu0 %v7116_v44 }
  0xac   : > { %1128 = vmatmul.mubr.f32.gmra.mrb[54].mxu0 %v4719_v40 }
  0xad   : > { %1133 = vmatprep.mubr.f32.mxu0 %v7116_v44 }
  0xb0   : > { %1134 = vmatmul.mubr.f32.gmra.mrb[56].mxu0 %v4722_v41  ;;  %v879_v41 = vld [vmem:[%s7112_s3 + $0x1d0] sm:$0xff] }
  0xb1   : > { %1139 = vmatprep.mubr.f32.mxu0 %v7116_v44 }
  0xb4   : > { %1140 = vmatmul.mubr.f32.gmra.mrb[58].mxu0 %v4741_v47 }
  0xb5   : > { %1145 = vmatprep.mubr.f32.mxu0 %v7116_v44 }
  0xb8   : > { %1146 = vmatmul.mubr.f32.gmra.mrb[60].mxu0 %v4744_v48  ;;  %v938_v48 = vld [vmem:[%s7112_s3 + $0x3a8] sm:$0xff] }
  0xb9   : > { %1151 = vmatprep.mubr.f32.mxu0 %v7116_v44 }
  0xbc   : > { %1152 = vmatmul.mubr.f32.gmra.mrb[62].mxu0 %v4763_v54 }
  0xbd   : > { %1157 = vmatprep.mubr.f32.mxu0 %v7116_v44 }
  0xc0   : > { %1158 = vmatmul.mubr.f32.gmra.mrb[64].mxu0 %v4766_v55 }
  0xc1   : > { %1163 = vmatprep.mubr.f32.mxu0 %v7116_v44 }
  0xc4   : > { %1164 = vmatmul.mubr.f32.gmra.mrb[66].mxu0 %v4785_v61 }
  0xc5   : > { %1169 = vmatprep.mubr.f32.mxu0 %v7116_v44 }
  0xc8   : > { %1170 = vmatmul.mubr.f32.gmra.mrb[68].mxu0 %v4788_v62  ;;  %v946_v62 = vld [vmem:[%s7112_s3 + $0x3e8] sm:$0xff] }
  0xc9   : > { %1175 = vmatprep.mubr.f32.mxu0 %v7116_v44 }
  0xcc   : > { %1176 = vmatmul.mubr.f32.gmra.mrb[70].mxu0 %v4807_v4 }
  0xcd   : > { %1181 = vmatprep.mubr.f32.mxu0 %v7116_v44 }
  0xd0   : > { %1182 = vmatmul.mubr.f32.gmra.mrb[72].mxu0 %v4810_v5  ;;  %v887_v5 = vld [vmem:[%s7112_s3 + $0x210] sm:$0xff] }
  0xd1   : > { %1187 = vmatprep.mubr.f32.mxu0 %v7116_v44 }
  0xd4   : > { %1188 = vmatmul.mubr.f32.gmra.mrb[74].mxu0 %v4823_v9  ;;  %v900_v9 = vld [vmem:[%s7112_s3 + $0x278] sm:$0xff] }
  0xd5   : > { %1193 = vmatprep.mubr.f32.mxu0 %v7116_v44 }
  0xd8   : > { %1194 = vmatmul.mubr.f32.gmra.mrb[76].mxu0 %v4826_v10  ;;  %v908_v10 = vld [vmem:[%s7112_s3 + $0x2b8] sm:$0xff] }
  0xd9   : > { %1199 = vmatprep.mubr.f32.mxu0 %v7116_v44 }
  0xdc   : > { %1200 = vmatmul.mubr.f32.gmra.mrb[78].mxu0 %v4836_v13  ;;  %v907_v13 = vld [vmem:[%s7112_s3 + $0x2b0] sm:$0xff] }
  0xdd   : > { %1655 = vmatprep.mubr.f32.mxu0 %v7116_v44 }
 0x103   : > { %v3857_v21 = vpop.f32.mrb[0].mxu0  ;;  %v5037_v26 = vpop.f32.mrb[0].mxu1 }
 0x104   : > { %v326_v22 = vadd.f32 %v3857_v21, %v5026_v20  ;;  %v320_v23 = vpop.f32.mrb[1].mxu0  ;;  %v5046_v30 = vpop.f32.mrb[1].mxu1 }
 0x105   : > { %v321_v27 = vadd.f32 %v5026_v20, %v320_v23  ;;  %v852_v23 = vld [vmem:[%s7112_s3 + $0xf8] sm:$0xff] }
 0x106   : > { %v480_v49 = vmax.f32 %v326_v22, 0.0  ;;  %v848_v22 = vld [vmem:[%s7112_s3 + $0xd8] sm:$0xff] }
 0x107   : > { %v3860_v35 = vpop.f32.mrb[2].mxu0  ;;  %v479_v36 = vmax.f32 %v321_v27, 0.0  ;;  %v5063_v63 = vpop.f32.mrb[2].mxu1 }
 0x108   : > { %v336_v50 = vadd.f32 %v3860_v35, %v5026_v20  ;;  %v330_v51 = vpop.f32.mrb[3].mxu0  ;;  %v5072_v6 = vpop.f32.mrb[3].mxu1  ;;  %v416_v47 = vadd.f32 %v5063_v63, %v5026_v20 }
 0x109   : > { %v331_v1 = vadd.f32 %v5026_v20, %v330_v51  ;;  %3935 = vmatprep.mubr.f32.mxu1 %v479_v36  ;;  %v860_v51 = vld [vmem:[%s7112_s3 + $0x138] sm:$0xff] }
 0x10a   : > { %3936 = vmatmul.mubr.f32.vlgmr.msra.gmra.mrb[16].mxu1 %v480_v49  ;;  %v482_v14 = vmax.f32 %v336_v50, 0.0  ;;  %v856_v50 = vld [vmem:[%s7112_s3 + $0x118] sm:$0xff] }
 0x10b   : > { %v481_v39 = vmax.f32 %v331_v1, 0.0  ;;  %v3863_v45 = vpop.f32.mrb[4].mxu0  ;;  %4162 = vmatpush1.bf16.msra.mxu1 %v4161_v37  ;;  %v5089_v19 = vpop.f32.mrb[4].mxu1  ;;  %v4171_v37 = vpack.c.bf16 %v852_v23, %v848_v22  ;;  %v4173_v1 = vpack.c.bf16 %v851_v15, %v847_v42  ;;  %v876_v42 = vld [vmem:[%s7112_s3 + $0x1b8] sm:$0xff] }
 0x10c   : > { %v346_v52 = vadd.f32 %v3863_v45, %v5026_v20  ;;  %v340_v18 = vpop.f32.mrb[5].mxu0  ;;  %4164 = vmatprep.subr.bf16.mxu1 %v4163_v56  ;;  %v5098_v24 = vpop.f32.mrb[5].mxu1  ;;  %v426_v63 = vadd.f32 %v5089_v19, %v5026_v20 }
 0x10d   : > { %3938 = vmatprep.mubr.f32.mxu1 %v481_v39  ;;  %v341_v21 = vadd.f32 %v5026_v20, %v340_v18 }
 0x10e   : > { %3939 = vmatmul.mubr.f32.gmra.mrb[18].mxu1 %v482_v14  ;;  %v484_v25 = vmax.f32 %v346_v52, 0.0  ;;  %v4175_v14 = vpack.c.bf16 %v860_v51, %v856_v50  ;;  %v929_v50 = vld [vmem:[%s7112_s3 + $0x360] sm:$0xff] }
 0x10f   : > { %v483_v27 = vmax.f32 %v341_v21, 0.0  ;;  %v3866_v28 = vpop.f32.mrb[6].mxu0  ;;  %4166 = vmatpush1.bf16.msra.mxu1 %v4165_v46  ;;  %v5109_v43 = vpop.f32.mrb[6].mxu1  ;;  %v864_v46 = vld [vmem:[%s7112_s3 + $0x158] sm:$0xff]  ;;  %v930_v21 = vld [vmem:[%s7112_s3 + $0x368] sm:$0xff] }
 0x110   : > { %v356_v35 = vadd.f32 %v3866_v28, %v5026_v20  ;;  %v350_v36 = vpop.f32.mrb[7].mxu0  ;;  %4168 = vmatprep.subr.bf16.mxu1 %v4167_v53  ;;  %v5118_v56 = vpop.f32.mrb[7].mxu1  ;;  %v4179_v34 = vpack.c.bf16 %v868_v17, %v864_v46  ;;  %v880_v46 = vld [vmem:[%s7112_s3 + $0x1d8] sm:$0xff]  ;;  %v436_v19 = vadd.f32 %v5109_v43, %v5026_v20 }
 0x111   : > { %3941 = vmatprep.mubr.f32.mxu1 %v483_v27  ;;  %v351_v49 = vadd.f32 %v5026_v20, %v350_v36  ;;  %v867_v27 = vld [vmem:[%s7112_s3 + $0x170] sm:$0xff]  ;;  %v884_v17 = vld [vmem:[%s7112_s3 + $0x1f8] sm:$0xff] }
 0x112   : > { %3942 = vmatmul.mubr.f32.gmra.mrb[20].mxu1 %v484_v25  ;;  %v486_v57 = vmax.f32 %v356_v35, 0.0  ;;  %v863_v25 = vld [vmem:[%s7112_s3 + $0x150] sm:$0xff]  ;;  %v502_v55 = vmax.f32 %v436_v19, 0.0 }
 0x113   : > { %v485_v58 = vmax.f32 %v351_v49, 0.0  ;;  %v3869_v0 = vpop.f32.mrb[8].mxu0  ;;  %4170 = vmatpush1.bf16.msra.mxu1 %v4169_v29  ;;  %v5129_v16 = vpop.f32.mrb[8].mxu1  ;;  %v4211_v29 = vpack.c.bf16 %v930_v21, %v926_v60  ;;  %v925_v49 = vld [vmem:[%s7112_s3 + $0x340] sm:$0xff] }
 0x114   : > { %v366_v11 = vadd.f32 %v3869_v0, %v5026_v20  ;;  %v360_v32 = vpop.f32.mrb[9].mxu0  ;;  %4172 = vmatprep.subr.bf16.mxu1 %v4171_v37  ;;  %v5132_v45 = vpop.f32.mrb[9].mxu1  ;;  %v872_v37 = vld [vmem:[%s7112_s3 + $0x198] sm:$0xff]  ;;  %v4213_v0 = vpack.c.bf16 %v929_v50, %v925_v49  ;;  %v411_v49 = vadd.f32 %v5026_v20, %v5072_v6 }
 0x115   : > { %3944 = vmatprep.mubr.f32.mxu1 %v485_v58  ;;  %v361_v39 = vadd.f32 %v5026_v20, %v360_v32  ;;  %v4181_v58 = vpack.c.bf16 %v867_v27, %v863_v25  ;;  %4212 = vmatprep.subr.bf16.mxu0 %v4211_v29  ;;  %v4183_v32 = vpack.c.bf16 %v876_v42, %v872_v37  ;;  %v883_v25 = vld [vmem:[%s7112_s3 + $0x1f0] sm:$0xff]  ;;  %v888_v29 = vld [vmem:[%s7112_s3 + $0x218] sm:$0xff] }
 0x116   : > { %3945 = vmatmul.mubr.f32.gmra.mrb[22].mxu1 %v486_v57  ;;  %v488_v52 = vmax.f32 %v366_v11, 0.0  ;;  %4214 = vmatpush1.bf16.msra.mxu0 %v4213_v0  ;;  %v406_v37 = vadd.f32 %v5037_v26, %v5026_v20  ;;  %v497_v6 = vmax.f32 %v411_v49, 0.0  ;;  %v934_v0 = vld [vmem:[%s7112_s3 + $0x388] sm:$0xff] }
 0x117   : > { %v487_v18 = vmax.f32 %v361_v39, 0.0  ;;  %v3872_v53 = vpop.f32.mrb[10].mxu0  ;;  %4174 = vmatpush1.bf16.msra.mxu1 %v4173_v1  ;;  %v5155_v28 = vpop.f32.mrb[10].mxu1 }
 0x118   : > { %v376_v22 = vadd.f32 %v3872_v53, %v5026_v20  ;;  %v370_v23 = vpop.f32.mrb[11].mxu0  ;;  %4176 = vmatprep.subr.bf16.mxu1 %v4175_v14  ;;  %v5158_v36 = vpop.f32.mrb[11].mxu1  ;;  %v871_v14 = vld [vmem:[%s7112_s3 + $0x190] sm:$0xff]  ;;  %v496_v26 = vmax.f32 %v406_v37, 0.0  ;;  %v904_v37 = vld [vmem:[%s7112_s3 + $0x298] sm:$0xff] }
 0x119   : > { %3947 = vmatprep.mubr.f32.mxu1 %v487_v18  ;;  %v371_v35 = vadd.f32 %v5026_v20, %v370_v23  ;;  %v4185_v60 = vpack.c.bf16 %v875_v38, %v871_v14  ;;  %v431_v14 = vadd.f32 %v5026_v20, %v5118_v56  ;;  %v446_v56 = vadd.f32 %v5129_v16, %v5026_v20 }
 0x11a   : > { %3948 = vmatmul.mubr.f32.gmra.mrb[24].mxu1 %v488_v52  ;;  %v490_v15 = vmax.f32 %v376_v22, 0.0  ;;  %v451_v43 = vadd.f32 %v5026_v20, %v5158_v36  ;;  %v4231_v49 = vpack.c.bf16 %v908_v10, %v904_v37  ;;  %v7114_v10 = vmov 0.0|0.0  }
 0x11b   : > { %v489_v51 = vmax.f32 %v371_v35, 0.0  ;;  %v3875_v57 = vpop.f32.mrb[12].mxu0  ;;  %4178 = vmatpush1.bf16.msra.mxu1 %v4177_v59  ;;  %v5175_v11 = vpop.f32.mrb[12].mxu1  ;;  %v401_v59 = vadd.f32 %v5026_v20, %v5046_v30  ;;  %v892_v35 = vld [vmem:[%s7112_s3 + $0x238] sm:$0xff] }
 0x11c   : > { %v386_v40 = vadd.f32 %v3875_v57, %v5026_v20  ;;  %v380_v1 = vpop.f32.mrb[13].mxu0  ;;  %4180 = vmatprep.subr.bf16.mxu1 %v4179_v34  ;;  %v5184_v39 = vpop.f32.mrb[13].mxu1  ;;  %v4187_v34 = vpack.c.bf16 %v884_v17, %v880_v46  ;;  %v4223_v57 = vpack.c.bf16 %v892_v35, %v888_v29  ;;  %v441_v46 = vadd.f32 %v5026_v20, %v5132_v45  ;;  %v895_v29 = vld [vmem:[%s7112_s3 + $0x250] sm:$0xff] }
 0x11d   : > { %3950 = vmatprep.mubr.f32.mxu1 %v489_v51  ;;  %v381_v33 = vadd.f32 %v5026_v20, %v380_v1  ;;  %v495_v50 = vmax.f32 %v401_v59, 0.0  ;;  %v4189_v51 = vpack.c.bf16 %v883_v25, %v879_v41  ;;  %v498_v1 = vmax.f32 %v416_v47, 0.0  ;;  %v899_v35 = vld [vmem:[%s7112_s3 + $0x270] sm:$0xff] }
 0x11e   : > { %3951 = vmatmul.mubr.f32.gmra.mrb[26].mxu1 %v490_v15  ;;  %v492_v52 = vmax.f32 %v386_v40, 0.0  ;;  %v4215_v40 = vpack.c.bf16 %v938_v48, %v934_v0  ;;  %v501_v17 = vmax.f32 %v431_v14, 0.0  ;;  %v456_v45 = vadd.f32 %v5155_v28, %v5026_v20  ;;  %v920_v0 = vld [vmem:[%s7112_s3 + $0x318] sm:$0xff]  ;;  %v5347_v48 = vld [vmem:[%s4644_s11 + $0x10] sm:$0xff] }
 0x11f   : > { %v491_v18 = vmax.f32 %v381_v33, 0.0  ;;  %v3878_v53 = vpop.f32.mrb[14].mxu0  ;;  %4182 = vmatpush1.bf16.msra.mxu1 %v4181_v58  ;;  %v5197_v23 = vpop.f32.mrb[14].mxu1  ;;  %v421_v58 = vadd.f32 %v5026_v20, %v5098_v24  ;;  %v933_v24 = vld [vmem:[%s7112_s3 + $0x380] sm:$0xff]  ;;  %v500_v33 = vmax.f32 %v426_v63, 0.0  ;;  %v461_v61 = vadd.f32 %v5026_v20, %v5184_v39  ;;  %v932_v14 = vld [vmem:[%s7112_s3 + $0x378] sm:$0xff] }
 0x120   : > { %v396_v21 = vadd.f32 %v3878_v53, %v5026_v20  ;;  %v390_v22 = vpop.f32.mrb[15].mxu0  ;;  %4184 = vmatprep.subr.bf16.mxu1 %v4183_v32  ;;  %v5206_v27 = vpop.f32.mrb[15].mxu1  ;;  %v937_v32 = vld [vmem:[%s7112_s3 + $0x3a0] sm:$0xff]  ;;  %4216 = vmatprep.subr.bf16.mxu0 %v4215_v40  ;;  %v505_v16 = vmax.f32 %v451_v43, 0.0  ;;  %v942_v53 = vld [vmem:[%s7112_s3 + $0x3c8] sm:$0xff]  ;;  %v466_v28 = vadd.f32 %v5175_v11, %v5026_v20  ;;  %v506_v59 = vmax.f32 %v456_v45, 0.0 }
 0x121   : > { %3953 = vmatprep.mubr.f32.mxu1 %v491_v18  ;;  %v391_v30 = vadd.f32 %v5026_v20, %v390_v22  ;;  %v499_v54 = vmax.f32 %v421_v58, 0.0  ;;  %v4217_v38 = vpack.c.bf16 %v937_v32, %v933_v24  ;;  %v504_v18 = vmax.f32 %v446_v56, 0.0  ;;  %v941_v39 = vld [vmem:[%s7112_s3 + $0x3c0] sm:$0xff]  ;;  %v911_v58 = vld [vmem:[%s7112_s3 + $0x2d0] sm:$0xff]  ;;  %v928_v32 = vld [vmem:[%s7112_s3 + $0x358] sm:$0xff] }
 0x122   : > { %3954 = vmatmul.mubr.f32.gmra.mrb[28].mxu1 %v492_v52  ;;  %v494_v42 = vmax.f32 %v396_v21, 0.0  ;;  %v503_v52 = vmax.f32 %v441_v46, 0.0  ;;  %v4219_v36 = vpack.c.bf16 %v946_v62, %v942_v53  ;;  %v471_v21 = vadd.f32 %v5026_v20, %v5206_v27  ;;  %v923_v24 = vld [vmem:[%s7112_s3 + $0x330] sm:$0xff]  ;;  %v940_v56 = vld [vmem:[%s7112_s3 + $0x3b8] sm:$0xff]  ;;  %v5398_v53 = vld [vmem:[%s4644_s11 + $0x28] sm:$0xff] }
 0x123   : > { %v493_v15 = vmax.f32 %v391_v30, 0.0  ;;  %4186 = vmatpush1.bf16.msra.mxu1 %v4185_v60  ;;  %4218 = vmatpush1.bf16.msra.mxu0 %v4217_v38  ;;  %v945_v60 = vld [vmem:[%s7112_s3 + $0x3e0] sm:$0xff]  ;;  %v507_v4 = vmax.f32 %v461_v61, 0.0  ;;  %v476_v11 = vadd.f32 %v5197_v23, %v5026_v20  ;;  %v891_v20 = vld [vmem:[%s7112_s3 + $0x230] sm:$0xff]  ;;  %v896_v23 = vld [vmem:[%s7112_s3 + $0x258] sm:$0xff]  ;;  %v4243_v19 = vpack.c.bf16 %v932_v14, %v928_v32 }
 0x124   : > { %4188 = vmatprep.subr.bf16.mxu1 %v4187_v34  ;;  %4220 = vmatprep.subr.bf16.mxu0 %v4219_v36  ;;  %v4221_v22 = vpack.c.bf16 %v945_v60, %v941_v39  ;;  %v508_v34 = vmax.f32 %v466_v28, 0.0  ;;  %v509_v41 = vmax.f32 %v471_v21, 0.0  ;;  %v4225_v30 = vpack.c.bf16 %v891_v20, %v887_v5  ;;  %v931_v46 = vld [vmem:[%s7112_s3 + $0x370] sm:$0xff]  ;;  %v944_v61 = vld [vmem:[%s7112_s3 + $0x3d8] sm:$0xff]  ;;  %v5484_v5 = vld [vmem:[%s4644_s11 + $0xc0] sm:$0xff] }
 0x125   : > { %3956 = vmatprep.mubr.f32.mxu1 %v493_v15  ;;  %v510_v25 = vmax.f32 %v476_v11, 0.0  ;;  %v4227_v27 = vpack.c.bf16 %v900_v9, %v896_v23  ;;  %v4229_v15 = vpack.c.bf16 %v899_v35, %v895_v29  ;;  %v935_v45 = vld [vmem:[%s7112_s3 + $0x390] sm:$0xff]  ;;  %v5414_v21 = vld [vmem:[%s4644_s11 + $0x38] sm:$0xff]  ;;  %v5489_v20 = vld [vmem:[%s4644_s11 + $0xc8] sm:$0xff] }
 0x126   : > { %3957 = vmatmul.mubr.f32.gmra.mrb[30].mxu1 %v494_v42  ;;  %v5315_v42 = vld [vmem:[%s4644_s11] sm:$0xff]  ;;  %v943_v28 = vld [vmem:[%s7112_s3 + $0x3d0] sm:$0xff] }
 0x127   : > { %3959 = vmatprep.mubr.f32.mxu1 %v495_v50  ;;  %4190 = vmatpush1.bf16.msra.mxu1 %v4189_v51  ;;  %v903_v50 = vld [vmem:[%s7112_s3 + $0x290] sm:$0xff]  ;;  %v912_v51 = vld [vmem:[%s7112_s3 + $0x2d8] sm:$0xff]  ;;  %v5510_v35 = vld [vmem:[%s4644_s11 + $0xe0] sm:$0xff] }
 0x128   : > { %4224 = vmatprep.subr.bf16.mxu1 %v4223_v57  ;;  %4222 = vmatpush1.bf16.msra.mxu0 %v4221_v22  ;;  %v916_v57 = vld [vmem:[%s7112_s3 + $0x2f8] sm:$0xff]  ;;  %v4233_v47 = vpack.c.bf16 %v907_v13, %v903_v50  ;;  %v5409_v39 = vld [vmem:[%s4644_s11 + $0x30] sm:$0xff]  ;;  %v5424_v22 = vld [vmem:[%s4644_s11 + $0x48] sm:$0xff] }
 0x129   : > { %v5429_v11 = vld [vmem:[%s4644_s11 + $0x50] sm:$0xff]  ;;  %4255 = vmatprep.subr.bf16.mxu0 %v7114_v10 }
 0x12a   : > { %3960 = vmatmul.mubr.f32.gmra.mrb[32].mxu1 %v496_v26  ;;  %v4235_v26 = vpack.c.bf16 %v916_v57, %v912_v51  ;;  %v5494_v23 = vld [vmem:[%s4644_s11 + $0xd0] sm:$0xff] }
 0x12b   : > { %3962 = vmatprep.mubr.f32.mxu1 %v497_v6  ;;  %v915_v6 = vld [vmem:[%s7112_s3 + $0x2f0] sm:$0xff] }
 0x12c   : > { %v4237_v40 = vpack.c.bf16 %v915_v6, %v911_v58  ;;  %v5530_v51 = vld [vmem:[%s4644_s11 + $0xf0] sm:$0xff] }
 0x12e   : > { %3963 = vmatmul.mubr.f32.gmra.mrb[34].mxu1 %v498_v1  ;;  %v919_v1 = vld [vmem:[%s7112_s3 + $0x310] sm:$0xff] }
 0x12f   : > { %3965 = vmatprep.mubr.f32.mxu1 %v499_v54  ;;  %v5364_v54 = vld [vmem:[%s4644_s11 + $0x18] sm:$0xff]  ;;  %v4241_v38 = vpack.c.bf16 %v923_v24, %v919_v1 }
 0x132   : > { %3966 = vmatmul.mubr.f32.gmra.mrb[36].mxu1 %v500_v33  ;;  %v927_v33 = vld [vmem:[%s7112_s3 + $0x350] sm:$0xff] }
 0x133   : > { %3968 = vmatprep.mubr.f32.mxu1 %v501_v17  ;;  %v936_v17 = vld [vmem:[%s7112_s3 + $0x398] sm:$0xff]  ;;  %v4245_v43 = vpack.c.bf16 %v931_v46, %v927_v33  ;;  %v5498_v9 = vpop.f32.mrb[16].mxu0 }
 0x134   : > { %7118 = vst [vmem:[#allocation2_spill] sm:$0xff] %v5498_v9 }
 0x136   : > { %3969 = vmatmul.mubr.f32.gmra.mrb[38].mxu1 %v502_v55  ;;  %v5381_v55 = vld [vmem:[%s4644_s11 + $0x20] sm:$0xff] }
 0x137   : > { %3971 = vmatprep.mubr.f32.mxu1 %v503_v52  ;;  %v4247_v52 = vpack.c.bf16 %v940_v56, %v936_v17 }
 0x13a   : > { %3972 = vmatmul.mubr.f32.gmra.mrb[40].mxu1 %v504_v18  ;;  %v939_v18 = vld [vmem:[%s7112_s3 + $0x3b0] sm:$0xff] }
 0x13b   : > { %3974 = vmatprep.mubr.f32.mxu1 %v505_v16  ;;  %v948_v16 = vld [vmem:[%s7112_s3 + $0x3f8] sm:$0xff]  ;;  %v4249_v62 = vpack.c.bf16 %v939_v18, %v935_v45  ;;  %v2297_v45 = vld [vmem:[%s7110_s1 + $0x288] sm:$0xff]  ;;  %v2298_v18 = vld [vmem:[%s7110_s1 + $0x290] sm:$0xff] }
 0x13c   : > { %v4251_v36 = vpack.c.bf16 %v948_v16, %v944_v61  ;;  %v2329_v61 = vld [vmem:[%s7110_s1 + $0x388] sm:$0xff]  ;;  %v2330_v16 = vld [vmem:[%s7110_s1 + $0x390] sm:$0xff] }
 0x13e   : > { %3975 = vmatmul.mubr.f32.gmra.mrb[42].mxu1 %v506_v59  ;;  %v947_v59 = vld [vmem:[%s7112_s3 + $0x3f0] sm:$0xff] }
 0x13f   : > { %3977 = vmatprep.mubr.f32.mxu1 %v507_v4  ;;  %v4253_v60 = vpack.c.bf16 %v947_v59, %v943_v28  ;;  %v5419_v4 = vld [vmem:[%s4644_s11 + $0x40] sm:$0xff] }
 0x142   : > { %3978 = vmatmul.mubr.f32.gmra.mrb[44].mxu1 %v508_v34  ;;  %v5469_v34 = vld [vmem:[%s4644_s11 + $0xa8] sm:$0xff] }
 0x143   : > { %3980 = vmatprep.mubr.f32.mxu1 %v509_v41  ;;  %v5474_v41 = vld [vmem:[%s4644_s11 + $0xb0] sm:$0xff] }
 0x146   : > { %3981 = vmatmul.mubr.f32.gmra.mrb[46].mxu1 %v510_v25  ;;  %v5479_v25 = vld [vmem:[%s4644_s11 + $0xb8] sm:$0xff] }
 0x147   : > { %1270 = vmatprep.mubr.f32.mxu1 %v7116_v44 }
 0x14a   : > { %1271 = vmatmul.mubr.f32.vlgmr.msra.gmra.mrb[48].mxu1 %v5315_v42 }
 0x14b   : > { %4226 = vmatpush1.bf16.msra.mxu1 %v4225_v30  ;;  %1276 = vmatprep.mubr.f32.mxu1 %v7116_v44  ;;  %v5501_v30 = vld [vmem:[%s4644_s11 + $0xd8] sm:$0xff] }
 0x14c   : > { %4228 = vmatprep.subr.bf16.mxu1 %v4227_v27  ;;  %v5504_v27 = vpop.f32.mrb[17].mxu0 }
 0x14d   : > { %7119 = vst [vmem:[#allocation3_spill] sm:$0xff] %v5504_v27  ;;  %v5507_v29 = vpop.f32.mrb[18].mxu0 }
 0x14e   : > { %1277 = vmatmul.mubr.f32.gmra.mrb[50].mxu1 %v4691_v31  ;;  %v924_v31 = vld [vmem:[%s7112_s3 + $0x338] sm:$0xff]  ;;  %7120 = vst [vmem:[#allocation4_spill] sm:$0xff] %v5507_v29  ;;  %v5513_v37 = vpop.f32.mrb[19].mxu0 }
 0x14f   : > { %1282 = vmatprep.mubr.f32.mxu1 %v7116_v44  ;;  %4230 = vmatpush1.bf16.msra.mxu1 %v4229_v15  ;;  %v4239_v63 = vpack.c.bf16 %v924_v31, %v920_v0  ;;  %7121 = vst [vmem:[#allocation5_spill] sm:$0xff] %v5513_v37  ;;  %v5518_v15 = vpop.f32.mrb[20].mxu0 }
 0x150   : > { %4232 = vmatprep.subr.bf16.mxu1 %v4231_v49  ;;  %7122 = vst [vmem:[#allocation6_spill] sm:$0xff] %v5518_v15  ;;  %v5521_v49 = vld [vmem:[%s4644_s11 + $0xe8] sm:$0xff]  ;;  %v5524_v50 = vpop.f32.mrb[21].mxu0 }
 0x151   : > { %7123 = vst [vmem:[#allocation7_spill] sm:$0xff] %v5524_v50  ;;  %v5527_v13 = vpop.f32.mrb[22].mxu0 }
 0x152   : > { %1283 = vmatmul.mubr.f32.gmra.mrb[52].mxu1 %v5347_v48  ;;  %7124 = vst [vmem:[#allocation8_spill] sm:$0xff] %v5527_v13  ;;  %v5533_v57 = vpop.f32.mrb[23].mxu0 }
 0x153   : > { %1288 = vmatprep.mubr.f32.mxu1 %v7116_v44  ;;  %4234 = vmatpush1.bf16.msra.mxu1 %v4233_v47  ;;  %7125 = vst [vmem:[#allocation9_spill] sm:$0xff] %v5533_v57  ;;  %v5536_v47 = vpop.f32.mrb[24].mxu0 }
 0x154   : > { %4236 = vmatprep.subr.bf16.mxu1 %v4235_v26  ;;  %7126 = vst [vmem:[#allocation10_spill] sm:$0xff] %v5536_v47  ;;  %v5539_v26 = vld [vmem:[%s4644_s11 + $0xf8] sm:$0xff]  ;;  %v5542_v58 = vpop.f32.mrb[25].mxu0 }
 0x155   : > { %7127 = vst [vmem:[#allocation11_spill] sm:$0xff] %v5542_v58  ;;  %v5545_v6 = vpop.f32.mrb[26].mxu0 }
 0x156   : > { %1289 = vmatmul.mubr.f32.gmra.mrb[54].mxu1 %v5364_v54  ;;  %7128 = vst [vmem:[#allocation12_spill] sm:$0xff] %v5545_v6  ;;  %v5547_v0 = vpop.f32.mrb[27].mxu0  ;;  %v2312_v6 = vld [vmem:[%s7110_s1 + $0x300] sm:$0xff] }
 0x157   : > { %1294 = vmatprep.mubr.f32.mxu1 %v7116_v44  ;;  %4238 = vmatpush1.bf16.msra.mxu1 %v4237_v40  ;;  %7129 = vst [vmem:[#allocation13_spill] sm:$0xff] %v5547_v0  ;;  %v5549_v31 = vpop.f32.mrb[28].mxu0 }
 0x158   : > { %4240 = vmatprep.subr.bf16.mxu1 %v4239_v63  ;;  %7130 = vst [vmem:[#allocation14_spill] sm:$0xff] %v5549_v31  ;;  %v5551_v40 = vpop.f32.mrb[29].mxu0  ;;  %v2306_v31 = vld [vmem:[%s7110_s1 + $0x2d0] sm:$0xff] }
 0x159   : > { %7131 = vst [vmem:[#allocation15_spill] sm:$0xff] %v5551_v40  ;;  %v5553_v63 = vpop.f32.mrb[30].mxu0  ;;  %v2308_v40 = vld [vmem:[%s7110_s1 + $0x2e0] sm:$0xff] }
 0x15a   : > { %1295 = vmatmul.mubr.f32.gmra.mrb[56].mxu1 %v5381_v55  ;;  %7132 = vst [vmem:[#allocation16_spill] sm:$0xff] %v5553_v63  ;;  %v5555_v1 = vpop.f32.mrb[31].mxu0 }
 0x15b   : > { %1300 = vmatprep.mubr.f32.mxu1 %v7116_v44  ;;  %4242 = vmatpush1.bf16.msra.mxu1 %v4241_v38  ;;  %7133 = vst [vmem:[#allocation17_spill] sm:$0xff] %v5555_v1  ;;  %v5557_v24 = vpop.f32.mrb[32].mxu0  ;;  %v2304_v1 = vld [vmem:[%s7110_s1 + $0x2c0] sm:$0xff] }
 0x15c   : > { %4244 = vmatprep.subr.bf16.mxu1 %v4243_v19  ;;  %7134 = vst [vmem:[#allocation18_spill] sm:$0xff] %v5557_v24  ;;  %v5559_v32 = vpop.f32.mrb[33].mxu0  ;;  %v5568_v19 = vld [vmem:[%s7111_s2 + $0x80] ss:$0 sm:$0xff] }
 0x15d   : > { %7135 = vst [vmem:[#allocation19_spill] sm:$0xff] %v5559_v32  ;;  %v5561_v14 = vpop.f32.mrb[34].mxu0  ;;  %v2302_v32 = vld [vmem:[%s7110_s1 + $0x2b0] sm:$0xff] }
 0x15e   : > { %1301 = vmatmul.mubr.f32.gmra.mrb[58].mxu1 %v5398_v53  ;;  %7136 = vst [vmem:[#allocation20_spill] sm:$0xff] %v5561_v14  ;;  %v5563_v38 = vpop.f32.mrb[35].mxu0 }
 0x15f   : > { %1306 = vmatprep.mubr.f32.mxu1 %v7116_v44  ;;  %4246 = vmatpush1.bf16.msra.mxu1 %v4245_v43  ;;  %7137 = vst [vmem:[#allocation21_spill] sm:$0xff] %v5563_v38  ;;  %v5570_v46 = vpop.f32.mrb[36].mxu0 }
 0x160   : > { %4248 = vmatprep.subr.bf16.mxu1 %v4247_v52  ;;  %7138 = vst [vmem:[#allocation22_spill] sm:$0xff] %v5570_v46  ;;  %v5572_v56 = vpop.f32.mrb[37].mxu0  ;;  %v4304_v46 = vpack.c.bf16 %v2330_v16, %v2329_v61  ;;  %v7145_v16 = vmov 0.0  }
 0x161   : > { %7139 = vst [vmem:[#allocation23_spill] sm:$0xff] %v5572_v56  ;;  %v5588_v28 = vpop.f32.mrb[38].mxu0  ;;  %v2299_v56 = vld [vmem:[%s7110_s1 + $0x298] sm:$0xff] }
 0x162   : > { %1307 = vmatmul.mubr.f32.gmra.mrb[60].mxu1 %v5409_v39  ;;  %7140 = vst [vmem:[#allocation24_spill] sm:$0xff] %v5588_v28 }
 0x163   : > { %1312 = vmatprep.mubr.f32.mxu1 %v7116_v44  ;;  %4250 = vmatpush1.bf16.msra.mxu1 %v4249_v62 }
 0x164   : > { %4252 = vmatprep.subr.bf16.mxu1 %v4251_v36 }
 0x166   : > { %1313 = vmatmul.mubr.f32.gmra.mrb[62].mxu1 %v5414_v21 }
 0x167   : > { %1318 = vmatprep.mubr.f32.mxu1 %v7116_v44  ;;  %4254 = vmatpush1.bf16.msra.mxu1 %v4253_v60  ;;  %v4256_v60 = vpack.c.bf16 %v2298_v18, %v2297_v45 }
 0x168   : > { %4303 = vmatprep.subr.bf16.mxu1 %v7114_v10 }
 0x16a   : > { %1319 = vmatmul.mubr.f32.gmra.mrb[64].mxu1 %v5419_v4 }
 0x16b   : > { %1324 = vmatprep.mubr.f32.mxu1 %v7116_v44 }
 0x16e   : > { %1325 = vmatmul.mubr.f32.gmra.mrb[66].mxu1 %v5424_v22 }
 0x16f   : > { %1330 = vmatprep.mubr.f32.mxu1 %v7116_v44 }
 0x172   : > { %1331 = vmatmul.mubr.f32.gmra.mrb[68].mxu1 %v5429_v11 }
 0x173   : > { %1336 = vmatprep.mubr.f32.mxu1 %v7116_v44 }
 0x176   : > { %1337 = vmatmul.mubr.f32.gmra.mrb[70].mxu1 %v4799_v2  ;;  %v5444_v2 = vld [vmem:[%s4644_s11 + $0x80] sm:$0xff] }
 0x177   : > { %1342 = vmatprep.mubr.f32.mxu1 %v7116_v44 }
 0x17a   : > { %1343 = vmatmul.mubr.f32.gmra.mrb[72].mxu1 %v4803_v3  ;;  %v5449_v3 = vld [vmem:[%s4644_s11 + $0x88] sm:$0xff] }
 0x17b   : > { %1348 = vmatprep.mubr.f32.mxu1 %v7116_v44 }
 0x17e   : > { %1349 = vmatmul.mubr.f32.gmra.mrb[74].mxu1 %v4815_v7  ;;  %v5454_v7 = vld [vmem:[%s4644_s11 + $0x90] sm:$0xff] }
 0x17f   : > { %1354 = vmatprep.mubr.f32.mxu1 %v7116_v44 }
 0x182   : > { %1355 = vmatmul.mubr.f32.gmra.mrb[76].mxu1 %v4819_v8  ;;  %v5459_v8 = vld [vmem:[%s4644_s11 + $0x98] sm:$0xff] }
 0x183   : > { %1360 = vmatprep.mubr.f32.mxu1 %v7116_v44 }
 0x186   : > { %1361 = vmatmul.mubr.f32.gmra.mrb[78].mxu1 %v4831_v12  ;;  %v5464_v12 = vld [vmem:[%s4644_s11 + $0xa0] sm:$0xff] }
 0x187   : > { %1366 = vmatprep.mubr.f32.mxu1 %v7116_v44 }
 0x18a   : > { %1367 = vmatmul.mubr.f32.gmra.mrb[80].mxu1 %v5444_v2 }
 0x18b   : > { %1372 = vmatprep.mubr.f32.mxu1 %v7116_v44 }
 0x18e   : > { %1373 = vmatmul.mubr.f32.gmra.mrb[82].mxu1 %v5449_v3 }
 0x18f   : > { %1378 = vmatprep.mubr.f32.mxu1 %v7116_v44 }
 0x192   : > { %1379 = vmatmul.mubr.f32.gmra.mrb[84].mxu1 %v5454_v7 }
 0x193   : > { %1384 = vmatprep.mubr.f32.mxu1 %v7116_v44 }
 0x196   : > { %1385 = vmatmul.mubr.f32.gmra.mrb[86].mxu1 %v5459_v8 }
 0x197   : > { %1390 = vmatprep.mubr.f32.mxu1 %v7116_v44 }
 0x19a   : > { %1391 = vmatmul.mubr.f32.gmra.mrb[88].mxu1 %v5464_v12 }
 0x19b   : > { %1396 = vmatprep.mubr.f32.mxu1 %v7116_v44 }
 0x19e   : > { %1397 = vmatmul.mubr.f32.gmra.mrb[90].mxu1 %v5469_v34 }
 0x19f   : > { %1402 = vmatprep.mubr.f32.mxu1 %v7116_v44 }
 0x1a2   : > { %1403 = vmatmul.mubr.f32.gmra.mrb[92].mxu1 %v5474_v41 }
 0x1a3   : > { %1408 = vmatprep.mubr.f32.mxu1 %v7116_v44 }
 0x1a6   : > { %1409 = vmatmul.mubr.f32.gmra.mrb[94].mxu1 %v5479_v25 }
 0x1a7   : > { %1414 = vmatprep.mubr.f32.mxu1 %v7116_v44 }
 0x1aa   : > { %1415 = vmatmul.mubr.f32.gmra.mrb[96].mxu1 %v5484_v5 }
 0x1ab   : > { %1420 = vmatprep.mubr.f32.mxu1 %v7116_v44 }
 0x1ae   : > { %1421 = vmatmul.mubr.f32.gmra.mrb[98].mxu1 %v5489_v20 }
 0x1af   : > { %1426 = vmatprep.mubr.f32.mxu1 %v7116_v44 }
 0x1b2   : > { %1427 = vmatmul.mubr.f32.gmra.mrb[100].mxu1 %v5494_v23 }
 0x1b3   : > { %1432 = vmatprep.mubr.f32.mxu1 %v7116_v44 }
 0x1b6   : > { %1433 = vmatmul.mubr.f32.gmra.mrb[102].mxu1 %v5501_v30 }
 0x1b7   : > { %1438 = vmatprep.mubr.f32.mxu1 %v7116_v44 }
 0x1ba   : > { %1439 = vmatmul.mubr.f32.gmra.mrb[104].mxu1 %v5510_v35 }
 0x1bb   : > { %1444 = vmatprep.mubr.f32.mxu1 %v7116_v44 }
 0x1be   : > { %1445 = vmatmul.mubr.f32.gmra.mrb[106].mxu1 %v5521_v49 }
 0x1bf   : > { %1450 = vmatprep.mubr.f32.mxu1 %v7116_v44 }
 0x1c2   : > { %1451 = vmatmul.mubr.f32.gmra.mrb[108].mxu1 %v5530_v51 }
 0x1c3   : > { %1456 = vmatprep.mubr.f32.mxu1 %v7116_v44 }
 0x1c6   : > { %1457 = vmatmul.mubr.f32.gmra.mrb[110].mxu1 %v5539_v26 }
 0x1c7   : > { %1912 = vmatprep.mubr.f32.mxu1 %v7116_v44 }
 0x1dd   : > { %v3937_v33 = vpop.f32.mrb[16].mxu1 }
 0x1de   : > { %v598_v17 = vpop.f32.mrb[17].mxu1  ;;  %v604_v43 = vadd.f32 %v3937_v33, %v5568_v19  ;;  %v5590_v33 = vpop.f32.mrb[39].mxu0 }
 0x1df   : > { %v599_v52 = vadd.f32 %v5568_v19, %v598_v17  ;;  %7141 = vst [vmem:[#allocation25_spill] sm:$0xff] %v5590_v33  ;;  %v5602_v28 = vpop.f32.mrb[40].mxu0  ;;  %v4531_v33 = vld [vmem:[%s4644_s11 + $0x8] sm:$0xff] }
 0x1e0   : > { %v758_v17 = vmax.f32 %v604_v43, 0.0  ;;  %7142 = vst [vmem:[#allocation26_spill] sm:$0xff] %v5602_v28  ;;  %v2331_v43 = vld [vmem:[%s7110_s1 + $0x398] sm:$0xff]  ;;  %v5610_v45 = vpop.f32.mrb[41].mxu0 }
 0x1e1   : > { %v757_v62 = vmax.f32 %v599_v52, 0.0  ;;  %v3940_v36 = vpop.f32.mrb[18].mxu1  ;;  %v2300_v52 = vld [vmem:[%s7110_s1 + $0x2a0] sm:$0xff]  ;;  %7143 = vst [vmem:[#allocation27_spill] sm:$0xff] %v5610_v45  ;;  %v5614_v61 = vpop.f32.mrb[42].mxu0 }
 0x1e2   : > { %v608_v59 = vpop.f32.mrb[19].mxu1  ;;  %7144 = vst [vmem:[#allocation28_spill] sm:$0xff] %v5614_v61  ;;  %v5618_v28 = vpop.f32.mrb[43].mxu0  ;;  %v5621_v14 = vmul.f32 %v4531_v33, %v758_v17  ;;  %v614_v45 = vadd.f32 %v3940_v36, %v5568_v19  ;;  %v2301_v61 = vld [vmem:[%s7110_s1 + $0x2a8] sm:$0xff] }
 0x1e3   : > { %v5593_v10 = vmul.f32 %v5315_v42, %v757_v62  ;;  %v609_v44 = vadd.f32 %v5568_v19, %v608_v59  ;;  %v2332_v42 = vld [vmem:[%s7110_s1 + $0x3a0] sm:$0xff]  ;;  %v4259_v59 = vpack.c.bf16 %v2300_v52, %v2299_v56  ;;  %7146 = vst [vmem:[#allocation29_spill] sm:$0xff] %v5618_v28  ;;  %v5630_v56 = vpop.f32.mrb[44].mxu0  ;;  %v7148_v52 = vmov 0.0|0.0  }
 0x1e4   : > { %v4307_v24 = vpack.c.bf16 %v2332_v42, %v2331_v43  ;;  %7147 = vst [vmem:[#allocation30_spill] sm:$0xff] %v5630_v56  ;;  %v5640_v36 = vpop.f32.mrb[45].mxu0  ;;  %v4262_v43 = vpack.c.bf16 %v2302_v32, %v2301_v61  ;;  %v760_v56 = vmax.f32 %v614_v45, 0.0 }
 0x1e5   : > { %1656 = vmatmul.mubr.f32.vlgmr.msra.gmra.mrb[80].mxu0 %v5593_v10  ;;  %1913 = vmatmul.mubr.f32.vlgmr.msra.gmra.mrb[112].mxu1 %v5593_v10  ;;  %v3943_v18 = vpop.f32.mrb[20].mxu1  ;;  %v759_v38 = vmax.f32 %v609_v44, 0.0  ;;  %v2333_v44 = vld [vmem:[%s7110_s1 + $0x3a8] sm:$0xff]  ;;  %7149 = vst [vmem:[#allocation31_spill] sm:$0xff] %v5640_v36  ;;  %v5646_v33 = vpop.f32.mrb[46].mxu0 }
 0x1e6   : > { %1661 = vmatprep.mubr.f32.mxu0 %v7145_v16  ;;  %1918 = vmatprep.mubr.f32.mxu1 %v7145_v16  ;;  %v618_v62 = vpop.f32.mrb[21].mxu1  ;;  %7150 = vst [vmem:[#allocation32_spill] sm:$0xff] %v5646_v33  ;;  %v5650_v42 = vpop.f32.mrb[47].mxu0  ;;  %v2303_v33 = vld [vmem:[%s7110_s1 + $0x2b8] sm:$0xff] }
 0x1e7   : > { %4257 = vmatpush1.bf16.msra.mxu0 %v4256_v60  ;;  %4305 = vmatpush1.bf16.msra.mxu1 %v4304_v46  ;;  %v2334_v46 = vld [vmem:[%s7110_s1 + $0x3b0] sm:$0xff]  ;;  %7151 = vst [vmem:[#allocation33_spill] sm:$0xff] %v5650_v42  ;;  %v5653_v28 = vmul.f32 %v5347_v48, %v759_v38  ;;  %v619_v36 = vadd.f32 %v5568_v19, %v618_v62  ;;  %v5662_v32 = vpop.f32.mrb[48].mxu0  ;;  %v2335_v48 = vld [vmem:[%s7110_s1 + $0x3b8] sm:$0xff] }
 0x1e8   : > { %4258 = vmatprep.subr.bf16.mxu0 %v7148_v52  ;;  %4306 = vmatprep.subr.bf16.mxu1 %v7148_v52  ;;  %v4310_v63 = vpack.c.bf16 %v2334_v46, %v2333_v44  ;;  %7152 = vst [vmem:[#allocation34_spill] sm:$0xff] %v5662_v32  ;;  %v5672_v38 = vpop.f32.mrb[49].mxu0  ;;  %v5687_v46 = vmul.f32 %v5364_v54, %v760_v56  ;;  %v2337_v54 = vld [vmem:[%s7110_s1 + $0x3c8] sm:$0xff] }
 0x1e9   : > { %1662 = vmatmul.mubr.f32.gmra.mrb[82].mxu0 %v5621_v14  ;;  %1919 = vmatmul.mubr.f32.gmra.mrb[114].mxu1 %v5621_v14  ;;  %v5644_v60 = vpop.f32.mrb[22].mxu1  ;;  %7153 = vst [vmem:[#allocation35_spill] sm:$0xff] %v5672_v38  ;;  %v5678_v61 = vpop.f32.mrb[50].mxu0  ;;  %v624_v32 = vadd.f32 %v3943_v18, %v5568_v19  ;;  %v761_v38 = vmax.f32 %v619_v36, 0.0 }
 0x1ea   : > { %1667 = vmatprep.mubr.f32.mxu0 %v7145_v16  ;;  %1924 = vmatprep.mubr.f32.mxu1 %v7145_v16  ;;  %v628_v17 = vpop.f32.mrb[23].mxu1  ;;  %7154 = vst [vmem:[#allocation36_spill] sm:$0xff] %v5678_v61  ;;  %v5684_v44 = vpop.f32.mrb[51].mxu0  ;;  %v2305_v61 = vld [vmem:[%s7110_s1 + $0x2c8] sm:$0xff] }
 0x1eb   : > { %4260 = vmatpush1.bf16.msra.mxu0 %v4259_v59  ;;  %4308 = vmatpush1.bf16.msra.mxu1 %v4307_v24  ;;  %v2336_v24 = vld [vmem:[%s7110_s1 + $0x3c0] sm:$0xff]  ;;  %v4265_v59 = vpack.c.bf16 %v2304_v1, %v2303_v33  ;;  %7155 = vst [vmem:[#allocation37_spill] sm:$0xff] %v5684_v44  ;;  %v5696_v1 = vpop.f32.mrb[52].mxu0 }
 0x1ec   : > { %4261 = vmatprep.subr.bf16.mxu0 %v7148_v52  ;;  %4309 = vmatprep.subr.bf16.mxu1 %v7148_v52  ;;  %v4313_v42 = vpack.c.bf16 %v2336_v24, %v2335_v48  ;;  %7156 = vst [vmem:[#allocation38_spill] sm:$0xff] %v5696_v1  ;;  %v5706_v18 = vpop.f32.mrb[53].mxu0  ;;  %v762_v24 = vmax.f32 %v624_v32, 0.0  ;;  %v5721_v1 = vmul.f32 %v5381_v55, %v761_v38  ;;  %v2339_v55 = vld [vmem:[%s7110_s1 + $0x3d8] sm:$0xff] }
 0x1ed   : > { %1668 = vmatmul.mubr.f32.gmra.mrb[84].mxu0 %v5653_v28  ;;  %1925 = vmatmul.mubr.f32.gmra.mrb[116].mxu1 %v5653_v28  ;;  %v5676_v45 = vpop.f32.mrb[24].mxu1  ;;  %7157 = vst [vmem:[#allocation39_spill] sm:$0xff] %v5706_v18  ;;  %v5712_v36 = vpop.f32.mrb[54].mxu0  ;;  %v629_v18 = vadd.f32 %v5568_v19, %v628_v17  ;;  %v2340_v17 = vld [vmem:[%s7110_s1 + $0x3e0] sm:$0xff] }
 0x1ee   : > { %1673 = vmatprep.mubr.f32.mxu0 %v7145_v16  ;;  %1930 = vmatprep.mubr.f32.mxu1 %v7145_v16  ;;  %v5682_v62 = vpop.f32.mrb[25].mxu1  ;;  %7158 = vst [vmem:[#allocation40_spill] sm:$0xff] %v5712_v36  ;;  %v5718_v48 = vpop.f32.mrb[55].mxu0  ;;  %v2307_v36 = vld [vmem:[%s7110_s1 + $0x2d8] sm:$0xff] }
 0x1ef   : > { %4263 = vmatpush1.bf16.msra.mxu0 %v4262_v43  ;;  %4311 = vmatpush1.bf16.msra.mxu1 %v4310_v63  ;;  %v2338_v63 = vld [vmem:[%s7110_s1 + $0x3d0] sm:$0xff]  ;;  %v4268_v43 = vpack.c.bf16 %v2306_v31, %v2305_v61  ;;  %7159 = vst [vmem:[#allocation41_spill] sm:$0xff] %v5718_v48  ;;  %v5730_v31 = vpop.f32.mrb[56].mxu0  ;;  %v4319_v48 = vpack.c.bf16 %v2340_v17, %v2339_v55  ;;  %v2311_v55 = vld [vmem:[%s7110_s1 + $0x2f8] sm:$0xff] }
 0x1f0   : > { %4264 = vmatprep.subr.bf16.mxu0 %v7148_v52  ;;  %4312 = vmatprep.subr.bf16.mxu1 %v7148_v52  ;;  %v4316_v44 = vpack.c.bf16 %v2338_v63, %v2337_v54  ;;  %7160 = vst [vmem:[#allocation42_spill] sm:$0xff] %v5730_v31  ;;  %v5755_v63 = vmul.f32 %v5398_v53, %v762_v24  ;;  %v2341_v53 = vld [vmem:[%s7110_s1 + $0x3e8] sm:$0xff] }
 0x1f1   : > { %1674 = vmatmul.mubr.f32.gmra.mrb[86].mxu0 %v5687_v46  ;;  %1931 = vmatmul.mubr.f32.gmra.mrb[118].mxu1 %v5687_v46  ;;  %v5710_v56 = vpop.f32.mrb[26].mxu1  ;;  %v634_v31 = vadd.f32 %v5644_v60, %v5568_v19  ;;  %v2342_v60 = vld [vmem:[%s7110_s1 + $0x3f0] sm:$0xff] }
 0x1f2   : > { %1679 = vmatprep.mubr.f32.mxu0 %v7145_v16  ;;  %1936 = vmatprep.mubr.f32.mxu1 %v7145_v16  ;;  %v5716_v33 = vpop.f32.mrb[27].mxu1 }
 0x1f3   : > { %4266 = vmatpush1.bf16.msra.mxu0 %v4265_v59  ;;  %4314 = vmatpush1.bf16.msra.mxu1 %v4313_v42  ;;  %v5740_v42 = vpop.f32.mrb[57].mxu0  ;;  %v4271_v59 = vpack.c.bf16 %v2308_v40, %v2307_v36  ;;  %v2310_v40 = vld [vmem:[%s7110_s1 + $0x2f0] sm:$0xff]  ;;  %v764_v17 = vmax.f32 %v634_v31, 0.0  ;;  %v2344_v31 = vld [vmem:[%s7110_s1 + $0x400] sm:$0xff] }
 0x1f4   : > { %4267 = vmatprep.subr.bf16.mxu0 %v7148_v52  ;;  %4315 = vmatprep.subr.bf16.mxu1 %v7148_v52  ;;  %7161 = vst [vmem:[#allocation43_spill] sm:$0xff] %v5740_v42  ;;  %v5746_v38 = vpop.f32.mrb[58].mxu0  ;;  %v763_v42 = vmax.f32 %v629_v18, 0.0 }
 0x1f5   : > { %1680 = vmatmul.mubr.f32.gmra.mrb[88].mxu0 %v5721_v1  ;;  %1937 = vmatmul.mubr.f32.gmra.mrb[120].mxu1 %v5721_v1  ;;  %v5744_v32 = vpop.f32.mrb[28].mxu1  ;;  %7162 = vst [vmem:[#allocation44_spill] sm:$0xff] %v5746_v38  ;;  %v5752_v54 = vpop.f32.mrb[59].mxu0  ;;  %v2309_v38 = vld [vmem:[%s7110_s1 + $0x2e8] sm:$0xff] }
 0x1f6   : > { %1685 = vmatprep.mubr.f32.mxu0 %v7145_v16  ;;  %1942 = vmatprep.mubr.f32.mxu1 %v7145_v16  ;;  %v5750_v61 = vpop.f32.mrb[29].mxu1  ;;  %7163 = vst [vmem:[#allocation45_spill] sm:$0xff] %v5752_v54  ;;  %v4274_v24 = vpack.c.bf16 %v2310_v40, %v2309_v38  ;;  %v639_v54 = vadd.f32 %v5568_v19, %v5682_v62  ;;  %v2343_v38 = vld [vmem:[%s7110_s1 + $0x3f8] sm:$0xff] }
 0x1f7   : > { %4269 = vmatpush1.bf16.msra.mxu0 %v4268_v43  ;;  %4317 = vmatpush1.bf16.msra.mxu1 %v4316_v44  ;;  %v5773_v44 = vpop.f32.mrb[60].mxu0  ;;  %v4277_v40 = vpack.c.bf16 %v2312_v6, %v2311_v55  ;;  %v2314_v6 = vld [vmem:[%s7110_s1 + $0x310] sm:$0xff]  ;;  %v2345_v55 = vld [vmem:[%s7110_s1 + $0x408] sm:$0xff] }
 0x1f8   : > { %4270 = vmatprep.subr.bf16.mxu0 %v7148_v52  ;;  %4318 = vmatprep.subr.bf16.mxu1 %v7148_v52  ;;  %7164 = vst [vmem:[#allocation46_spill] sm:$0xff] %v5773_v44  ;;  %v5779_v36 = vpop.f32.mrb[61].mxu0  ;;  %v5789_v44 = vmul.f32 %v5409_v39, %v763_v42  ;;  %v765_v0 = vmax.f32 %v639_v54, 0.0 }
 0x1f9   : > { %1686 = vmatmul.mubr.f32.gmra.mrb[90].mxu0 %v5755_v63  ;;  %1943 = vmatmul.mubr.f32.gmra.mrb[122].mxu1 %v5755_v63  ;;  %v5777_v18 = vpop.f32.mrb[30].mxu1  ;;  %7165 = vst [vmem:[#allocation47_spill] sm:$0xff] %v5779_v36  ;;  %v4322_v36 = vpack.c.bf16 %v2342_v60, %v2341_v53  ;;  %v5804_v39 = vpop.f32.mrb[62].mxu0  ;;  %v4325_v53 = vpack.c.bf16 %v2344_v31, %v2343_v38  ;;  %v2313_v60 = vld [vmem:[%s7110_s1 + $0x308] sm:$0xff] }
 0x1fa   : > { %1691 = vmatprep.mubr.f32.mxu0 %v7145_v16  ;;  %1948 = vmatprep.mubr.f32.mxu1 %v7145_v16  ;;  %v5783_v43 = vpop.f32.mrb[31].mxu1  ;;  %7166 = vst [vmem:[#allocation48_spill] sm:$0xff] %v5804_v39  ;;  %v5819_v39 = vmul.f32 %v5414_v21, %v764_v17  ;;  %v2346_v21 = vld [vmem:[%s7110_s1 + $0x410] sm:$0xff]  ;;  %v4280_v38 = vpack.c.bf16 %v2314_v6, %v2313_v60  ;;  %v2316_v60 = vld [vmem:[%s7110_s1 + $0x320] sm:$0xff] }
 0x1fb   : > { %4272 = vmatpush1.bf16.msra.mxu0 %v4271_v59  ;;  %4320 = vmatpush1.bf16.msra.mxu1 %v4319_v48  ;;  %v5808_v48 = vpop.f32.mrb[63].mxu0  ;;  %v4328_v31 = vpack.c.bf16 %v2346_v21, %v2345_v55 }
 0x1fc   : > { %4273 = vmatprep.subr.bf16.mxu0 %v7148_v52  ;;  %4321 = vmatprep.subr.bf16.mxu1 %v7148_v52  ;;  %7167 = vst [vmem:[#allocation49_spill] sm:$0xff] %v5808_v48  ;;  %v644_v48 = vadd.f32 %v5676_v45, %v5568_v19  ;;  %v5837_v45 = vpop.f32.mrb[64].mxu0 }
 0x1fd   : > { %1692 = vmatmul.mubr.f32.gmra.mrb[92].mxu0 %v5789_v44  ;;  %1949 = vmatmul.mubr.f32.gmra.mrb[124].mxu1 %v5789_v44  ;;  %v3961_v62 = vpop.f32.mrb[32].mxu1  ;;  %7168 = vst [vmem:[#allocation50_spill] sm:$0xff] %v5837_v45  ;;  %v649_v45 = vadd.f32 %v5568_v19, %v5716_v33 }
 0x1fe   : > { %1697 = vmatprep.mubr.f32.mxu0 %v7145_v16  ;;  %1954 = vmatprep.mubr.f32.mxu1 %v7145_v16  ;;  %v5813_v42 = vadd.f32 %v3961_v62, %v5568_v19  ;;  %v678_v59 = vpop.f32.mrb[33].mxu1  ;;  %v766_v62 = vmax.f32 %v644_v48, 0.0 }
 0x1ff   : > { %v5824_v47 = vadd.f32 %v5568_v19, %v678_v59  ;;  %4275 = vmatpush1.bf16.msra.mxu0 %v4274_v24  ;;  %4323 = vmatpush1.bf16.msra.mxu1 %v4322_v36  ;;  %v5841_v36 = vpop.f32.mrb[65].mxu0  ;;  %v5849_v59 = vmul.f32 %v5419_v4, %v765_v0  ;;  %v2347_v4 = vld [vmem:[%s7110_s1 + $0x418] sm:$0xff]  ;;  %v2348_v0 = vld [vmem:[%s7110_s1 + $0x420] sm:$0xff] }
 0x200   : > { %4276 = vmatprep.subr.bf16.mxu0 %v7148_v52  ;;  %4324 = vmatprep.subr.bf16.mxu1 %v7148_v52  ;;  %7169 = vst [vmem:[#allocation51_spill] sm:$0xff] %v5841_v36  ;;  %v5870_v33 = vpop.f32.mrb[66].mxu0 }
 0x201   : > { %1698 = vmatmul.mubr.f32.gmra.mrb[94].mxu0 %v5819_v39  ;;  %1955 = vmatmul.mubr.f32.gmra.mrb[126].mxu1 %v5819_v39  ;;  %v3964_v54 = vpop.f32.mrb[34].mxu1  ;;  %7170 = vst [vmem:[#allocation52_spill] sm:$0xff] %v5870_v33  ;;  %v767_v33 = vmax.f32 %v649_v45, 0.0  ;;  %v2350_v45 = vld [vmem:[%s7110_s1 + $0x430] sm:$0xff] }
 0x202   : > { %1703 = vmatprep.mubr.f32.mxu0 %v7145_v16  ;;  %1960 = vmatprep.mubr.f32.mxu1 %v7145_v16  ;;  %v5846_v24 = vadd.f32 %v3964_v54, %v5568_v19  ;;  %v688_v17 = vpop.f32.mrb[35].mxu1  ;;  %v2315_v54 = vld [vmem:[%s7110_s1 + $0x318] sm:$0xff] }
 0x203   : > { %v5854_v58 = vadd.f32 %v5568_v19, %v688_v17  ;;  %4278 = vmatpush1.bf16.msra.mxu0 %v4277_v40  ;;  %4326 = vmatpush1.bf16.msra.mxu1 %v4325_v53  ;;  %v5874_v40 = vpop.f32.mrb[67].mxu0  ;;  %v654_v53 = vadd.f32 %v5710_v56, %v5568_v19  ;;  %v4283_v21 = vpack.c.bf16 %v2316_v60, %v2315_v54  ;;  %v2317_v56 = vld [vmem:[%s7110_s1 + $0x328] sm:$0xff] }
 0x204   : > { %4279 = vmatprep.subr.bf16.mxu0 %v7148_v52  ;;  %4327 = vmatprep.subr.bf16.mxu1 %v7148_v52  ;;  %7171 = vst [vmem:[#allocation53_spill] sm:$0xff] %v5874_v40  ;;  %v5884_v17 = vmul.f32 %v5424_v22, %v766_v62  ;;  %v4331_v40 = vpack.c.bf16 %v2348_v0, %v2347_v4  ;;  %v2349_v22 = vld [vmem:[%s7110_s1 + $0x428] sm:$0xff] }
 0x205   : > { %1704 = vmatmul.mubr.f32.gmra.mrb[96].mxu0 %v5849_v59  ;;  %1961 = vmatmul.mubr.f32.gmra.mrb[128].mxu1 %v5849_v59  ;;  %v3967_v48 = vpop.f32.mrb[36].mxu1  ;;  %v768_v54 = vmax.f32 %v654_v53, 0.0  ;;  %v659_v60 = vadd.f32 %v5568_v19, %v5750_v61  ;;  %v4334_v53 = vpack.c.bf16 %v2350_v45, %v2349_v22  ;;  %v2319_v61 = vld [vmem:[%s7110_s1 + $0x338] sm:$0xff] }
 0x206   : > { %1709 = vmatprep.mubr.f32.mxu0 %v7145_v16  ;;  %1966 = vmatprep.mubr.f32.mxu1 %v7145_v16  ;;  %v5881_v6 = vadd.f32 %v3967_v48, %v5568_v19  ;;  %v698_v55 = vpop.f32.mrb[37].mxu1  ;;  %v2318_v48 = vld [vmem:[%s7110_s1 + $0x330] sm:$0xff]  ;;  %v4532_v22 = vld [vmem:[%s4644_s11 + $0x58] sm:$0xff] }
 0x207   : > { %v5887_v36 = vadd.f32 %v5568_v19, %v698_v55  ;;  %4281 = vmatpush1.bf16.msra.mxu0 %v4280_v38  ;;  %4329 = vmatpush1.bf16.msra.mxu1 %v4328_v31  ;;  %v5903_v38 = vpop.f32.mrb[68].mxu0  ;;  %v4286_v55 = vpack.c.bf16 %v2318_v48, %v2317_v56  ;;  %v5943_v45 = vmul.f32 %v4532_v22, %v768_v54 }
 0x208   : > { %4282 = vmatprep.subr.bf16.mxu0 %v7148_v52  ;;  %4330 = vmatprep.subr.bf16.mxu1 %v7148_v52  ;;  %7172 = vst [vmem:[#allocation54_spill] sm:$0xff] %v5903_v38  ;;  %v5907_v62 = vpop.f32.mrb[69].mxu0  ;;  %v5917_v38 = vmul.f32 %v5429_v11, %v767_v33  ;;  %v2320_v11 = vld [vmem:[%s7110_s1 + $0x340] sm:$0xff]  ;;  %v2351_v33 = vld [vmem:[%s7110_s1 + $0x438] sm:$0xff] }
 0x209   : > { %1710 = vmatmul.mubr.f32.gmra.mrb[98].mxu0 %v5884_v17  ;;  %1967 = vmatmul.mubr.f32.gmra.mrb[130].mxu1 %v5884_v17  ;;  %v3970_v31 = vpop.f32.mrb[38].mxu1  ;;  %7173 = vst [vmem:[#allocation55_spill] sm:$0xff] %v5907_v62  ;;  %v4289_v54 = vpack.c.bf16 %v2320_v11, %v2319_v61 }
 0x20a   : > { %1715 = vmatprep.mubr.f32.mxu0 %v7145_v16  ;;  %1972 = vmatprep.mubr.f32.mxu1 %v7145_v16  ;;  %v5914_v4 = vadd.f32 %v3970_v31, %v5568_v19  ;;  %v708_v0 = vpop.f32.mrb[39].mxu1  ;;  %v664_v31 = vadd.f32 %v5744_v32, %v5568_v19  ;;  %v2321_v32 = vld [vmem:[%s7110_s1 + $0x348] sm:$0xff] }
 0x20b   : > { %v5920_v13 = vadd.f32 %v5568_v19, %v708_v0  ;;  %4284 = vmatpush1.bf16.msra.mxu0 %v4283_v21  ;;  %4332 = vmatpush1.bf16.msra.mxu1 %v4331_v40  ;;  %v2352_v40 = vld [vmem:[%s7110_s1 + $0x440] sm:$0xff]  ;;  %v5936_v21 = vpop.f32.mrb[70].mxu0  ;;  %v769_v0 = vmax.f32 %v659_v60, 0.0  ;;  %v2322_v60 = vld [vmem:[%s7110_s1 + $0x350] sm:$0xff] }
 0x20c   : > { %4285 = vmatprep.subr.bf16.mxu0 %v7148_v52  ;;  %4333 = vmatprep.subr.bf16.mxu1 %v7148_v52  ;;  %7174 = vst [vmem:[#allocation56_spill] sm:$0xff] %v5936_v21  ;;  %v5940_v48 = vpop.f32.mrb[71].mxu0  ;;  %v4337_v22 = vpack.c.bf16 %v2352_v40, %v2351_v33  ;;  %v770_v33 = vmax.f32 %v664_v31, 0.0  ;;  %v4533_v40 = vld [vmem:[%s4644_s11 + $0x60] sm:$0xff]  ;;  %v4292_v31 = vpack.c.bf16 %v2322_v60, %v2321_v32 }
 0x20d   : > { %1716 = vmatmul.mubr.f32.gmra.mrb[100].mxu0 %v5917_v38  ;;  %1973 = vmatmul.mubr.f32.gmra.mrb[132].mxu1 %v5917_v38  ;;  %v3973_v56 = vpop.f32.mrb[40].mxu1  ;;  %7175 = vst [vmem:[#allocation57_spill] sm:$0xff] %v5940_v48  ;;  %v669_v48 = vadd.f32 %v5568_v19, %v5783_v43  ;;  %v2323_v43 = vld [vmem:[%s7110_s1 + $0x358] sm:$0xff] }
 0x20e   : > { %1721 = vmatprep.mubr.f32.mxu0 %v7145_v16  ;;  %1978 = vmatprep.mubr.f32.mxu1 %v7145_v16  ;;  %v5950_v21 = vadd.f32 %v3973_v56, %v5568_v19  ;;  %v718_v62 = vpop.f32.mrb[41].mxu1  ;;  %v5976_v56 = vmul.f32 %v4533_v40, %v769_v0  ;;  %v674_v40 = vadd.f32 %v5777_v18, %v5568_v19  ;;  %v2325_v18 = vld [vmem:[%s7110_s1 + $0x368] sm:$0xff] }
 0x20f   : > { %v5953_v57 = vadd.f32 %v5568_v19, %v718_v62  ;;  %4287 = vmatpush1.bf16.msra.mxu0 %v4286_v55  ;;  %4335 = vmatpush1.bf16.msra.mxu1 %v4334_v53  ;;  %v2353_v62 = vld [vmem:[%s7110_s1 + $0x448] sm:$0xff]  ;;  %v2354_v55 = vld [vmem:[%s7110_s1 + $0x450] sm:$0xff]  ;;  %v5969_v53 = vpop.f32.mrb[72].mxu0 }
 0x210   : > { %4288 = vmatprep.subr.bf16.mxu0 %v7148_v52  ;;  %4336 = vmatprep.subr.bf16.mxu1 %v7148_v52  ;;  %7176 = vst [vmem:[#allocation58_spill] sm:$0xff] %v5969_v53  ;;  %v5973_v11 = vpop.f32.mrb[73].mxu0  ;;  %v4340_v0 = vpack.c.bf16 %v2354_v55, %v2353_v62  ;;  %v4534_v62 = vld [vmem:[%s4644_s11 + $0x68] sm:$0xff] }
 0x211   : > { %1722 = vmatmul.mubr.f32.gmra.mrb[102].mxu0 %v5943_v45  ;;  %1979 = vmatmul.mubr.f32.gmra.mrb[134].mxu1 %v5943_v45  ;;  %v3976_v61 = vpop.f32.mrb[42].mxu1  ;;  %7177 = vst [vmem:[#allocation59_spill] sm:$0xff] %v5973_v11  ;;  %v6009_v55 = vmul.f32 %v4534_v62, %v770_v33  ;;  %v771_v11 = vmax.f32 %v669_v48, 0.0  ;;  %v2326_v48 = vld [vmem:[%s7110_s1 + $0x370] sm:$0xff] }
 0x212   : > { %1727 = vmatprep.mubr.f32.mxu0 %v7145_v16  ;;  %1984 = vmatprep.mubr.f32.mxu1 %v7145_v16  ;;  %v5983_v53 = vadd.f32 %v3976_v61, %v5568_v19  ;;  %v728_v15 = vpop.f32.mrb[43].mxu1  ;;  %v2324_v61 = vld [vmem:[%s7110_s1 + $0x360] sm:$0xff]  ;;  %v4298_v27 = vpack.c.bf16 %v2326_v48, %v2325_v18 }
 0x213   : > { %v5986_v50 = vadd.f32 %v5568_v19, %v728_v15  ;;  %4290 = vmatpush1.bf16.msra.mxu0 %v4289_v54  ;;  %4338 = vmatpush1.bf16.msra.mxu1 %v4337_v22  ;;  %v2355_v15 = vld [vmem:[%s7110_s1 + $0x458] sm:$0xff]  ;;  %v2356_v54 = vld [vmem:[%s7110_s1 + $0x460] sm:$0xff]  ;;  %v6002_v22 = vpop.f32.mrb[74].mxu0  ;;  %v4295_v33 = vpack.c.bf16 %v2324_v61, %v2323_v43  ;;  %v4535_v61 = vld [vmem:[%s4644_s11 + $0x70] sm:$0xff] }
 0x214   : > { %4291 = vmatprep.subr.bf16.mxu0 %v7148_v52  ;;  %4339 = vmatprep.subr.bf16.mxu1 %v7148_v52  ;;  %7178 = vst [vmem:[#allocation60_spill] sm:$0xff] %v6002_v22  ;;  %v6006_v60 = vpop.f32.mrb[75].mxu0  ;;  %v4343_v62 = vpack.c.bf16 %v2356_v54, %v2355_v15  ;;  %v6042_v15 = vmul.f32 %v4535_v61, %v771_v11  ;;  %v2327_v11 = vld [vmem:[%s7110_s1 + $0x378] sm:$0xff] }
 0x215   : > { %1728 = vmatmul.mubr.f32.gmra.mrb[104].mxu0 %v5976_v56  ;;  %1985 = vmatmul.mubr.f32.gmra.mrb[136].mxu1 %v5976_v56  ;;  %v3979_v32 = vpop.f32.mrb[44].mxu1  ;;  %7179 = vst [vmem:[#allocation61_spill] sm:$0xff] %v6006_v60  ;;  %v772_v60 = vmax.f32 %v674_v40, 0.0  ;;  %v2359_v40 = vld [vmem:[%s7110_s1 + $0x478] sm:$0xff] }
 0x216   : > { %1733 = vmatprep.mubr.f32.mxu0 %v7145_v16  ;;  %1990 = vmatprep.mubr.f32.mxu1 %v7145_v16  ;;  %v6016_v22 = vadd.f32 %v3979_v32, %v5568_v19  ;;  %v738_v29 = vpop.f32.mrb[45].mxu1  ;;  %v6029_v32 = vpop.f32.mrb[76].mxu0 }
 0x217   : > { %v6019_v37 = vadd.f32 %v5568_v19, %v738_v29  ;;  %4293 = vmatpush1.bf16.msra.mxu0 %v4292_v31  ;;  %4341 = vmatpush1.bf16.msra.mxu1 %v4340_v0  ;;  %7180 = vst [vmem:[#allocation62_spill] sm:$0xff] %v6029_v32  ;;  %v2357_v29 = vld [vmem:[%s7110_s1 + $0x468] sm:$0xff]  ;;  %v2358_v31 = vld [vmem:[%s7110_s1 + $0x470] sm:$0xff]  ;;  %v6039_v43 = vpop.f32.mrb[77].mxu0 }
 0x218   : > { %4294 = vmatprep.subr.bf16.mxu0 %v7148_v52  ;;  %4342 = vmatprep.subr.bf16.mxu1 %v7148_v52  ;;  %7181 = vst [vmem:[#allocation63_spill] sm:$0xff] %v6039_v43  ;;  %v4346_v43 = vpack.c.bf16 %v2358_v31, %v2357_v29  ;;  %v773_v31 = vmax.f32 %v5824_v47, 0.0 }
 0x219   : > { %1734 = vmatmul.mubr.f32.gmra.mrb[106].mxu0 %v6009_v55  ;;  %1991 = vmatmul.mubr.f32.gmra.mrb[138].mxu1 %v6009_v55  ;;  %v3982_v0 = vpop.f32.mrb[46].mxu1 }
 0x21a   : > { %1739 = vmatprep.mubr.f32.mxu0 %v7145_v16  ;;  %1996 = vmatprep.mubr.f32.mxu1 %v7145_v16  ;;  %v6047_v54 = vadd.f32 %v3982_v0, %v5568_v19  ;;  %v748_v32 = vpop.f32.mrb[47].mxu1  ;;  %v6057_v0 = vpop.f32.mrb[78].mxu0  ;;  %v6094_v47 = vmul.f32 %v5444_v2, %v773_v31 }
 0x21b   : > { %v6050_v9 = vadd.f32 %v5568_v19, %v748_v32  ;;  %4296 = vmatpush1.bf16.msra.mxu0 %v4295_v33  ;;  %4344 = vmatpush1.bf16.msra.mxu1 %v4343_v62  ;;  %7182 = vst [vmem:[#allocation64_spill] sm:$0xff] %v6057_v0  ;;  %v2328_v19 = vld [vmem:[%s7110_s1 + $0x380] sm:$0xff]  ;;  %v6072_v18 = vpop.f32.mrb[79].mxu0  ;;  %v4536_v32 = vld [vmem:[%s4644_s11 + $0x78] sm:$0xff] }
 0x21c   : > { %4297 = vmatprep.subr.bf16.mxu0 %v7148_v52  ;;  %4345 = vmatprep.subr.bf16.mxu1 %v7148_v52  ;;  %v2360_v33 = vld [vmem:[%s7110_s1 + $0x480] sm:$0xff]  ;;  %7183 = vst [vmem:[#allocation65_spill] sm:$0xff] %v6072_v18  ;;  %v6079_v29 = vmul.f32 %v4536_v32, %v772_v60  ;;  %v4301_v61 = vpack.c.bf16 %v2328_v19, %v2327_v11  ;;  %v775_v11 = vmax.f32 %v5854_v58, 0.0 }
 0x21d   : > { %1740 = vmatmul.mubr.f32.gmra.mrb[108].mxu0 %v6042_v15  ;;  %1997 = vmatmul.mubr.f32.gmra.mrb[140].mxu1 %v6042_v15  ;;  %v6070_v62 = vpop.f32.mrb[48].mxu1  ;;  %v4349_v0 = vpack.c.bf16 %v2360_v33, %v2359_v40  ;;  %v776_v40 = vmax.f32 %v5846_v24, 0.0  ;;  %v777_v24 = vmax.f32 %v5887_v36, 0.0 }
 0x21e   : > { %1745 = vmatprep.mubr.f32.mxu0 %v7145_v16  ;;  %2002 = vmatprep.mubr.f32.mxu1 %v7145_v16  ;;  %v6076_v48 = vpop.f32.mrb[49].mxu1  ;;  %v6120_v33 = vmul.f32 %v5454_v7, %v775_v11 }
 0x21f   : > { %4299 = vmatpush1.bf16.msra.mxu0 %v4298_v27  ;;  %4347 = vmatpush1.bf16.msra.mxu1 %v4346_v43  ;;  %v774_v27 = vmax.f32 %v5813_v42, 0.0  ;;  %v6131_v32 = vmul.f32 %v5459_v8, %v776_v40 }
 0x220   : > { %4300 = vmatprep.subr.bf16.mxu0 %v7148_v52  ;;  %4348 = vmatprep.subr.bf16.mxu1 %v7148_v52 }
 0x221   : > { %1746 = vmatmul.mubr.f32.gmra.mrb[110].mxu0 %v6079_v29  ;;  %2003 = vmatmul.mubr.f32.gmra.mrb[142].mxu1 %v6079_v29  ;;  %v6086_v18 = vpop.f32.mrb[50].mxu1  ;;  %v6107_v2 = vmul.f32 %v5449_v3, %v774_v27  ;;  %v6144_v27 = vmul.f32 %v5464_v12, %v777_v24  ;;  %v780_v24 = vmax.f32 %v5914_v4, 0.0  ;;  %v781_v4 = vmax.f32 %v5953_v57, 0.0 }
 0x222   : > { %1751 = vmatprep.mubr.f32.mxu0 %v7145_v16  ;;  %2008 = vmatprep.mubr.f32.mxu1 %v7145_v16  ;;  %v6090_v60 = vpop.f32.mrb[51].mxu1 }
 0x223   : > { %4302 = vmatpush1.bf16.msra.mxu0 %v4301_v61  ;;  %4350 = vmatpush1.bf16.msra.mxu1 %v4349_v0  ;;  %v778_v61 = vmax.f32 %v5881_v6, 0.0  ;;  %v779_v6 = vmax.f32 %v5920_v13, 0.0 }
 0x224   : > { %4351 = vmatprep.subr.bf16.mxu0 %v7148_v52  ;;  %4399 = vmatprep.subr.bf16.mxu1 %v7148_v52 }
 0x225   : > { %1752 = vmatmul.mubr.f32.gmra.mrb[112].mxu0 %v6094_v47  ;;  %2009 = vmatmul.mubr.f32.gmra.mrb[144].mxu1 %v6094_v47  ;;  %v6100_v43 = vpop.f32.mrb[52].mxu1  ;;  %v6155_v11 = vmul.f32 %v5469_v34, %v778_v61  ;;  %v6179_v61 = vmul.f32 %v5479_v25, %v780_v24 }
 0x226   : > { %1757 = vmatprep.mubr.f32.mxu0 %v7145_v16  ;;  %2014 = vmatprep.mubr.f32.mxu1 %v7145_v16  ;;  %v6104_v42 = vpop.f32.mrb[53].mxu1 }
 0x229   : > { %1758 = vmatmul.mubr.f32.gmra.mrb[114].mxu0 %v6107_v2  ;;  %2015 = vmatmul.mubr.f32.gmra.mrb[146].mxu1 %v6107_v2  ;;  %v6112_v0 = vpop.f32.mrb[54].mxu1 }
 0x22a   : > { %1763 = vmatprep.mubr.f32.mxu0 %v7145_v16  ;;  %2020 = vmatprep.mubr.f32.mxu1 %v7145_v16  ;;  %v6116_v19 = vpop.f32.mrb[55].mxu1 }
 0x22d   : > { %1764 = vmatmul.mubr.f32.gmra.mrb[116].mxu0 %v6120_v33  ;;  %2021 = vmatmul.mubr.f32.gmra.mrb[148].mxu1 %v6120_v33  ;;  %v6124_v3 = vpop.f32.mrb[56].mxu1 }
 0x22e   : > { %1769 = vmatprep.mubr.f32.mxu0 %v7145_v16  ;;  %2026 = vmatprep.mubr.f32.mxu1 %v7145_v16  ;;  %v6128_v58 = vpop.f32.mrb[57].mxu1 }
 0x231   : > { %1770 = vmatmul.mubr.f32.gmra.mrb[118].mxu0 %v6131_v32  ;;  %2027 = vmatmul.mubr.f32.gmra.mrb[150].mxu1 %v6131_v32  ;;  %v6136_v7 = vpop.f32.mrb[58].mxu1 }
 0x232   : > { %1775 = vmatprep.mubr.f32.mxu0 %v7145_v16  ;;  %2032 = vmatprep.mubr.f32.mxu1 %v7145_v16  ;;  %v6140_v31 = vpop.f32.mrb[59].mxu1 }
 0x235   : > { %1776 = vmatmul.mubr.f32.gmra.mrb[120].mxu0 %v6144_v27  ;;  %2033 = vmatmul.mubr.f32.gmra.mrb[152].mxu1 %v6144_v27  ;;  %v6148_v8 = vpop.f32.mrb[60].mxu1 }
 0x236   : > { %7184 = vst [vmem:[#allocation66_spill] sm:$0xff] %v6148_v8  ;;  %1781 = vmatprep.mubr.f32.mxu0 %v7145_v16  ;;  %2038 = vmatprep.mubr.f32.mxu1 %v7145_v16  ;;  %v6152_v36 = vpop.f32.mrb[61].mxu1  ;;  %v6168_v8 = vmul.f32 %v5474_v41, %v779_v6 }
 0x239   : > { %1782 = vmatmul.mubr.f32.gmra.mrb[122].mxu0 %v6155_v11  ;;  %2039 = vmatmul.mubr.f32.gmra.mrb[154].mxu1 %v6155_v11  ;;  %v6160_v12 = vpop.f32.mrb[62].mxu1 }
 0x23a   : > { %7185 = vst [vmem:[#allocation67_spill] sm:$0xff] %v6160_v12  ;;  %1787 = vmatprep.mubr.f32.mxu0 %v7145_v16  ;;  %2044 = vmatprep.mubr.f32.mxu1 %v7145_v16  ;;  %v6164_v40 = vpop.f32.mrb[63].mxu1 }
 0x23b   : > { %7186 = vst [vmem:[#allocation68_spill] sm:$0xff] %v6164_v40  ;;  %v2237_v40 = vld [vmem:[%s7110_s1 + $0xa8] sm:$0xff] }
 0x23d   : > { %1788 = vmatmul.mubr.f32.gmra.mrb[124].mxu0 %v6168_v8  ;;  %2045 = vmatmul.mubr.f32.gmra.mrb[156].mxu1 %v6168_v8  ;;  %v6172_v34 = vpop.f32.mrb[64].mxu1 }
 0x23e   : > { %7187 = vst [vmem:[#allocation69_spill] sm:$0xff] %v6172_v34  ;;  %1793 = vmatprep.mubr.f32.mxu0 %v7145_v16  ;;  %2050 = vmatprep.mubr.f32.mxu1 %v7145_v16  ;;  %v6176_v13 = vpop.f32.mrb[65].mxu1  ;;  %v782_v34 = vmax.f32 %v5950_v21, 0.0  ;;  %v783_v21 = vmax.f32 %v5986_v50, 0.0 }
 0x23f   : > { %7188 = vst [vmem:[#allocation70_spill] sm:$0xff] %v6176_v13  ;;  %v6192_v13 = vmul.f32 %v5484_v5, %v781_v4 }
 0x240   : > { %v6203_v24 = vmul.f32 %v5489_v20, %v782_v34 }
 0x241   : > { %1794 = vmatmul.mubr.f32.gmra.mrb[126].mxu0 %v6179_v61  ;;  %2051 = vmatmul.mubr.f32.gmra.mrb[158].mxu1 %v6179_v61  ;;  %v6184_v41 = vpop.f32.mrb[66].mxu1 }
 0x242   : > { %7189 = vst [vmem:[#allocation71_spill] sm:$0xff] %v6184_v41  ;;  %1799 = vmatprep.mubr.f32.mxu0 %v7145_v16  ;;  %2056 = vmatprep.mubr.f32.mxu1 %v7145_v16  ;;  %v6188_v6 = vpop.f32.mrb[67].mxu1 }
 0x243   : > { %7190 = vst [vmem:[#allocation72_spill] sm:$0xff] %v6188_v6 }
 0x245   : > { %1800 = vmatmul.mubr.f32.gmra.mrb[128].mxu0 %v6192_v13  ;;  %2057 = vmatmul.mubr.f32.gmra.mrb[160].mxu1 %v6192_v13  ;;  %v6196_v25 = vpop.f32.mrb[68].mxu1 }
 0x246   : > { %7191 = vst [vmem:[#allocation73_spill] sm:$0xff] %v6196_v25  ;;  %1805 = vmatprep.mubr.f32.mxu0 %v7145_v16  ;;  %2062 = vmatprep.mubr.f32.mxu1 %v7145_v16  ;;  %v6200_v57 = vpop.f32.mrb[69].mxu1  ;;  %v784_v25 = vmax.f32 %v5983_v53, 0.0  ;;  %v785_v53 = vmax.f32 %v6019_v37, 0.0 }
 0x247   : > { %7192 = vst [vmem:[#allocation74_spill] sm:$0xff] %v6200_v57  ;;  %v6216_v57 = vmul.f32 %v5494_v23, %v783_v21 }
 0x248   : > { %v6227_v34 = vmul.f32 %v5501_v30, %v784_v25 }
 0x249   : > { %1806 = vmatmul.mubr.f32.gmra.mrb[130].mxu0 %v6203_v24  ;;  %2063 = vmatmul.mubr.f32.gmra.mrb[162].mxu1 %v6203_v24  ;;  %v6208_v5 = vpop.f32.mrb[70].mxu1 }
 0x24a   : > { %7193 = vst [vmem:[#allocation75_spill] sm:$0xff] %v6208_v5  ;;  %1811 = vmatprep.mubr.f32.mxu0 %v7145_v16  ;;  %2068 = vmatprep.mubr.f32.mxu1 %v7145_v16  ;;  %v6212_v4 = vpop.f32.mrb[71].mxu1  ;;  %v2235_v5 = vld [vmem:[%s7110_s1 + $0x98] sm:$0xff] }
 0x24b   : > { %7194 = vst [vmem:[#allocation76_spill] sm:$0xff] %v6212_v4  ;;  %v2236_v4 = vld [vmem:[%s7110_s1 + $0xa0] sm:$0xff] }
 0x24c   : > { %v4355_v12 = vpack.c.bf16 %v2236_v4, %v2235_v5  ;;  %v2270_v5 = vld [vmem:[%s7110_s1 + $0x1b0] sm:$0xff] }
 0x24d   : > { %1812 = vmatmul.mubr.f32.gmra.mrb[132].mxu0 %v6216_v57  ;;  %2069 = vmatmul.mubr.f32.gmra.mrb[164].mxu1 %v6216_v57  ;;  %v6220_v20 = vpop.f32.mrb[72].mxu1 }
 0x24e   : > { %7195 = vst [vmem:[#allocation77_spill] sm:$0xff] %v6220_v20  ;;  %1817 = vmatprep.mubr.f32.mxu0 %v7145_v16  ;;  %2074 = vmatprep.mubr.f32.mxu1 %v7145_v16  ;;  %v6224_v50 = vpop.f32.mrb[73].mxu1  ;;  %v786_v20 = vmax.f32 %v6016_v22, 0.0  ;;  %v787_v22 = vmax.f32 %v6050_v9, 0.0 }
 0x24f   : > { %7196 = vst [vmem:[#allocation78_spill] sm:$0xff] %v6224_v50  ;;  %v6240_v50 = vmul.f32 %v5510_v35, %v785_v53 }
 0x250   : > { %v6251_v25 = vmul.f32 %v5521_v49, %v786_v20 }
 0x251   : > { %1818 = vmatmul.mubr.f32.gmra.mrb[134].mxu0 %v6227_v34  ;;  %2075 = vmatmul.mubr.f32.gmra.mrb[166].mxu1 %v6227_v34  ;;  %v6232_v23 = vpop.f32.mrb[74].mxu1 }
 0x252   : > { %7197 = vst [vmem:[#allocation79_spill] sm:$0xff] %v6232_v23  ;;  %1823 = vmatprep.mubr.f32.mxu0 %v7145_v16  ;;  %2080 = vmatprep.mubr.f32.mxu1 %v7145_v16  ;;  %v6236_v21 = vpop.f32.mrb[75].mxu1 }
 0x253   : > { %7198 = vst [vmem:[#allocation80_spill] sm:$0xff] %v6236_v21 }
 0x255   : > { %1824 = vmatmul.mubr.f32.gmra.mrb[136].mxu0 %v6240_v50  ;;  %2081 = vmatmul.mubr.f32.gmra.mrb[168].mxu1 %v6240_v50  ;;  %v6244_v30 = vpop.f32.mrb[76].mxu1 }
 0x256   : > { %7199 = vst [vmem:[#allocation81_spill] sm:$0xff] %v6244_v30  ;;  %1829 = vmatprep.mubr.f32.mxu0 %v7145_v16  ;;  %2086 = vmatprep.mubr.f32.mxu1 %v7145_v16  ;;  %v6248_v37 = vpop.f32.mrb[77].mxu1  ;;  %v788_v30 = vmax.f32 %v6047_v54, 0.0 }
 0x257   : > { %7200 = vst [vmem:[#allocation82_spill] sm:$0xff] %v6248_v37  ;;  %v6264_v37 = vmul.f32 %v5530_v51, %v787_v22 }
 0x258   : > { %v6275_v20 = vmul.f32 %v5539_v26, %v788_v30 }
 0x259   : > { %1830 = vmatmul.mubr.f32.gmra.mrb[138].mxu0 %v6251_v25  ;;  %2087 = vmatmul.mubr.f32.gmra.mrb[170].mxu1 %v6251_v25  ;;  %v6256_v35 = vpop.f32.mrb[78].mxu1 }
 0x25a   : > { %7201 = vst [vmem:[#allocation83_spill] sm:$0xff] %v6256_v35  ;;  %1835 = vmatprep.mubr.f32.mxu0 %v7145_v16  ;;  %2092 = vmatprep.mubr.f32.mxu1 %v7145_v16  ;;  %v6260_v53 = vpop.f32.mrb[79].mxu1 }
 0x25b   : > { %7202 = vst [vmem:[#allocation84_spill] sm:$0xff] %v6260_v53 }
 0x25d   : > { %1836 = vmatmul.mubr.f32.gmra.mrb[140].mxu0 %v6264_v37  ;;  %2093 = vmatmul.mubr.f32.gmra.mrb[172].mxu1 %v6264_v37  ;;  %v6268_v9 = vpop.f32.mrb[80].mxu1 }
 0x25e   : > { %7203 = vst [vmem:[#allocation85_spill] sm:$0xff] %v6268_v9  ;;  %1841 = vmatprep.mubr.f32.mxu0 %v7145_v16  ;;  %2098 = vmatprep.mubr.f32.mxu1 %v7145_v16  ;;  %v6272_v49 = vpop.f32.mrb[81].mxu1 }
 0x25f   : > { %7204 = vst [vmem:[#allocation86_spill] sm:$0xff] %v6272_v49 }
 0x261   : > { %1842 = vmatmul.mubr.f32.gmra.mrb[142].mxu0 %v6275_v20  ;;  %2099 = vmatmul.mubr.f32.gmra.mrb[174].mxu1 %v6275_v20  ;;  %v6279_v51 = vpop.f32.mrb[82].mxu1 }
 0x262   : > { %7205 = vst [vmem:[#allocation87_spill] sm:$0xff] %v6279_v51  ;;  %v6281_v54 = vpop.f32.mrb[83].mxu1 }
 0x263   : > { %7206 = vst [vmem:[#allocation88_spill] sm:$0xff] %v6281_v54 }
 0x265   : > { %v6283_v22 = vpop.f32.mrb[84].mxu1 }
 0x266   : > { %7207 = vst [vmem:[#allocation89_spill] sm:$0xff] %v6283_v22  ;;  %v6285_v9 = vpop.f32.mrb[85].mxu1 }
 0x267   : > { %7208 = vst [vmem:[#allocation90_spill] sm:$0xff] %v6285_v9 }
 0x269   : > { %v6287_v35 = vpop.f32.mrb[86].mxu1 }
 0x26a   : > { %7209 = vst [vmem:[#allocation91_spill] sm:$0xff] %v6287_v35  ;;  %v6289_v16 = vpop.f32.mrb[87].mxu1 }
 0x26b   : > { %7210 = vst [vmem:[#allocation92_spill] sm:$0xff] %v6289_v16 }
 0x26d   : > { %v6291_v49 = vpop.f32.mrb[88].mxu1 }
 0x26e   : > { %7211 = vst [vmem:[#allocation93_spill] sm:$0xff] %v6291_v49  ;;  %v6293_v26 = vpop.f32.mrb[89].mxu1 }
 0x26f   : > { %7212 = vst [vmem:[#allocation94_spill] sm:$0xff] %v6293_v26 }
 0x271   : > { %v6295_v30 = vpop.f32.mrb[90].mxu1 }
 0x272   : > { %7213 = vst [vmem:[#allocation95_spill] sm:$0xff] %v6295_v30  ;;  %v6297_v53 = vpop.f32.mrb[91].mxu1 }
 0x273   : > { %7214 = vst [vmem:[#allocation96_spill] sm:$0xff] %v6297_v53 }
 0x275   : > { %v6299_v23 = vpop.f32.mrb[92].mxu1 }
 0x276   : > { %7215 = vst [vmem:[#allocation97_spill] sm:$0xff] %v6299_v23  ;;  %v6301_v51 = vpop.f32.mrb[93].mxu1 }
 0x277   : > { %7216 = vst [vmem:[#allocation98_spill] sm:$0xff] %v6301_v51 }
 0x279   : > { %v6303_v54 = vpop.f32.mrb[94].mxu1 }
 0x27a   : > { %7217 = vst [vmem:[#allocation99_spill] sm:$0xff] %v6303_v54  ;;  %v6305_v22 = vpop.f32.mrb[95].mxu1 }
 0x27b   : > { %7218 = vst [vmem:[#allocation100_spill] sm:$0xff] %v6305_v22 }
 0x27d   : > { %v6307_v9 = vpop.f32.mrb[96].mxu1 }
 0x27e   : > { %7219 = vst [vmem:[#allocation101_spill] sm:$0xff] %v6307_v9  ;;  %v6309_v35 = vpop.f32.mrb[97].mxu1 }
 0x27f   : > { %7220 = vst [vmem:[#allocation102_spill] sm:$0xff] %v6309_v35 }
 0x281   : > { %v6311_v16 = vpop.f32.mrb[98].mxu1 }
 0x282   : > { %7221 = vst [vmem:[#allocation103_spill] sm:$0xff] %v6311_v16  ;;  %v6313_v49 = vpop.f32.mrb[99].mxu1 }
 0x283   : > { %7222 = vst [vmem:[#allocation104_spill] sm:$0xff] %v6313_v49 }
 0x285   : > { %v6315_v26 = vpop.f32.mrb[100].mxu1 }
 0x286   : > { %7223 = vst [vmem:[#allocation105_spill] sm:$0xff] %v6315_v26  ;;  %v6317_v30 = vpop.f32.mrb[101].mxu1 }
 0x287   : > { %7224 = vst [vmem:[#allocation106_spill] sm:$0xff] %v6317_v30 }
 0x289   : > { %v6319_v53 = vpop.f32.mrb[102].mxu1 }
 0x28a   : > { %7225 = vst [vmem:[#allocation107_spill] sm:$0xff] %v6319_v53  ;;  %v6321_v23 = vpop.f32.mrb[103].mxu1  ;;  %v2233_v53 = vld [vmem:[%s7110_s1 + $0x88] sm:$0xff] }
 0x28b   : > { %7226 = vst [vmem:[#allocation108_spill] sm:$0xff] %v6321_v23 }
 0x28d   : > { %v6323_v51 = vpop.f32.mrb[104].mxu1 }
 0x28e   : > { %7227 = vst [vmem:[#allocation109_spill] sm:$0xff] %v6323_v51  ;;  %v6325_v54 = vpop.f32.mrb[105].mxu1  ;;  %v2234_v51 = vld [vmem:[%s7110_s1 + $0x90] sm:$0xff] }
 0x28f   : > { %7228 = vst [vmem:[#allocation110_spill] sm:$0xff] %v6325_v54  ;;  %v4352_v30 = vpack.c.bf16 %v2234_v51, %v2233_v53 }
 0x291   : > { %v6327_v22 = vpop.f32.mrb[106].mxu1 }
 0x292   : > { %7229 = vst [vmem:[#allocation111_spill] sm:$0xff] %v6327_v22  ;;  %v6329_v9 = vpop.f32.mrb[107].mxu1  ;;  %v2265_v22 = vld [vmem:[%s7110_s1 + $0x188] sm:$0xff] }
 0x293   : > { %7230 = vst [vmem:[#allocation112_spill] sm:$0xff] %v6329_v9 }
 0x295   : > { %v6331_v35 = vpop.f32.mrb[108].mxu1 }
 0x296   : > { %7231 = vst [vmem:[#allocation113_spill] sm:$0xff] %v6331_v35  ;;  %v6333_v16 = vpop.f32.mrb[109].mxu1  ;;  %v2266_v35 = vld [vmem:[%s7110_s1 + $0x190] sm:$0xff] }
 0x297   : > { %7232 = vst [vmem:[#allocation114_spill] sm:$0xff] %v6333_v16  ;;  %v4400_v21 = vpack.c.bf16 %v2266_v35, %v2265_v22  ;;  %v2268_v35 = vld [vmem:[%s7110_s1 + $0x1a0] sm:$0xff] }
 0x299   : > { %v6335_v49 = vpop.f32.mrb[110].mxu1 }
 0x29a   : > { %7233 = vst [vmem:[#allocation115_spill] sm:$0xff] %v6335_v49  ;;  %v6337_v26 = vpop.f32.mrb[111].mxu1 }
 0x29b   : > { %7234 = vst [vmem:[#allocation116_spill] sm:$0xff] %v6337_v26 }
 0x2b8   : > { %v1657_v16 = vpop.f32.mrb[80].mxu0  ;;  %v1914_v49 = vpop.f32.mrb[112].mxu1 }
 0x2b9   : > { %v1659_v9 = vpop.f32.mrb[81].mxu0  ;;  %v1916_v26 = vpop.f32.mrb[113].mxu1  ;;  %v2105_v41 = vmul.f32 %v1657_v16, %v5593_v10  ;;  %v2107_v6 = vmul.f32 %v1914_v49, %v5593_v10 }
 0x2ba   : > { %v2106_v54 = vmul.f32 %v1659_v9, %v5593_v10  ;;  %v2108_v23 = vmul.f32 %v1916_v26, %v5593_v10  ;;  %v2267_v9 = vld [vmem:[%s7110_s1 + $0x198] sm:$0xff] }
 0x2bb   : > { %v4403_v49 = vpack.c.bf16 %v2268_v35, %v2267_v9 }
 0x2bc   : > { %v1663_v53 = vpop.f32.mrb[82].mxu0  ;;  %v1920_v51 = vpop.f32.mrb[114].mxu1  ;;  %2426 = vmatprep.mubr.f32.mxu0 %v2106_v54  ;;  %2651 = vmatprep.mubr.f32.mxu1 %v2108_v23  ;;  %v2238_v23 = vld [vmem:[%s7110_s1 + $0xb0] sm:$0xff] }
 0x2bd   : > { %v1665_v22 = vpop.f32.mrb[83].mxu0  ;;  %v1922_v26 = vpop.f32.mrb[115].mxu1  ;;  %2427 = vmatmul.mubr.f32.vlgmr.msra.gmra.mrb[144].mxu0 %v2105_v41  ;;  %2652 = vmatmul.mubr.f32.vlgmr.msra.gmra.mrb[176].mxu1 %v2107_v6  ;;  %v2109_v54 = vmul.f32 %v1663_v53, %v5621_v14  ;;  %v2111_v41 = vmul.f32 %v1920_v51, %v5621_v14  ;;  %v2269_v6 = vld [vmem:[%s7110_s1 + $0x1a8] sm:$0xff] }
 0x2be   : > { %v2110_v16 = vmul.f32 %v1665_v22, %v5621_v14  ;;  %v2112_v10 = vmul.f32 %v1922_v26, %v5621_v14  ;;  %4353 = vmatpush1.bf16.msra.mxu0 %v4352_v30  ;;  %4401 = vmatpush1.bf16.msra.mxu1 %v4400_v21  ;;  %v4358_v14 = vpack.c.bf16 %v2238_v23, %v2237_v40  ;;  %v2239_v22 = vld [vmem:[%s7110_s1 + $0xb8] sm:$0xff]  ;;  %v2240_v26 = vld [vmem:[%s7110_s1 + $0xc0] sm:$0xff] }
 0x2bf   : > { %4354 = vmatprep.subr.bf16.mxu0 %v7148_v52  ;;  %4402 = vmatprep.subr.bf16.mxu1 %v7148_v52  ;;  %v4406_v51 = vpack.c.bf16 %v2270_v5, %v2269_v6  ;;  %v2272_v40 = vld [vmem:[%s7110_s1 + $0x1c0] sm:$0xff] }
 0x2c0   : > { %v1669_v4 = vpop.f32.mrb[84].mxu0  ;;  %v1926_v21 = vpop.f32.mrb[116].mxu1  ;;  %2431 = vmatprep.mubr.f32.mxu0 %v2110_v16  ;;  %2656 = vmatprep.mubr.f32.mxu1 %v2112_v10 }
 0x2c1   : > { %v1671_v30 = vpop.f32.mrb[85].mxu0  ;;  %v1928_v9 = vpop.f32.mrb[117].mxu1  ;;  %2432 = vmatmul.mubr.f32.gmra.mrb[146].mxu0 %v2109_v54  ;;  %2657 = vmatmul.mubr.f32.gmra.mrb[178].mxu1 %v2111_v41  ;;  %v2113_v16 = vmul.f32 %v1669_v4, %v5653_v28  ;;  %v2115_v10 = vmul.f32 %v1926_v21, %v5653_v28  ;;  %v2241_v21 = vld [vmem:[%s7110_s1 + $0xc8] sm:$0xff] }
 0x2c2   : > { %v2114_v35 = vmul.f32 %v1671_v30, %v5653_v28  ;;  %v2116_v53 = vmul.f32 %v1928_v9, %v5653_v28  ;;  %4356 = vmatpush1.bf16.msra.mxu0 %v4355_v12  ;;  %4404 = vmatpush1.bf16.msra.mxu1 %v4403_v49  ;;  %v2271_v12 = vld [vmem:[%s7110_s1 + $0x1b8] sm:$0xff]  ;;  %v4361_v28 = vpack.c.bf16 %v2240_v26, %v2239_v22  ;;  %v2242_v30 = vld [vmem:[%s7110_s1 + $0xd0] sm:$0xff] }
 0x2c3   : > { %4357 = vmatprep.subr.bf16.mxu0 %v7148_v52  ;;  %4405 = vmatprep.subr.bf16.mxu1 %v7148_v52  ;;  %v4409_v4 = vpack.c.bf16 %v2272_v40, %v2271_v12 }
 0x2c4   : > { %v1675_v49 = vpop.f32.mrb[86].mxu0  ;;  %v1932_v23 = vpop.f32.mrb[118].mxu1  ;;  %2436 = vmatprep.mubr.f32.mxu0 %v2114_v35  ;;  %2661 = vmatprep.mubr.f32.mxu1 %v2116_v53  ;;  %v2274_v53 = vld [vmem:[%s7110_s1 + $0x1d0] sm:$0xff] }
 0x2c5   : > { %v1677_v54 = vpop.f32.mrb[87].mxu0  ;;  %v1934_v41 = vpop.f32.mrb[119].mxu1  ;;  %2437 = vmatmul.mubr.f32.gmra.mrb[148].mxu0 %v2113_v16  ;;  %2662 = vmatmul.mubr.f32.gmra.mrb[180].mxu1 %v2115_v10  ;;  %v2117_v9 = vmul.f32 %v1675_v49, %v5687_v46  ;;  %v2119_v35 = vmul.f32 %v1932_v23, %v5687_v46  ;;  %v2243_v49 = vld [vmem:[%s7110_s1 + $0xd8] sm:$0xff]  ;;  %v2244_v23 = vld [vmem:[%s7110_s1 + $0xe0] sm:$0xff] }
 0x2c6   : > { %v2118_v6 = vmul.f32 %v1677_v54, %v5687_v46  ;;  %v2120_v5 = vmul.f32 %v1934_v41, %v5687_v46  ;;  %4359 = vmatpush1.bf16.msra.mxu0 %v4358_v14  ;;  %4407 = vmatpush1.bf16.msra.mxu1 %v4406_v51  ;;  %v2273_v14 = vld [vmem:[%s7110_s1 + $0x1c8] sm:$0xff]  ;;  %v4364_v46 = vpack.c.bf16 %v2242_v30, %v2241_v21 }
 0x2c7   : > { %4360 = vmatprep.subr.bf16.mxu0 %v7148_v52  ;;  %4408 = vmatprep.subr.bf16.mxu1 %v7148_v52  ;;  %v4412_v40 = vpack.c.bf16 %v2274_v53, %v2273_v14  ;;  %v2245_v53 = vld [vmem:[%s7110_s1 + $0xe8] sm:$0xff] }
 0x2c8   : > { %v1681_v51 = vpop.f32.mrb[88].mxu0  ;;  %v1938_v22 = vpop.f32.mrb[120].mxu1  ;;  %2441 = vmatprep.mubr.f32.mxu0 %v2118_v6  ;;  %2666 = vmatprep.mubr.f32.mxu1 %v2120_v5  ;;  %v2276_v6 = vld [vmem:[%s7110_s1 + $0x1e0] sm:$0xff] }
 0x2c9   : > { %v1683_v26 = vpop.f32.mrb[89].mxu0  ;;  %v1940_v16 = vpop.f32.mrb[121].mxu1  ;;  %2442 = vmatmul.mubr.f32.gmra.mrb[150].mxu0 %v2117_v9  ;;  %2667 = vmatmul.mubr.f32.gmra.mrb[182].mxu1 %v2119_v35  ;;  %v2121_v54 = vmul.f32 %v1681_v51, %v5721_v1  ;;  %v2123_v41 = vmul.f32 %v1938_v22, %v5721_v1  ;;  %v2246_v51 = vld [vmem:[%s7110_s1 + $0xf0] sm:$0xff] }
 0x2ca   : > { %v2122_v10 = vmul.f32 %v1683_v26, %v5721_v1  ;;  %v2124_v12 = vmul.f32 %v1940_v16, %v5721_v1  ;;  %4362 = vmatpush1.bf16.msra.mxu0 %v4361_v28  ;;  %4410 = vmatpush1.bf16.msra.mxu1 %v4409_v4  ;;  %v2275_v28 = vld [vmem:[%s7110_s1 + $0x1d8] sm:$0xff]  ;;  %v4367_v1 = vpack.c.bf16 %v2244_v23, %v2243_v49  ;;  %v2277_v16 = vld [vmem:[%s7110_s1 + $0x1e8] sm:$0xff] }
 0x2cb   : > { %4363 = vmatprep.subr.bf16.mxu0 %v7148_v52  ;;  %4411 = vmatprep.subr.bf16.mxu1 %v7148_v52  ;;  %v4415_v14 = vpack.c.bf16 %v2276_v6, %v2275_v28  ;;  %v2247_v28 = vld [vmem:[%s7110_s1 + $0xf8] sm:$0xff]  ;;  %v2248_v6 = vld [vmem:[%s7110_s1 + $0x100] sm:$0xff] }
 0x2cc   : > { %v1687_v5 = vpop.f32.mrb[90].mxu0  ;;  %v1944_v4 = vpop.f32.mrb[122].mxu1  ;;  %2446 = vmatprep.mubr.f32.mxu0 %v2122_v10  ;;  %2671 = vmatprep.mubr.f32.mxu1 %v2124_v12 }
 0x2cd   : > { %v1689_v21 = vpop.f32.mrb[91].mxu0  ;;  %v1946_v30 = vpop.f32.mrb[123].mxu1  ;;  %2447 = vmatmul.mubr.f32.gmra.mrb[152].mxu0 %v2121_v54  ;;  %2672 = vmatmul.mubr.f32.gmra.mrb[184].mxu1 %v2123_v41  ;;  %v2125_v22 = vmul.f32 %v1687_v5, %v5755_v63  ;;  %v2127_v26 = vmul.f32 %v1944_v4, %v5755_v63 }
 0x2ce   : > { %v2126_v9 = vmul.f32 %v1689_v21, %v5755_v63  ;;  %v2128_v35 = vmul.f32 %v1946_v30, %v5755_v63  ;;  %4365 = vmatpush1.bf16.msra.mxu0 %v4364_v46  ;;  %4413 = vmatpush1.bf16.msra.mxu1 %v4412_v40  ;;  %v2278_v46 = vld [vmem:[%s7110_s1 + $0x1f0] sm:$0xff]  ;;  %v4370_v63 = vpack.c.bf16 %v2246_v51, %v2245_v53  ;;  %v2279_v21 = vld [vmem:[%s7110_s1 + $0x1f8] sm:$0xff]  ;;  %v2280_v30 = vld [vmem:[%s7110_s1 + $0x200] sm:$0xff] }
 0x2cf   : > { %4366 = vmatprep.subr.bf16.mxu0 %v7148_v52  ;;  %4414 = vmatprep.subr.bf16.mxu1 %v7148_v52  ;;  %v4418_v41 = vpack.c.bf16 %v2278_v46, %v2277_v16  ;;  %v2250_v16 = vld [vmem:[%s7110_s1 + $0x110] sm:$0xff] }
 0x2d0   : > { %v1693_v10 = vpop.f32.mrb[92].mxu0  ;;  %v1950_v12 = vpop.f32.mrb[124].mxu1  ;;  %2451 = vmatprep.mubr.f32.mxu0 %v2126_v9  ;;  %2676 = vmatprep.mubr.f32.mxu1 %v2128_v35 }
 0x2d1   : > { %v1695_v40 = vpop.f32.mrb[93].mxu0  ;;  %v1952_v49 = vpop.f32.mrb[125].mxu1  ;;  %2452 = vmatmul.mubr.f32.gmra.mrb[154].mxu0 %v2125_v22  ;;  %2677 = vmatmul.mubr.f32.gmra.mrb[186].mxu1 %v2127_v26  ;;  %v2129_v5 = vmul.f32 %v1693_v10, %v5789_v44  ;;  %v2131_v4 = vmul.f32 %v1950_v12, %v5789_v44  ;;  %v4421_v22 = vpack.c.bf16 %v2280_v30, %v2279_v21  ;;  %v2249_v26 = vld [vmem:[%s7110_s1 + $0x108] sm:$0xff] }
 0x2d2   : > { %v2130_v23 = vmul.f32 %v1695_v40, %v5789_v44  ;;  %v2132_v54 = vmul.f32 %v1952_v49, %v5789_v44  ;;  %4368 = vmatpush1.bf16.msra.mxu0 %v4367_v1  ;;  %4416 = vmatpush1.bf16.msra.mxu1 %v4415_v14  ;;  %v4373_v44 = vpack.c.bf16 %v2248_v6, %v2247_v28  ;;  %v2281_v12 = vld [vmem:[%s7110_s1 + $0x208] sm:$0xff]  ;;  %v2282_v40 = vld [vmem:[%s7110_s1 + $0x210] sm:$0xff] }
 0x2d3   : > { %4369 = vmatprep.subr.bf16.mxu0 %v7148_v52  ;;  %4417 = vmatprep.subr.bf16.mxu1 %v7148_v52  ;;  %v4424_v6 = vpack.c.bf16 %v2282_v40, %v2281_v12  ;;  %v2285_v40 = vld [vmem:[%s7110_s1 + $0x228] sm:$0xff] }
 0x2d4   : > { %v1699_v1 = vpop.f32.mrb[94].mxu0  ;;  %v1956_v9 = vpop.f32.mrb[126].mxu1  ;;  %2456 = vmatprep.mubr.f32.mxu0 %v2130_v23  ;;  %2681 = vmatprep.mubr.f32.mxu1 %v2132_v54 }
 0x2d5   : > { %v1701_v35 = vpop.f32.mrb[95].mxu0  ;;  %v1958_v14 = vpop.f32.mrb[127].mxu1  ;;  %2457 = vmatmul.mubr.f32.gmra.mrb[156].mxu0 %v2129_v5  ;;  %2682 = vmatmul.mubr.f32.gmra.mrb[188].mxu1 %v2131_v4  ;;  %v2133_v46 = vmul.f32 %v1699_v1, %v5819_v39  ;;  %v2135_v10 = vmul.f32 %v1956_v9, %v5819_v39  ;;  %v2251_v5 = vld [vmem:[%s7110_s1 + $0x118] sm:$0xff]  ;;  %v2252_v4 = vld [vmem:[%s7110_s1 + $0x120] sm:$0xff] }
 0x2d6   : > { %v2134_v53 = vmul.f32 %v1701_v35, %v5819_v39  ;;  %v2136_v51 = vmul.f32 %v1958_v14, %v5819_v39  ;;  %4371 = vmatpush1.bf16.msra.mxu0 %v4370_v63  ;;  %4419 = vmatpush1.bf16.msra.mxu1 %v4418_v41  ;;  %v4376_v39 = vpack.c.bf16 %v2250_v16, %v2249_v26  ;;  %v2283_v1 = vld [vmem:[%s7110_s1 + $0x218] sm:$0xff]  ;;  %v2284_v9 = vld [vmem:[%s7110_s1 + $0x220] sm:$0xff]  ;;  %v2253_v16 = vld [vmem:[%s7110_s1 + $0x128] sm:$0xff] }
 0x2d7   : > { %4372 = vmatprep.subr.bf16.mxu0 %v7148_v52  ;;  %4420 = vmatprep.subr.bf16.mxu1 %v7148_v52  ;;  %v4427_v26 = vpack.c.bf16 %v2284_v9, %v2283_v1  ;;  %v2287_v1 = vld [vmem:[%s7110_s1 + $0x238] sm:$0xff]  ;;  %v2288_v9 = vld [vmem:[%s7110_s1 + $0x240] sm:$0xff] }
 0x2d8   : > { %v1705_v49 = vpop.f32.mrb[96].mxu0  ;;  %v1962_v63 = vpop.f32.mrb[128].mxu1  ;;  %2461 = vmatprep.mubr.f32.mxu0 %v2134_v53  ;;  %2686 = vmatprep.mubr.f32.mxu1 %v2136_v51 }
 0x2d9   : > { %v1707_v23 = vpop.f32.mrb[97].mxu0  ;;  %v1964_v54 = vpop.f32.mrb[129].mxu1  ;;  %2462 = vmatmul.mubr.f32.gmra.mrb[158].mxu0 %v2133_v46  ;;  %2687 = vmatmul.mubr.f32.gmra.mrb[190].mxu1 %v2135_v10  ;;  %v2137_v21 = vmul.f32 %v1705_v49, %v5849_v59  ;;  %v2139_v30 = vmul.f32 %v1962_v63, %v5849_v59  ;;  %v2254_v46 = vld [vmem:[%s7110_s1 + $0x130] sm:$0xff] }
 0x2da   : > { %v2138_v41 = vmul.f32 %v1707_v23, %v5849_v59  ;;  %v2140_v28 = vmul.f32 %v1964_v54, %v5849_v59  ;;  %4374 = vmatpush1.bf16.msra.mxu0 %v4373_v44  ;;  %4422 = vmatpush1.bf16.msra.mxu1 %v4421_v22  ;;  %v4379_v59 = vpack.c.bf16 %v2252_v4, %v2251_v5  ;;  %v2286_v49 = vld [vmem:[%s7110_s1 + $0x230] sm:$0xff]  ;;  %v2255_v5 = vld [vmem:[%s7110_s1 + $0x138] sm:$0xff]  ;;  %v2256_v4 = vld [vmem:[%s7110_s1 + $0x140] sm:$0xff] }
 0x2db   : > { %4375 = vmatprep.subr.bf16.mxu0 %v7148_v52  ;;  %4423 = vmatprep.subr.bf16.mxu1 %v7148_v52 }
 0x2dc   : > { %v1711_v35 = vpop.f32.mrb[98].mxu0  ;;  %v1968_v14 = vpop.f32.mrb[130].mxu1  ;;  %2466 = vmatprep.mubr.f32.mxu0 %v2138_v41  ;;  %2691 = vmatprep.mubr.f32.mxu1 %v2140_v28 }
 0x2dd   : > { %v1713_v44 = vpop.f32.mrb[99].mxu0  ;;  %v1970_v53 = vpop.f32.mrb[131].mxu1  ;;  %2467 = vmatmul.mubr.f32.gmra.mrb[160].mxu0 %v2137_v21  ;;  %2692 = vmatmul.mubr.f32.gmra.mrb[192].mxu1 %v2139_v30  ;;  %v2141_v10 = vmul.f32 %v1711_v35, %v5884_v17  ;;  %v2143_v12 = vmul.f32 %v1968_v14, %v5884_v17 }
 0x2de   : > { %v2142_v51 = vmul.f32 %v1713_v44, %v5884_v17  ;;  %v2144_v22 = vmul.f32 %v1970_v53, %v5884_v17  ;;  %4377 = vmatpush1.bf16.msra.mxu0 %v4376_v39  ;;  %4425 = vmatpush1.bf16.msra.mxu1 %v4424_v6  ;;  %v4382_v17 = vpack.c.bf16 %v2254_v46, %v2253_v16  ;;  %v2258_v16 = vld [vmem:[%s7110_s1 + $0x150] sm:$0xff] }
 0x2df   : > { %4378 = vmatprep.subr.bf16.mxu0 %v7148_v52  ;;  %4426 = vmatprep.subr.bf16.mxu1 %v7148_v52  ;;  %v4430_v6 = vpack.c.bf16 %v2286_v49, %v2285_v40  ;;  %v2290_v40 = vld [vmem:[%s7110_s1 + $0x250] sm:$0xff] }
 0x2e0   : > { %v1717_v63 = vpop.f32.mrb[100].mxu0  ;;  %v1974_v23 = vpop.f32.mrb[132].mxu1  ;;  %2471 = vmatprep.mubr.f32.mxu0 %v2142_v51  ;;  %2696 = vmatprep.mubr.f32.mxu1 %v2144_v22  ;;  %v4433_v22 = vpack.c.bf16 %v2288_v9, %v2287_v1 }
 0x2e1   : > { %v1719_v54 = vpop.f32.mrb[101].mxu0  ;;  %v1976_v39 = vpop.f32.mrb[133].mxu1  ;;  %2472 = vmatmul.mubr.f32.gmra.mrb[162].mxu0 %v2141_v10  ;;  %2697 = vmatmul.mubr.f32.gmra.mrb[194].mxu1 %v2143_v12  ;;  %v2145_v21 = vmul.f32 %v1717_v63, %v5917_v38  ;;  %v2147_v30 = vmul.f32 %v1974_v23, %v5917_v38  ;;  %v2289_v12 = vld [vmem:[%s7110_s1 + $0x248] sm:$0xff] }
 0x2e2   : > { %v2146_v41 = vmul.f32 %v1719_v54, %v5917_v38  ;;  %v2148_v28 = vmul.f32 %v1976_v39, %v5917_v38  ;;  %4380 = vmatpush1.bf16.msra.mxu0 %v4379_v59  ;;  %4428 = vmatpush1.bf16.msra.mxu1 %v4427_v26  ;;  %v4385_v38 = vpack.c.bf16 %v2256_v4, %v2255_v5  ;;  %v2257_v26 = vld [vmem:[%s7110_s1 + $0x148] sm:$0xff] }
 0x2e3   : > { %4381 = vmatprep.subr.bf16.mxu0 %v7148_v52  ;;  %4429 = vmatprep.subr.bf16.mxu1 %v7148_v52 }
 0x2e4   : > { %v1723_v35 = vpop.f32.mrb[102].mxu0  ;;  %v1980_v14 = vpop.f32.mrb[134].mxu1  ;;  %2476 = vmatprep.mubr.f32.mxu0 %v2146_v41  ;;  %2701 = vmatprep.mubr.f32.mxu1 %v2148_v28  ;;  %v4436_v41 = vpack.c.bf16 %v2290_v40, %v2289_v12  ;;  %v2259_v28 = vld [vmem:[%s7110_s1 + $0x158] sm:$0xff] }
 0x2e5   : > { %v1725_v44 = vpop.f32.mrb[103].mxu0  ;;  %v1982_v53 = vpop.f32.mrb[135].mxu1  ;;  %2477 = vmatmul.mubr.f32.gmra.mrb[164].mxu0 %v2145_v21  ;;  %2702 = vmatmul.mubr.f32.gmra.mrb[196].mxu1 %v2147_v30  ;;  %v2149_v46 = vmul.f32 %v1723_v35, %v5943_v45  ;;  %v2151_v10 = vmul.f32 %v1980_v14, %v5943_v45  ;;  %v2291_v21 = vld [vmem:[%s7110_s1 + $0x258] sm:$0xff]  ;;  %v2292_v30 = vld [vmem:[%s7110_s1 + $0x260] sm:$0xff] }
 0x2e6   : > { %v2150_v59 = vmul.f32 %v1725_v44, %v5943_v45  ;;  %v2152_v51 = vmul.f32 %v1982_v53, %v5943_v45  ;;  %4383 = vmatpush1.bf16.msra.mxu0 %v4382_v17  ;;  %4431 = vmatpush1.bf16.msra.mxu1 %v4430_v6  ;;  %v4388_v45 = vpack.c.bf16 %v2258_v16, %v2257_v26  ;;  %v2260_v6 = vld [vmem:[%s7110_s1 + $0x160] sm:$0xff]  ;;  %v2293_v16 = vld [vmem:[%s7110_s1 + $0x268] sm:$0xff] }
 0x2e7   : > { %4384 = vmatprep.subr.bf16.mxu0 %v7148_v52  ;;  %4432 = vmatprep.subr.bf16.mxu1 %v7148_v52 }
 0x2e8   : > { %v1729_v49 = vpop.f32.mrb[104].mxu0  ;;  %v1986_v63 = vpop.f32.mrb[136].mxu1  ;;  %2481 = vmatprep.mubr.f32.mxu0 %v2150_v59  ;;  %2706 = vmatprep.mubr.f32.mxu1 %v2152_v51  ;;  %v2261_v59 = vld [vmem:[%s7110_s1 + $0x168] sm:$0xff]  ;;  %v2262_v51 = vld [vmem:[%s7110_s1 + $0x170] sm:$0xff] }
 0x2e9   : > { %v1731_v23 = vpop.f32.mrb[105].mxu0  ;;  %v1988_v54 = vpop.f32.mrb[137].mxu1  ;;  %2482 = vmatmul.mubr.f32.gmra.mrb[166].mxu0 %v2149_v46  ;;  %2707 = vmatmul.mubr.f32.gmra.mrb[198].mxu1 %v2151_v10  ;;  %v2153_v5 = vmul.f32 %v1729_v49, %v5976_v56  ;;  %v2155_v4 = vmul.f32 %v1986_v63, %v5976_v56  ;;  %v2294_v46 = vld [vmem:[%s7110_s1 + $0x270] sm:$0xff] }
 0x2ea   : > { %v2154_v39 = vmul.f32 %v1731_v23, %v5976_v56  ;;  %v2156_v17 = vmul.f32 %v1988_v54, %v5976_v56  ;;  %4386 = vmatpush1.bf16.msra.mxu0 %v4385_v38  ;;  %4434 = vmatpush1.bf16.msra.mxu1 %v4433_v22  ;;  %v4391_v56 = vpack.c.bf16 %v2260_v6, %v2259_v28  ;;  %v2295_v28 = vld [vmem:[%s7110_s1 + $0x278] sm:$0xff]  ;;  %v2296_v6 = vld [vmem:[%s7110_s1 + $0x280] sm:$0xff] }
 0x2eb   : > { %4387 = vmatprep.subr.bf16.mxu0 %v7148_v52  ;;  %4435 = vmatprep.subr.bf16.mxu1 %v7148_v52  ;;  %v4439_v38 = vpack.c.bf16 %v2292_v30, %v2291_v21  ;;  %v4442_v54 = vpack.c.bf16 %v2294_v46, %v2293_v16 }
 0x2ec   : > { %v1735_v1 = vpop.f32.mrb[106].mxu0  ;;  %v1992_v9 = vpop.f32.mrb[138].mxu1  ;;  %2486 = vmatprep.mubr.f32.mxu0 %v2154_v39  ;;  %2711 = vmatprep.mubr.f32.mxu1 %v2156_v17  ;;  %v2264_v39 = vld [vmem:[%s7110_s1 + $0x180] sm:$0xff] }
 0x2ed   : > { %v1737_v35 = vpop.f32.mrb[107].mxu0  ;;  %v1994_v14 = vpop.f32.mrb[139].mxu1  ;;  %2487 = vmatmul.mubr.f32.gmra.mrb[168].mxu0 %v2153_v5  ;;  %2712 = vmatmul.mubr.f32.gmra.mrb[200].mxu1 %v2155_v4  ;;  %v2157_v22 = vmul.f32 %v1735_v1, %v6009_v55  ;;  %v2159_v26 = vmul.f32 %v1992_v9, %v6009_v55 }
 0x2ee   : > { %v2158_v44 = vmul.f32 %v1737_v35, %v6009_v55  ;;  %v2160_v53 = vmul.f32 %v1994_v14, %v6009_v55  ;;  %4389 = vmatpush1.bf16.msra.mxu0 %v4388_v45  ;;  %4437 = vmatpush1.bf16.msra.mxu1 %v4436_v41  ;;  %v4394_v55 = vpack.c.bf16 %v2262_v51, %v2261_v59  ;;  %v2263_v45 = vld [vmem:[%s7110_s1 + $0x178] sm:$0xff] }
 0x2ef   : > { %4390 = vmatprep.subr.bf16.mxu0 %v7148_v52  ;;  %4438 = vmatprep.subr.bf16.mxu1 %v7148_v52  ;;  %v4445_v35 = vpack.c.bf16 %v2296_v6, %v2295_v28 }
 0x2f0   : > { %v1741_v10 = vpop.f32.mrb[108].mxu0  ;;  %v1998_v12 = vpop.f32.mrb[140].mxu1  ;;  %2491 = vmatprep.mubr.f32.mxu0 %v2158_v44  ;;  %2716 = vmatprep.mubr.f32.mxu1 %v2160_v53 }
 0x2f1   : > { %v1743_v40 = vpop.f32.mrb[109].mxu0  ;;  %v2000_v49 = vpop.f32.mrb[141].mxu1  ;;  %2492 = vmatmul.mubr.f32.gmra.mrb[170].mxu0 %v2157_v22  ;;  %2717 = vmatmul.mubr.f32.gmra.mrb[202].mxu1 %v2159_v26  ;;  %v2161_v17 = vmul.f32 %v1741_v10, %v6042_v15  ;;  %v2163_v41 = vmul.f32 %v1998_v12, %v6042_v15 }
 0x2f2   : > { %v2162_v63 = vmul.f32 %v1743_v40, %v6042_v15  ;;  %v2164_v23 = vmul.f32 %v2000_v49, %v6042_v15  ;;  %4392 = vmatpush1.bf16.msra.mxu0 %v4391_v56  ;;  %4440 = vmatpush1.bf16.msra.mxu1 %v4439_v38  ;;  %v4397_v15 = vpack.c.bf16 %v2264_v39, %v2263_v45 }
 0x2f3   : > { %4393 = vmatprep.subr.bf16.mxu0 %v7148_v52  ;;  %4441 = vmatprep.subr.bf16.mxu1 %v7148_v52 }
 0x2f4   : > { %v1747_v5 = vpop.f32.mrb[110].mxu0  ;;  %v2004_v4 = vpop.f32.mrb[142].mxu1  ;;  %2496 = vmatprep.mubr.f32.mxu0 %v2162_v63  ;;  %2721 = vmatprep.mubr.f32.mxu1 %v2164_v23 }
 0x2f5   : > { %v1749_v21 = vpop.f32.mrb[111].mxu0  ;;  %v2006_v30 = vpop.f32.mrb[143].mxu1  ;;  %2497 = vmatmul.mubr.f32.gmra.mrb[172].mxu0 %v2161_v17  ;;  %2722 = vmatmul.mubr.f32.gmra.mrb[204].mxu1 %v2163_v41  ;;  %v2165_v14 = vmul.f32 %v1747_v5, %v6079_v29  ;;  %v2167_v56 = vmul.f32 %v2004_v4, %v6079_v29 }
 0x2f6   : > { %v2166_v1 = vmul.f32 %v1749_v21, %v6079_v29  ;;  %v2168_v9 = vmul.f32 %v2006_v30, %v6079_v29  ;;  %4395 = vmatpush1.bf16.msra.mxu0 %v4394_v55  ;;  %4443 = vmatpush1.bf16.msra.mxu1 %v4442_v54 }
 0x2f7   : > { %4396 = vmatprep.subr.bf16.mxu0 %v7148_v52  ;;  %4444 = vmatprep.subr.bf16.mxu1 %v7148_v52 }
 0x2f8   : > { %v1753_v44 = vpop.f32.mrb[112].mxu0  ;;  %v2010_v53 = vpop.f32.mrb[144].mxu1  ;;  %2501 = vmatprep.mubr.f32.mxu0 %v2166_v1  ;;  %2726 = vmatprep.mubr.f32.mxu1 %v2168_v9 }
 0x2f9   : > { %v1755_v38 = vpop.f32.mrb[113].mxu0  ;;  %v2012_v59 = vpop.f32.mrb[145].mxu1  ;;  %2502 = vmatmul.mubr.f32.gmra.mrb[174].mxu0 %v2165_v14  ;;  %2727 = vmatmul.mubr.f32.gmra.mrb[206].mxu1 %v2167_v56  ;;  %v2169_v29 = vmul.f32 %v1753_v44, %v6094_v47  ;;  %v2171_v26 = vmul.f32 %v2010_v53, %v6094_v47 }
 0x2fa   : > { %v2170_v51 = vmul.f32 %v1755_v38, %v6094_v47  ;;  %v2172_v22 = vmul.f32 %v2012_v59, %v6094_v47  ;;  %4398 = vmatpush1.bf16.msra.mxu0 %v4397_v15  ;;  %4446 = vmatpush1.bf16.msra.mxu1 %v4445_v35 }
 0x2fc   : > { %v1759_v16 = vpop.f32.mrb[114].mxu0  ;;  %v2016_v52 = vpop.f32.mrb[146].mxu1  ;;  %2506 = vmatprep.mubr.f32.mxu0 %v2170_v51  ;;  %2731 = vmatprep.mubr.f32.mxu1 %v2172_v22 }
 0x2fd   : > { %v1761_v46 = vpop.f32.mrb[115].mxu0  ;;  %v2018_v10 = vpop.f32.mrb[147].mxu1  ;;  %2507 = vmatmul.mubr.f32.gmra.mrb[176].mxu0 %v2169_v29  ;;  %2732 = vmatmul.mubr.f32.gmra.mrb[208].mxu1 %v2171_v26  ;;  %v2173_v49 = vmul.f32 %v1759_v16, %v6107_v2  ;;  %v2175_v55 = vmul.f32 %v2016_v52, %v6107_v2 }
 0x2fe   : > { %v2174_v12 = vmul.f32 %v1761_v46, %v6107_v2  ;;  %v2176_v40 = vmul.f32 %v2018_v10, %v6107_v2 }
 0x300   : > { %v1765_v63 = vpop.f32.mrb[116].mxu0  ;;  %v2022_v23 = vpop.f32.mrb[148].mxu1  ;;  %2511 = vmatprep.mubr.f32.mxu0 %v2174_v12  ;;  %2736 = vmatprep.mubr.f32.mxu1 %v2176_v40 }
 0x301   : > { %v1767_v47 = vpop.f32.mrb[117].mxu0  ;;  %v2024_v54 = vpop.f32.mrb[149].mxu1  ;;  %2512 = vmatmul.mubr.f32.gmra.mrb[178].mxu0 %v2173_v49  ;;  %2737 = vmatmul.mubr.f32.gmra.mrb[210].mxu1 %v2175_v55  ;;  %v2177_v17 = vmul.f32 %v1765_v63, %v6120_v33  ;;  %v2179_v41 = vmul.f32 %v2022_v23, %v6120_v33 }
 0x302   : > { %v2178_v45 = vmul.f32 %v1767_v47, %v6120_v33  ;;  %v2180_v39 = vmul.f32 %v2024_v54, %v6120_v33 }
 0x304   : > { %v1771_v28 = vpop.f32.mrb[118].mxu0  ;;  %v2028_v6 = vpop.f32.mrb[150].mxu1  ;;  %2516 = vmatprep.mubr.f32.mxu0 %v2178_v45  ;;  %2741 = vmatprep.mubr.f32.mxu1 %v2180_v39 }
 0x305   : > { %v1773_v2 = vpop.f32.mrb[119].mxu0  ;;  %v2030_v5 = vpop.f32.mrb[151].mxu1  ;;  %2517 = vmatmul.mubr.f32.gmra.mrb[180].mxu0 %v2177_v17  ;;  %2742 = vmatmul.mubr.f32.gmra.mrb[212].mxu1 %v2179_v41  ;;  %v2181_v30 = vmul.f32 %v1771_v28, %v6131_v32  ;;  %v2183_v15 = vmul.f32 %v2028_v6, %v6131_v32 }
 0x306   : > { %v2182_v4 = vmul.f32 %v1773_v2, %v6131_v32  ;;  %v2184_v21 = vmul.f32 %v2030_v5, %v6131_v32 }
 0x308   : > { %v1777_v1 = vpop.f32.mrb[120].mxu0  ;;  %v2034_v9 = vpop.f32.mrb[152].mxu1  ;;  %2521 = vmatprep.mubr.f32.mxu0 %v2182_v4  ;;  %2746 = vmatprep.mubr.f32.mxu1 %v2184_v21 }
 0x309   : > { %v1779_v33 = vpop.f32.mrb[121].mxu0  ;;  %v2036_v35 = vpop.f32.mrb[153].mxu1  ;;  %2522 = vmatmul.mubr.f32.gmra.mrb[182].mxu0 %v2181_v30  ;;  %2747 = vmatmul.mubr.f32.gmra.mrb[214].mxu1 %v2183_v15  ;;  %v2185_v44 = vmul.f32 %v1777_v1, %v6144_v27  ;;  %v2187_v53 = vmul.f32 %v2034_v9, %v6144_v27 }
 0x30a   : > { %v2186_v14 = vmul.f32 %v1779_v33, %v6144_v27  ;;  %v2188_v56 = vmul.f32 %v2036_v35, %v6144_v27 }
 0x30c   : > { %v1783_v38 = vpop.f32.mrb[122].mxu0  ;;  %v2040_v59 = vpop.f32.mrb[154].mxu1  ;;  %2526 = vmatprep.mubr.f32.mxu0 %v2186_v14  ;;  %2751 = vmatprep.mubr.f32.mxu1 %v2188_v56 }
 0x30d   : > { %v1785_v32 = vpop.f32.mrb[123].mxu0  ;;  %v2042_v51 = vpop.f32.mrb[155].mxu1  ;;  %2527 = vmatmul.mubr.f32.gmra.mrb[184].mxu0 %v2185_v44  ;;  %2752 = vmatmul.mubr.f32.gmra.mrb[216].mxu1 %v2187_v53  ;;  %v2189_v26 = vmul.f32 %v1783_v38, %v6155_v11  ;;  %v2191_v16 = vmul.f32 %v2040_v59, %v6155_v11 }
 0x30e   : > { %v2190_v22 = vmul.f32 %v1785_v32, %v6155_v11  ;;  %v2192_v29 = vmul.f32 %v2042_v51, %v6155_v11 }
 0x310   : > { %v1789_v52 = vpop.f32.mrb[124].mxu0  ;;  %v2046_v46 = vpop.f32.mrb[156].mxu1  ;;  %2531 = vmatprep.mubr.f32.mxu0 %v2190_v22  ;;  %2756 = vmatprep.mubr.f32.mxu1 %v2192_v29 }
 0x311   : > { %v1791_v27 = vpop.f32.mrb[125].mxu0  ;;  %v2048_v10 = vpop.f32.mrb[157].mxu1  ;;  %2532 = vmatmul.mubr.f32.gmra.mrb[186].mxu0 %v2189_v26  ;;  %2757 = vmatmul.mubr.f32.gmra.mrb[218].mxu1 %v2191_v16  ;;  %v2193_v49 = vmul.f32 %v1789_v52, %v6168_v8  ;;  %v2195_v55 = vmul.f32 %v2046_v46, %v6168_v8 }
 0x312   : > { %v2194_v12 = vmul.f32 %v1791_v27, %v6168_v8  ;;  %v2196_v40 = vmul.f32 %v2048_v10, %v6168_v8 }
 0x314   : > { %v1795_v63 = vpop.f32.mrb[126].mxu0  ;;  %v2052_v23 = vpop.f32.mrb[158].mxu1  ;;  %2536 = vmatprep.mubr.f32.mxu0 %v2194_v12  ;;  %2761 = vmatprep.mubr.f32.mxu1 %v2196_v40 }
 0x315   : > { %v1797_v11 = vpop.f32.mrb[127].mxu0  ;;  %v2054_v47 = vpop.f32.mrb[159].mxu1  ;;  %2537 = vmatmul.mubr.f32.gmra.mrb[188].mxu0 %v2193_v49  ;;  %2762 = vmatmul.mubr.f32.gmra.mrb[220].mxu1 %v2195_v55  ;;  %v2197_v39 = vmul.f32 %v1795_v63, %v6179_v61  ;;  %v2199_v17 = vmul.f32 %v2052_v23, %v6179_v61 }
 0x316   : > { %v2198_v54 = vmul.f32 %v1797_v11, %v6179_v61  ;;  %v2200_v45 = vmul.f32 %v2054_v47, %v6179_v61 }
 0x318   : > { %v1801_v41 = vpop.f32.mrb[128].mxu0  ;;  %v2058_v28 = vpop.f32.mrb[160].mxu1  ;;  %2541 = vmatprep.mubr.f32.mxu0 %v2198_v54  ;;  %2766 = vmatprep.mubr.f32.mxu1 %v2200_v45 }
 0x319   : > { %v1803_v8 = vpop.f32.mrb[129].mxu0  ;;  %v2060_v6 = vpop.f32.mrb[161].mxu1  ;;  %2542 = vmatmul.mubr.f32.gmra.mrb[190].mxu0 %v2197_v39  ;;  %2767 = vmatmul.mubr.f32.gmra.mrb[222].mxu1 %v2199_v17  ;;  %v2201_v4 = vmul.f32 %v1801_v41, %v6192_v13  ;;  %v2203_v21 = vmul.f32 %v2058_v28, %v6192_v13 }
 0x31a   : > { %v2202_v2 = vmul.f32 %v1803_v8, %v6192_v13  ;;  %v2204_v5 = vmul.f32 %v2060_v6, %v6192_v13 }
 0x31c   : > { %v1807_v30 = vpop.f32.mrb[130].mxu0  ;;  %v2064_v15 = vpop.f32.mrb[162].mxu1  ;;  %2546 = vmatprep.mubr.f32.mxu0 %v2202_v2  ;;  %2771 = vmatprep.mubr.f32.mxu1 %v2204_v5 }
 0x31d   : > { %v1809_v61 = vpop.f32.mrb[131].mxu0  ;;  %v2066_v1 = vpop.f32.mrb[163].mxu1  ;;  %2547 = vmatmul.mubr.f32.gmra.mrb[192].mxu0 %v2201_v4  ;;  %2772 = vmatmul.mubr.f32.gmra.mrb[224].mxu1 %v2203_v21  ;;  %v2205_v35 = vmul.f32 %v1807_v30, %v6203_v24  ;;  %v2207_v14 = vmul.f32 %v2064_v15, %v6203_v24 }
 0x31e   : > { %v2206_v9 = vmul.f32 %v1809_v61, %v6203_v24  ;;  %v2208_v33 = vmul.f32 %v2066_v1, %v6203_v24 }
 0x320   : > { %v1813_v56 = vpop.f32.mrb[132].mxu0  ;;  %v2070_v44 = vpop.f32.mrb[164].mxu1  ;;  %2551 = vmatprep.mubr.f32.mxu0 %v2206_v9  ;;  %2776 = vmatprep.mubr.f32.mxu1 %v2208_v33 }
 0x321   : > { %v1815_v13 = vpop.f32.mrb[133].mxu0  ;;  %v2072_v53 = vpop.f32.mrb[165].mxu1  ;;  %2552 = vmatmul.mubr.f32.gmra.mrb[194].mxu0 %v2205_v35  ;;  %2777 = vmatmul.mubr.f32.gmra.mrb[226].mxu1 %v2207_v14  ;;  %v2209_v32 = vmul.f32 %v1813_v56, %v6216_v57  ;;  %v2211_v51 = vmul.f32 %v2070_v44, %v6216_v57  ;;  %v4537_v14 = vld [vmem:[%s4644_s11] sm:$0xff]  ;;  %v7235_v56 = vld [vmem:[#allocation3_spill] sm:$0xff] }
 0x322   : > { %v2210_v38 = vmul.f32 %v1815_v13, %v6216_v57  ;;  %v2212_v59 = vmul.f32 %v2072_v53, %v6216_v57  ;;  %v1466_v44 = vmul.f32 %v4537_v14, %v6076_v48  ;;  %v7236_v13 = vld [vmem:[#allocation2_spill] sm:$0xff]  ;;  %v7238_v48 = vld [vmem:[#allocation4_spill] sm:$0xff] }
 0x323   : > { %v1463_v53 = vmul.f32 %v4537_v14, %v7236_v13 }
 0x324   : > { %v1819_v22 = vpop.f32.mrb[134].mxu0  ;;  %v2076_v29 = vpop.f32.mrb[166].mxu1  ;;  %2556 = vmatprep.mubr.f32.mxu0 %v2210_v38  ;;  %2781 = vmatprep.mubr.f32.mxu1 %v2212_v59  ;;  %v1465_v38 = vmul.f32 %v4537_v14, %v6070_v62  ;;  %v4538_v59 = vld [vmem:[%s4644_s11 + $0x8] sm:$0xff]  ;;  %v7240_v62 = vld [vmem:[#allocation6_spill] sm:$0xff] }
 0x325   : > { %v1821_v24 = vpop.f32.mrb[135].mxu0  ;;  %v2078_v26 = vpop.f32.mrb[167].mxu1  ;;  %2557 = vmatmul.mubr.f32.gmra.mrb[196].mxu0 %v2209_v32  ;;  %2782 = vmatmul.mubr.f32.gmra.mrb[228].mxu1 %v2211_v51  ;;  %v2213_v46 = vmul.f32 %v1819_v22, %v6227_v34  ;;  %v2215_v27 = vmul.f32 %v2076_v29, %v6227_v34  ;;  %v7237_v32 = vld [vmem:[#allocation5_spill] sm:$0xff]  ;;  %v1467_v22 = vmul.f32 %v4538_v59, %v7238_v48 }
 0x326   : > { %v2214_v16 = vmul.f32 %v1821_v24, %v6227_v34  ;;  %v2216_v52 = vmul.f32 %v2078_v26, %v6227_v34  ;;  %v1468_v51 = vmul.f32 %v4538_v59, %v7237_v32  ;;  %v1469_v29 = vmul.f32 %v4538_v59, %v6086_v18  ;;  %v4539_v24 = vld [vmem:[%s4644_s11 + $0x10] sm:$0xff]  ;;  %v7239_v26 = vld [vmem:[#allocation7_spill] sm:$0xff]  ;;  %v7258_v32 = vld [vmem:[#allocation21_spill] sm:$0xff] }
 0x327   : > { %v7242_v18 = vld [vmem:[#allocation8_spill] sm:$0xff] }
 0x328   : > { %v1825_v10 = vpop.f32.mrb[136].mxu0  ;;  %v2082_v12 = vpop.f32.mrb[168].mxu1  ;;  %2561 = vmatprep.mubr.f32.mxu0 %v2214_v16  ;;  %2786 = vmatprep.mubr.f32.mxu1 %v2216_v52  ;;  %v1472_v16 = vmul.f32 %v4539_v24, %v7239_v26  ;;  %v1474_v52 = vmul.f32 %v4539_v24, %v6104_v42 }
 0x329   : > { %v1827_v57 = vpop.f32.mrb[137].mxu0  ;;  %v2084_v40 = vpop.f32.mrb[169].mxu1  ;;  %2562 = vmatmul.mubr.f32.gmra.mrb[198].mxu0 %v2213_v46  ;;  %2787 = vmatmul.mubr.f32.gmra.mrb[230].mxu1 %v2215_v27  ;;  %v2217_v63 = vmul.f32 %v1825_v10, %v6240_v50  ;;  %v2219_v23 = vmul.f32 %v2082_v12, %v6240_v50  ;;  %v1473_v46 = vmul.f32 %v4539_v24, %v6100_v43  ;;  %v4540_v27 = vld [vmem:[%s4644_s11 + $0x18] sm:$0xff]  ;;  %v7244_v43 = vld [vmem:[#allocation10_spill] sm:$0xff] }
 0x32a   : > { %v2218_v49 = vmul.f32 %v1827_v57, %v6240_v50  ;;  %v2220_v55 = vmul.f32 %v2084_v40, %v6240_v50  ;;  %v7241_v10 = vld [vmem:[#allocation9_spill] sm:$0xff]  ;;  %v1478_v57 = vmul.f32 %v4540_v27, %v6116_v19  ;;  %v1475_v42 = vmul.f32 %v4540_v27, %v7242_v18 }
 0x32b   : > { %v1476_v12 = vmul.f32 %v4540_v27, %v7241_v10  ;;  %v1477_v40 = vmul.f32 %v4540_v27, %v6112_v0  ;;  %v7246_v0 = vld [vmem:[#allocation12_spill] sm:$0xff]  ;;  %v7264_v27 = vld [vmem:[#allocation22_spill] sm:$0xff]  ;;  %v4548_v18 = vld [vmem:[%s4644_s11 + $0x58] sm:$0xff] }
 0x32c   : > { %v1831_v11 = vpop.f32.mrb[138].mxu0  ;;  %v2088_v47 = vpop.f32.mrb[170].mxu1  ;;  %2566 = vmatprep.mubr.f32.mxu0 %v2218_v49  ;;  %2791 = vmatprep.mubr.f32.mxu1 %v2220_v55  ;;  %v4541_v49 = vld [vmem:[%s4644_s11 + $0x20] sm:$0xff]  ;;  %v7243_v55 = vld [vmem:[#allocation11_spill] sm:$0xff] }
 0x32d   : > { %v1833_v34 = vpop.f32.mrb[139].mxu0  ;;  %v2090_v54 = vpop.f32.mrb[171].mxu1  ;;  %2567 = vmatmul.mubr.f32.gmra.mrb[200].mxu0 %v2217_v63  ;;  %2792 = vmatmul.mubr.f32.gmra.mrb[232].mxu1 %v2219_v23  ;;  %v2221_v17 = vmul.f32 %v1831_v11, %v6251_v25  ;;  %v2223_v41 = vmul.f32 %v2088_v47, %v6251_v25  ;;  %v1480_v63 = vmul.f32 %v4541_v49, %v7243_v55  ;;  %v4542_v47 = vld [vmem:[%s4644_s11 + $0x28] sm:$0xff] }
 0x32e   : > { %v2222_v45 = vmul.f32 %v1833_v34, %v6251_v25  ;;  %v2224_v39 = vmul.f32 %v2090_v54, %v6251_v25  ;;  %v1482_v23 = vmul.f32 %v4541_v49, %v6128_v58  ;;  %v1479_v19 = vmul.f32 %v4541_v49, %v7244_v43  ;;  %v7245_v34 = vld [vmem:[#allocation13_spill] sm:$0xff]  ;;  %v7269_v43 = vld [vmem:[#allocation75_spill] sm:$0xff] }
 0x32f   : > { %v1481_v11 = vmul.f32 %v4541_v49, %v6124_v3  ;;  %v1484_v54 = vmul.f32 %v4542_v47, %v7245_v34  ;;  %v1483_v58 = vmul.f32 %v4542_v47, %v7246_v0  ;;  %v7248_v3 = vld [vmem:[#allocation14_spill] sm:$0xff]  ;;  %v7267_v49 = vld [vmem:[#allocation76_spill] sm:$0xff] }
 0x330   : > { %v1837_v28 = vpop.f32.mrb[140].mxu0  ;;  %v2094_v8 = vpop.f32.mrb[172].mxu1  ;;  %2571 = vmatprep.mubr.f32.mxu0 %v2222_v45  ;;  %2796 = vmatprep.mubr.f32.mxu1 %v2224_v39  ;;  %v1486_v45 = vmul.f32 %v4542_v47, %v6140_v31  ;;  %v1485_v39 = vmul.f32 %v4542_v47, %v6136_v7  ;;  %v7252_v7 = vld [vmem:[#allocation16_spill] sm:$0xff]  ;;  %v1510_v55 = vmul.f32 %v4548_v18, %v7267_v49  ;;  %v7270_v47 = vld [vmem:[#allocation27_spill] sm:$0xff]  ;;  %v3332_v0 = vld [vmem:[%s7110_s1 + $0x4a0] sm:$0xff] }
 0x331   : > { %v1839_v50 = vpop.f32.mrb[141].mxu0  ;;  %v2096_v6 = vpop.f32.mrb[173].mxu1  ;;  %2572 = vmatmul.mubr.f32.gmra.mrb[202].mxu0 %v2221_v17  ;;  %2797 = vmatmul.mubr.f32.gmra.mrb[234].mxu1 %v2223_v41  ;;  %v2225_v4 = vmul.f32 %v1837_v28, %v6264_v37  ;;  %v2227_v21 = vmul.f32 %v2094_v8, %v6264_v37  ;;  %v4543_v17 = vld [vmem:[%s4644_s11 + $0x30] sm:$0xff]  ;;  %v7247_v41 = vld [vmem:[#allocation15_spill] sm:$0xff] }
 0x332   : > { %v2226_v2 = vmul.f32 %v1839_v50, %v6264_v37  ;;  %v2228_v5 = vmul.f32 %v2096_v6, %v6264_v37  ;;  %v1464_v37 = vmul.f32 %v4537_v14, %v7235_v56  ;;  %v1488_v28 = vmul.f32 %v4543_v17, %v7247_v41  ;;  %v7249_v50 = vld [vmem:[#allocation66_spill] sm:$0xff]  ;;  %v3330_v14 = vld [vmem:[%s7110_s1 + $0x490] sm:$0xff]  ;;  %v3331_v56 = vld [vmem:[%s7110_s1 + $0x498] sm:$0xff] }
 0x333   : > { %v1490_v8 = vmul.f32 %v4543_v17, %v6152_v36  ;;  %v1487_v31 = vmul.f32 %v4543_v17, %v7248_v3  ;;  %v1489_v6 = vmul.f32 %v4543_v17, %v7249_v50  ;;  %v7272_v17 = vld [vmem:[#allocation26_spill] sm:$0xff]  ;;  %v4550_v3 = vld [vmem:[%s4644_s11 + $0x68] sm:$0xff] }
 0x334   : > { %v1843_v30 = vpop.f32.mrb[142].mxu0  ;;  %v2100_v15 = vpop.f32.mrb[174].mxu1  ;;  %2576 = vmatprep.mubr.f32.mxu0 %v2226_v2  ;;  %2801 = vmatprep.mubr.f32.mxu1 %v2228_v5  ;;  %v4544_v2 = vld [vmem:[%s4644_s11 + $0x38] sm:$0xff]  ;;  %v7293_v49 = vld [vmem:[#allocation87_spill] sm:$0xff] }
 0x335   : > { %v1845_v25 = vpop.f32.mrb[143].mxu0  ;;  %v2102_v61 = vpop.f32.mrb[175].mxu1  ;;  %2577 = vmatmul.mubr.f32.gmra.mrb[204].mxu0 %v2225_v4  ;;  %2802 = vmatmul.mubr.f32.gmra.mrb[236].mxu1 %v2227_v21  ;;  %v2229_v33 = vmul.f32 %v1843_v30, %v6275_v20  ;;  %v2231_v35 = vmul.f32 %v2100_v15, %v6275_v20  ;;  %v7250_v5 = vld [vmem:[#allocation17_spill] sm:$0xff]  ;;  %v7251_v21 = vld [vmem:[#allocation68_spill] sm:$0xff]  ;;  %v1491_v36 = vmul.f32 %v4544_v2, %v7252_v7  ;;  %v7253_v15 = vld [vmem:[#allocation67_spill] sm:$0xff] }
 0x336   : > { %v2230_v1 = vmul.f32 %v1845_v25, %v6275_v20  ;;  %v2232_v9 = vmul.f32 %v2102_v61, %v6275_v20  ;;  %v1470_v20 = vmul.f32 %v4538_v59, %v6090_v60  ;;  %v1471_v60 = vmul.f32 %v4539_v24, %v7240_v62  ;;  %v4545_v61 = vld [vmem:[%s4644_s11 + $0x40] sm:$0xff]  ;;  %v4546_v59 = vld [vmem:[%s4644_s11 + $0x48] sm:$0xff]  ;;  %v4551_v7 = vld [vmem:[%s4644_s11 + $0x70] sm:$0xff] }
 0x337   : > { %v1492_v4 = vmul.f32 %v4544_v2, %v7250_v5  ;;  %v1494_v30 = vmul.f32 %v4544_v2, %v7251_v21  ;;  %v1493_v25 = vmul.f32 %v4544_v2, %v7253_v15  ;;  %v7261_v24 = vld [vmem:[#allocation71_spill] sm:$0xff]  ;;  %v7276_v5 = vld [vmem:[#allocation28_spill] sm:$0xff] }
 0x338   : > { %2581 = vmatprep.mubr.f32.mxu0 %v2230_v1  ;;  %2806 = vmatprep.mubr.f32.mxu1 %v2232_v9  ;;  %v7254_v1 = vld [vmem:[#allocation19_spill] sm:$0xff]  ;;  %v1501_v26 = vmul.f32 %v4546_v59, %v7261_v24  ;;  %v3334_v24 = vld [vmem:[%s7110_s1 + $0x4b0] sm:$0xff] }
 0x339   : > { %2582 = vmatmul.mubr.f32.gmra.mrb[206].mxu0 %v2229_v33  ;;  %2807 = vmatmul.mubr.f32.gmra.mrb[238].mxu1 %v2231_v35  ;;  %v1496_v9 = vmul.f32 %v4545_v61, %v7254_v1  ;;  %v7255_v33 = vld [vmem:[#allocation70_spill] sm:$0xff]  ;;  %v7277_v21 = vld [vmem:[#allocation79_spill] sm:$0xff] }
 0x33a   : > { %2876 = vmatprep.mubr.f32.mxu0 %v1464_v37  ;;  %3101 = vmatprep.mubr.f32.mxu1 %v1466_v44  ;;  %v1498_v35 = vmul.f32 %v4545_v61, %v7255_v33  ;;  %v4447_v37 = vpack.c.bf16 %v3331_v56, %v3330_v14  ;;  %v7256_v44 = vld [vmem:[#allocation18_spill] sm:$0xff]  ;;  %v7281_v33 = vld [vmem:[#allocation81_spill] sm:$0xff] }
 0x33b   : > { %v1495_v13 = vmul.f32 %v4545_v61, %v7256_v44  ;;  %v7280_v1 = vld [vmem:[#allocation30_spill] sm:$0xff]  ;;  %v4552_v14 = vld [vmem:[%s4644_s11 + $0x78] sm:$0xff]  ;;  %v7283_v44 = vld [vmem:[#allocation84_spill] sm:$0xff] }
 0x33c   : > { %4448 = vmatprep.subr.bf16.mxu0 %v4447_v37  ;;  %v7282_v56 = vld [vmem:[#allocation33_spill] sm:$0xff] }
 0x33d   : > { %2877 = vmatmul.mubr.f32.vlgmr.msra.gmra.mrb[208].mxu0 %v1463_v53  ;;  %3102 = vmatmul.mubr.f32.vlgmr.msra.gmra.mrb[240].mxu1 %v1465_v38  ;;  %v7257_v53 = vld [vmem:[#allocation69_spill] sm:$0xff] }
 0x33e   : > { %2881 = vmatprep.mubr.f32.mxu0 %v1468_v51  ;;  %3106 = vmatprep.mubr.f32.mxu1 %v1470_v20  ;;  %v1497_v38 = vmul.f32 %v4545_v61, %v7257_v53  ;;  %v1500_v51 = vmul.f32 %v4546_v59, %v7258_v32  ;;  %v7259_v20 = vld [vmem:[#allocation72_spill] sm:$0xff] }
 0x33f   : > { %v1502_v48 = vmul.f32 %v4546_v59, %v7259_v20  ;;  %4450 = vmatpush3.bf16.msra.mxu0 %v4447_v37  ;;  %v1524_v37 = vmul.f32 %v4552_v14, %v7282_v56  ;;  %v7284_v53 = vld [vmem:[#allocation32_spill] sm:$0xff]  ;;  %v7286_v20 = vld [vmem:[#allocation35_spill] sm:$0xff] }
 0x341   : > { %2882 = vmatmul.mubr.f32.gmra.mrb[210].mxu0 %v1467_v22  ;;  %3107 = vmatmul.mubr.f32.gmra.mrb[242].mxu1 %v1469_v29  ;;  %v7260_v22 = vld [vmem:[#allocation20_spill] sm:$0xff] }
 0x342   : > { %2886 = vmatprep.mubr.f32.mxu0 %v1472_v16  ;;  %3111 = vmatprep.mubr.f32.mxu1 %v1474_v52  ;;  %v1499_v29 = vmul.f32 %v4546_v59, %v7260_v22  ;;  %v4547_v16 = vld [vmem:[%s4644_s11 + $0x50] sm:$0xff]  ;;  %v7262_v52 = vld [vmem:[#allocation23_spill] sm:$0xff]  ;;  %v7287_v22 = vld [vmem:[#allocation86_spill] sm:$0xff] }
 0x343   : > { %v1504_v62 = vmul.f32 %v4547_v16, %v7262_v52  ;;  %v1503_v10 = vmul.f32 %v4547_v16, %v7264_v27  ;;  %v7285_v59 = vld [vmem:[#allocation83_spill] sm:$0xff]  ;;  %v7288_v52 = vld [vmem:[#allocation34_spill] sm:$0xff] }
 0x344   : > { %v1525_v32 = vmul.f32 %v4552_v14, %v7285_v59  ;;  %v4554_v27 = vld [vmem:[%s4644_s11 + $0x88] sm:$0xff] }
 0x345   : > { %2887 = vmatmul.mubr.f32.gmra.mrb[212].mxu0 %v1471_v60  ;;  %3112 = vmatmul.mubr.f32.gmra.mrb[244].mxu1 %v1473_v46  ;;  %v7263_v60 = vld [vmem:[#allocation74_spill] sm:$0xff] }
 0x346   : > { %2891 = vmatprep.mubr.f32.mxu0 %v1476_v12  ;;  %3116 = vmatprep.mubr.f32.mxu1 %v1478_v57  ;;  %v1506_v46 = vmul.f32 %v4547_v16, %v7263_v60  ;;  %v7265_v12 = vld [vmem:[#allocation73_spill] sm:$0xff] }
 0x347   : > { %v1505_v57 = vmul.f32 %v4547_v16, %v7265_v12  ;;  %v7289_v60 = vld [vmem:[#allocation85_spill] sm:$0xff] }
 0x349   : > { %2892 = vmatmul.mubr.f32.gmra.mrb[214].mxu0 %v1475_v42  ;;  %3117 = vmatmul.mubr.f32.gmra.mrb[246].mxu1 %v1477_v40  ;;  %v7266_v42 = vld [vmem:[#allocation25_spill] sm:$0xff] }
 0x34a   : > { %2896 = vmatprep.mubr.f32.mxu0 %v1480_v63  ;;  %3121 = vmatprep.mubr.f32.mxu1 %v1482_v23  ;;  %v1508_v40 = vmul.f32 %v4548_v18, %v7266_v42  ;;  %v7268_v63 = vld [vmem:[#allocation24_spill] sm:$0xff] }
 0x34b   : > { %v1507_v23 = vmul.f32 %v4548_v18, %v7268_v63  ;;  %v7292_v42 = vld [vmem:[#allocation36_spill] sm:$0xff] }
 0x34c   : > { %v4555_v63 = vld [vmem:[%s4644_s11 + $0x90] sm:$0xff] }
 0x34d   : > { %2897 = vmatmul.mubr.f32.gmra.mrb[216].mxu0 %v1479_v19  ;;  %3122 = vmatmul.mubr.f32.gmra.mrb[248].mxu1 %v1481_v11  ;;  %v1509_v19 = vmul.f32 %v4548_v18, %v7269_v43  ;;  %v4549_v11 = vld [vmem:[%s4644_s11 + $0x60] sm:$0xff] }
 0x34e   : > { %2901 = vmatprep.mubr.f32.mxu0 %v1484_v54  ;;  %3126 = vmatprep.mubr.f32.mxu1 %v1486_v45  ;;  %v1512_v34 = vmul.f32 %v4549_v11, %v7270_v47  ;;  %v7271_v54 = vld [vmem:[#allocation78_spill] sm:$0xff]  ;;  %v1511_v41 = vmul.f32 %v4549_v11, %v7272_v17  ;;  %v7299_v17 = vld [vmem:[#allocation92_spill] sm:$0xff] }
 0x34f   : > { %v1514_v45 = vmul.f32 %v4549_v11, %v7271_v54  ;;  %v7296_v47 = vld [vmem:[#allocation38_spill] sm:$0xff]  ;;  %v7297_v54 = vld [vmem:[#allocation89_spill] sm:$0xff] }
 0x351   : > { %2902 = vmatmul.mubr.f32.gmra.mrb[218].mxu0 %v1483_v58  ;;  %3127 = vmatmul.mubr.f32.gmra.mrb[250].mxu1 %v1485_v39  ;;  %v3333_v58 = vld [vmem:[%s7110_s1 + $0x4a8] sm:$0xff] }
 0x352   : > { %2906 = vmatprep.mubr.f32.mxu0 %v1488_v28  ;;  %3131 = vmatprep.mubr.f32.mxu1 %v1490_v8  ;;  %v4451_v39 = vpack.c.bf16 %v3333_v58, %v3332_v0  ;;  %v7273_v28 = vld [vmem:[#allocation77_spill] sm:$0xff] }
 0x353   : > { %v1513_v8 = vmul.f32 %v4549_v11, %v7273_v28  ;;  %v4556_v0 = vld [vmem:[%s4644_s11 + $0x98] sm:$0xff]  ;;  %v3336_v28 = vld [vmem:[%s7110_s1 + $0x4c0] sm:$0xff] }
 0x354   : > { %4452 = vmatprep.subr.bf16.mxu0 %v4451_v39  ;;  %v7298_v58 = vld [vmem:[#allocation41_spill] sm:$0xff] }
 0x355   : > { %2907 = vmatmul.mubr.f32.gmra.mrb[220].mxu0 %v1487_v31  ;;  %3132 = vmatmul.mubr.f32.gmra.mrb[252].mxu1 %v1489_v6  ;;  %v7274_v31 = vld [vmem:[#allocation29_spill] sm:$0xff]  ;;  %v7275_v6 = vld [vmem:[#allocation80_spill] sm:$0xff] }
 0x356   : > { %2911 = vmatprep.mubr.f32.mxu0 %v1492_v4  ;;  %3136 = vmatprep.mubr.f32.mxu1 %v1494_v30  ;;  %v1516_v50 = vmul.f32 %v4550_v3, %v7274_v31  ;;  %v1518_v2 = vmul.f32 %v4550_v3, %v7275_v6  ;;  %v1515_v4 = vmul.f32 %v4550_v3, %v7276_v5  ;;  %v4557_v5 = vld [vmem:[%s4644_s11 + $0xa0] sm:$0xff] }
 0x357   : > { %v1517_v30 = vmul.f32 %v4550_v3, %v7277_v21  ;;  %4454 = vmatpush3.bf16.msra.mxu0 %v4451_v39  ;;  %v1540_v39 = vmul.f32 %v4556_v0, %v7298_v58  ;;  %v7300_v3 = vld [vmem:[#allocation40_spill] sm:$0xff] }
 0x358   : > { %v1539_v31 = vmul.f32 %v4556_v0, %v7300_v3  ;;  %v7316_v58 = vld [vmem:[#allocation48_spill] sm:$0xff]  ;;  %v7318_v3 = vld [vmem:[#allocation51_spill] sm:$0xff] }
 0x359   : > { %2912 = vmatmul.mubr.f32.gmra.mrb[222].mxu0 %v1491_v36  ;;  %3137 = vmatmul.mubr.f32.gmra.mrb[254].mxu1 %v1493_v25  ;;  %v7278_v36 = vld [vmem:[#allocation31_spill] sm:$0xff]  ;;  %v7279_v25 = vld [vmem:[#allocation82_spill] sm:$0xff] }
 0x35a   : > { %2916 = vmatprep.mubr.f32.mxu0 %v1496_v9  ;;  %3141 = vmatprep.mubr.f32.mxu1 %v1498_v35  ;;  %v1520_v15 = vmul.f32 %v4551_v7, %v7278_v36  ;;  %v1522_v61 = vmul.f32 %v4551_v7, %v7279_v25  ;;  %v1519_v9 = vmul.f32 %v4551_v7, %v7280_v1  ;;  %v3338_v36 = vld [vmem:[%s7110_s1 + $0x4d0] sm:$0xff]  ;;  %v7304_v25 = vld [vmem:[#allocation42_spill] sm:$0xff]  ;;  %v7305_v1 = vld [vmem:[#allocation93_spill] sm:$0xff] }
 0x35b   : > { %v1521_v35 = vmul.f32 %v4551_v7, %v7281_v33 }
 0x35d   : > { %2917 = vmatmul.mubr.f32.gmra.mrb[224].mxu0 %v1495_v13  ;;  %3142 = vmatmul.mubr.f32.gmra.mrb[0].mxu1 %v1497_v38  ;;  %v1526_v13 = vmul.f32 %v4552_v14, %v7283_v44  ;;  %v1523_v38 = vmul.f32 %v4552_v14, %v7284_v53  ;;  %v7306_v14 = vld [vmem:[#allocation45_spill] sm:$0xff]  ;;  %v3341_v53 = vld [vmem:[%s7110_s1 + $0x4e8] sm:$0xff] }
 0x35e   : > { %2921 = vmatprep.mubr.f32.mxu0 %v1500_v51  ;;  %3146 = vmatprep.mubr.f32.mxu1 %v1502_v48  ;;  %v4553_v51 = vld [vmem:[%s4644_s11 + $0x80] sm:$0xff] }
 0x35f   : > { %v1528_v48 = vmul.f32 %v4553_v51, %v7286_v20 }
 0x361   : > { %2922 = vmatmul.mubr.f32.gmra.mrb[226].mxu0 %v1499_v29  ;;  %3147 = vmatmul.mubr.f32.gmra.mrb[2].mxu1 %v1501_v26  ;;  %v1530_v29 = vmul.f32 %v4553_v51, %v7287_v22  ;;  %v3335_v26 = vld [vmem:[%s7110_s1 + $0x4b8] sm:$0xff]  ;;  %v7310_v22 = vld [vmem:[#allocation47_spill] sm:$0xff] }
 0x362   : > { %2926 = vmatprep.mubr.f32.mxu0 %v1504_v62  ;;  %3151 = vmatprep.mubr.f32.mxu1 %v1506_v46  ;;  %v4455_v16 = vpack.c.bf16 %v3335_v26, %v3334_v24  ;;  %v1527_v62 = vmul.f32 %v4553_v51, %v7288_v52  ;;  %v1529_v46 = vmul.f32 %v4553_v51, %v7289_v60  ;;  %v7311_v24 = vld [vmem:[#allocation98_spill] sm:$0xff] }
 0x364   : > { %4456 = vmatprep.subr.bf16.mxu0 %v4455_v16 }
 0x365   : > { %2927 = vmatmul.mubr.f32.gmra.mrb[228].mxu0 %v1503_v10  ;;  %3152 = vmatmul.mubr.f32.gmra.mrb[4].mxu1 %v1505_v57  ;;  %v7290_v10 = vld [vmem:[#allocation37_spill] sm:$0xff]  ;;  %v7291_v57 = vld [vmem:[#allocation88_spill] sm:$0xff] }
 0x366   : > { %2931 = vmatprep.mubr.f32.mxu0 %v1508_v40  ;;  %3156 = vmatprep.mubr.f32.mxu1 %v1510_v55  ;;  %v1532_v12 = vmul.f32 %v4554_v27, %v7290_v10  ;;  %v1534_v18 = vmul.f32 %v4554_v27, %v7291_v57  ;;  %v1531_v40 = vmul.f32 %v4554_v27, %v7292_v42  ;;  %v3343_v10 = vld [vmem:[%s7110_s1 + $0x4f8] sm:$0xff] }
 0x367   : > { %v1533_v55 = vmul.f32 %v4554_v27, %v7293_v49  ;;  %4458 = vmatpush3.bf16.msra.mxu0 %v4455_v16  ;;  %v3342_v27 = vld [vmem:[%s7110_s1 + $0x4f0] sm:$0xff]  ;;  %v4560_v49 = vld [vmem:[%s4644_s11 + $0xb8] sm:$0xff] }
 0x369   : > { %2932 = vmatmul.mubr.f32.gmra.mrb[230].mxu0 %v1507_v23  ;;  %3157 = vmatmul.mubr.f32.gmra.mrb[6].mxu1 %v1509_v19  ;;  %v7294_v23 = vld [vmem:[#allocation39_spill] sm:$0xff]  ;;  %v7295_v19 = vld [vmem:[#allocation90_spill] sm:$0xff] }
 0x36a   : > { %2936 = vmatprep.mubr.f32.mxu0 %v1512_v34  ;;  %3161 = vmatprep.mubr.f32.mxu1 %v1514_v45  ;;  %v1536_v43 = vmul.f32 %v4555_v63, %v7294_v23  ;;  %v1538_v11 = vmul.f32 %v4555_v63, %v7295_v19  ;;  %v1535_v34 = vmul.f32 %v4555_v63, %v7296_v47  ;;  %v7315_v23 = vld [vmem:[#allocation100_spill] sm:$0xff] }
 0x36b   : > { %v1537_v45 = vmul.f32 %v4555_v63, %v7297_v54 }
 0x36d   : > { %2937 = vmatmul.mubr.f32.gmra.mrb[232].mxu0 %v1511_v41  ;;  %3162 = vmatmul.mubr.f32.gmra.mrb[8].mxu1 %v1513_v8  ;;  %v1542_v41 = vmul.f32 %v4556_v0, %v7299_v17  ;;  %v3337_v8 = vld [vmem:[%s7110_s1 + $0x4c8] sm:$0xff] }
 0x36e   : > { %2941 = vmatprep.mubr.f32.mxu0 %v1516_v50  ;;  %3166 = vmatprep.mubr.f32.mxu1 %v1518_v2  ;;  %v7301_v50 = vld [vmem:[#allocation91_spill] sm:$0xff]  ;;  %v4459_v2 = vpack.c.bf16 %v3337_v8, %v3336_v28  ;;  %v4561_v8 = vld [vmem:[%s4644_s11 + $0xc0] sm:$0xff] }
 0x36f   : > { %v1541_v6 = vmul.f32 %v4556_v0, %v7301_v50  ;;  %v3345_v0 = vld [vmem:[%s7110_s1 + $0x508] sm:$0xff]  ;;  %v7319_v50 = vld [vmem:[#allocation102_spill] sm:$0xff] }
 0x370   : > { %4460 = vmatprep.subr.bf16.mxu0 %v4459_v2  ;;  %v7317_v17 = vld [vmem:[#allocation99_spill] sm:$0xff] }
 0x371   : > { %2942 = vmatmul.mubr.f32.gmra.mrb[234].mxu0 %v1515_v4  ;;  %3167 = vmatmul.mubr.f32.gmra.mrb[10].mxu1 %v1517_v30  ;;  %v7302_v4 = vld [vmem:[#allocation43_spill] sm:$0xff]  ;;  %v7303_v30 = vld [vmem:[#allocation94_spill] sm:$0xff] }
 0x372   : > { %2946 = vmatprep.mubr.f32.mxu0 %v1520_v15  ;;  %3171 = vmatprep.mubr.f32.mxu1 %v1522_v61  ;;  %v1544_v21 = vmul.f32 %v4557_v5, %v7302_v4  ;;  %v1546_v7 = vmul.f32 %v4557_v5, %v7303_v30  ;;  %v3339_v15 = vld [vmem:[%s7110_s1 + $0x4d8] sm:$0xff]  ;;  %v1543_v61 = vmul.f32 %v4557_v5, %v7304_v25 }
 0x373   : > { %v4463_v33 = vpack.c.bf16 %v3339_v15, %v3338_v36  ;;  %4462 = vmatpush3.bf16.msra.mxu0 %v4459_v2  ;;  %v7321_v15 = vld [vmem:[#allocation101_spill] sm:$0xff] }
 0x374   : > { %v1561_v25 = vmul.f32 %v4561_v8, %v7321_v15  ;;  %v7339_v15 = vld [vmem:[#allocation112_spill] sm:$0xff] }
 0x375   : > { %2947 = vmatmul.mubr.f32.gmra.mrb[236].mxu0 %v1519_v9  ;;  %3172 = vmatmul.mubr.f32.gmra.mrb[12].mxu1 %v1521_v35  ;;  %v1545_v9 = vmul.f32 %v4557_v5, %v7305_v1  ;;  %v4558_v35 = vld [vmem:[%s4644_s11 + $0xa8] sm:$0xff]  ;;  %v7322_v1 = vld [vmem:[#allocation53_spill] sm:$0xff] }
 0x376   : > { %2951 = vmatprep.mubr.f32.mxu0 %v1524_v37  ;;  %3176 = vmatprep.mubr.f32.mxu1 %v1526_v13  ;;  %v1548_v56 = vmul.f32 %v4558_v35, %v7306_v14  ;;  %v7307_v37 = vld [vmem:[#allocation96_spill] sm:$0xff]  ;;  %v3340_v13 = vld [vmem:[%s7110_s1 + $0x4e0] sm:$0xff] }
 0x377   : > { %v1550_v44 = vmul.f32 %v4558_v35, %v7307_v37  ;;  %4464 = vmatprep.subr.bf16.mxu0 %v4463_v33  ;;  %v4467_v20 = vpack.c.bf16 %v3341_v53, %v3340_v13  ;;  %v7324_v53 = vld [vmem:[#allocation52_spill] sm:$0xff] }
 0x378   : > { %4466 = vmatpush3.bf16.msra.mxu0 %v4463_v33  ;;  %v7323_v33 = vld [vmem:[#allocation104_spill] sm:$0xff] }
 0x379   : > { %2952 = vmatmul.mubr.f32.gmra.mrb[238].mxu0 %v1523_v38  ;;  %3177 = vmatmul.mubr.f32.gmra.mrb[14].mxu1 %v1525_v32  ;;  %v7308_v38 = vld [vmem:[#allocation44_spill] sm:$0xff]  ;;  %v7309_v32 = vld [vmem:[#allocation95_spill] sm:$0xff] }
 0x37a   : > { %2956 = vmatprep.mubr.f32.mxu0 %v1528_v48  ;;  %3181 = vmatprep.mubr.f32.mxu1 %v1530_v29  ;;  %v1547_v59 = vmul.f32 %v4558_v35, %v7308_v38  ;;  %v1549_v51 = vmul.f32 %v4558_v35, %v7309_v32  ;;  %v4559_v48 = vld [vmem:[%s4644_s11 + $0xb0] sm:$0xff] }
 0x37b   : > { %v1552_v29 = vmul.f32 %v4559_v48, %v7310_v22  ;;  %v1554_v26 = vmul.f32 %v4559_v48, %v7311_v24  ;;  %4468 = vmatprep.subr.bf16.mxu0 %v4467_v20  ;;  %v7327_v22 = vld [vmem:[#allocation106_spill] sm:$0xff] }
 0x37c   : > { %4470 = vmatpush3.bf16.msra.mxu0 %v4467_v20  ;;  %v7326_v20 = vld [vmem:[#allocation55_spill] sm:$0xff] }
 0x37d   : > { %2957 = vmatmul.mubr.f32.gmra.mrb[240].mxu0 %v1527_v62  ;;  %3182 = vmatmul.mubr.f32.gmra.mrb[16].mxu1 %v1529_v46 }
 0x37e   : > { %2961 = vmatprep.mubr.f32.mxu0 %v1532_v12  ;;  %3186 = vmatprep.mubr.f32.mxu1 %v1534_v18  ;;  %v7312_v12 = vld [vmem:[#allocation46_spill] sm:$0xff]  ;;  %v7313_v18 = vld [vmem:[#allocation97_spill] sm:$0xff] }
 0x37f   : > { %v1551_v57 = vmul.f32 %v4559_v48, %v7312_v12  ;;  %v1553_v42 = vmul.f32 %v4559_v48, %v7313_v18  ;;  %v7330_v18 = vld [vmem:[#allocation57_spill] sm:$0xff] }
 0x381   : > { %2962 = vmatmul.mubr.f32.gmra.mrb[242].mxu0 %v1531_v40  ;;  %3187 = vmatmul.mubr.f32.gmra.mrb[18].mxu1 %v1533_v55  ;;  %v4471_v40 = vpack.c.bf16 %v3343_v10, %v3342_v27  ;;  %v7314_v55 = vld [vmem:[#allocation49_spill] sm:$0xff] }
 0x382   : > { %2966 = vmatprep.mubr.f32.mxu0 %v1536_v43  ;;  %3191 = vmatprep.mubr.f32.mxu1 %v1538_v11  ;;  %v1556_v63 = vmul.f32 %v4560_v49, %v7314_v55  ;;  %v1558_v43 = vmul.f32 %v4560_v49, %v7315_v23  ;;  %v7329_v10 = vld [vmem:[#allocation105_spill] sm:$0xff] }
 0x383   : > { %4472 = vmatprep.subr.bf16.mxu0 %v4471_v40 }
 0x384   : > { %4474 = vmatpush3.bf16.msra.mxu0 %v4471_v40  ;;  %v7331_v40 = vld [vmem:[#allocation108_spill] sm:$0xff] }
 0x385   : > { %2967 = vmatmul.mubr.f32.gmra.mrb[244].mxu0 %v1535_v34  ;;  %3192 = vmatmul.mubr.f32.gmra.mrb[20].mxu1 %v1537_v45  ;;  %v3344_v45 = vld [vmem:[%s7110_s1 + $0x500] sm:$0xff] }
 0x386   : > { %2971 = vmatprep.mubr.f32.mxu0 %v1540_v39  ;;  %3196 = vmatprep.mubr.f32.mxu1 %v1542_v41  ;;  %v1555_v39 = vmul.f32 %v4560_v49, %v7316_v58  ;;  %v1557_v41 = vmul.f32 %v4560_v49, %v7317_v17  ;;  %v4475_v28 = vpack.c.bf16 %v3345_v0, %v3344_v45  ;;  %v4565_v0 = vld [vmem:[%s4644_s11 + $0xe0] sm:$0xff]  ;;  %v7334_v58 = vld [vmem:[#allocation59_spill] sm:$0xff] }
 0x387   : > { %v7335_v17 = vld [vmem:[#allocation110_spill] sm:$0xff] }
 0x388   : > { %4476 = vmatprep.subr.bf16.mxu0 %v4475_v28 }
 0x389   : > { %2972 = vmatmul.mubr.f32.gmra.mrb[246].mxu0 %v1539_v31  ;;  %3197 = vmatmul.mubr.f32.gmra.mrb[22].mxu1 %v1541_v6  ;;  %v1560_v31 = vmul.f32 %v4561_v8, %v7318_v3  ;;  %v1562_v6 = vmul.f32 %v4561_v8, %v7319_v50 }
 0x38a   : > { %2976 = vmatprep.mubr.f32.mxu0 %v1544_v21  ;;  %3201 = vmatprep.mubr.f32.mxu1 %v1546_v7  ;;  %v7320_v7 = vld [vmem:[#allocation50_spill] sm:$0xff] }
 0x38b   : > { %v1559_v36 = vmul.f32 %v4561_v8, %v7320_v7  ;;  %4478 = vmatpush3.bf16.msra.mxu0 %v4475_v28  ;;  %v7338_v7 = vld [vmem:[#allocation61_spill] sm:$0xff] }
 0x38d   : > { %2977 = vmatmul.mubr.f32.gmra.mrb[248].mxu0 %v1543_v61  ;;  %3202 = vmatmul.mubr.f32.gmra.mrb[24].mxu1 %v1545_v9  ;;  %v4562_v61 = vld [vmem:[%s4644_s11 + $0xc8] sm:$0xff] }
 0x38e   : > { %2981 = vmatprep.mubr.f32.mxu0 %v1548_v56  ;;  %3206 = vmatprep.mubr.f32.mxu1 %v1550_v44  ;;  %v1564_v9 = vmul.f32 %v4562_v61, %v7322_v1  ;;  %v1566_v35 = vmul.f32 %v4562_v61, %v7323_v33  ;;  %v1563_v38 = vmul.f32 %v4562_v61, %v7324_v53  ;;  %v4567_v53 = vld [vmem:[%s4644_s11 + $0xf0] sm:$0xff] }
 0x390   : > { %v2428_v16 = vpop.f32.mrb[144].mxu0  ;;  %v2653_v52 = vpop.f32.mrb[176].mxu1 }
 0x391   : > { %v6838_v62 = vadd.f32 %v2653_v52, %v2428_v16  ;;  %v2430_v60 = vpop.f32.mrb[145].mxu0  ;;  %v2655_v46 = vpop.f32.mrb[177].mxu1  ;;  %2982 = vmatmul.mubr.f32.gmra.mrb[250].mxu0 %v1547_v59  ;;  %3207 = vmatmul.mubr.f32.gmra.mrb[26].mxu1 %v1549_v51  ;;  %v7325_v59 = vld [vmem:[#allocation103_spill] sm:$0xff]  ;;  %v4563_v51 = vld [vmem:[%s4644_s11 + $0xd0] sm:$0xff] }
 0x392   : > { %2986 = vmatprep.mubr.f32.mxu0 %v1552_v29  ;;  %3211 = vmatprep.mubr.f32.mxu1 %v1554_v26  ;;  %v1565_v32 = vmul.f32 %v4562_v61, %v7325_v59  ;;  %v1568_v48 = vmul.f32 %v4563_v51, %v7326_v20  ;;  %v1570_v29 = vmul.f32 %v4563_v51, %v7327_v22  ;;  %v7328_v46 = vld [vmem:[#allocation54_spill] sm:$0xff] }
 0x393   : > { %v1567_v27 = vmul.f32 %v4563_v51, %v7328_v46  ;;  %v1569_v12 = vmul.f32 %v4563_v51, %v7329_v10  ;;  %v7346_v10 = vld [vmem:[#allocation65_spill] sm:$0xff] }
 0x394   : > { %v2433_v19 = vpop.f32.mrb[146].mxu0  ;;  %v2658_v11 = vpop.f32.mrb[178].mxu1 }
 0x395   : > { %v6851_v47 = vadd.f32 %v2658_v11, %v2433_v19  ;;  %v2435_v34 = vpop.f32.mrb[147].mxu0  ;;  %v2660_v54 = vpop.f32.mrb[179].mxu1  ;;  %2987 = vmatmul.mubr.f32.gmra.mrb[252].mxu0 %v1551_v57  ;;  %3212 = vmatmul.mubr.f32.gmra.mrb[28].mxu1 %v1553_v42  ;;  %v4564_v57 = vld [vmem:[%s4644_s11 + $0xd8] sm:$0xff]  ;;  %v7332_v11 = vld [vmem:[#allocation56_spill] sm:$0xff] }
 0x396   : > { %2991 = vmatprep.mubr.f32.mxu0 %v1556_v63  ;;  %3216 = vmatprep.mubr.f32.mxu1 %v1558_v43  ;;  %v1572_v42 = vmul.f32 %v4564_v57, %v7330_v18  ;;  %v1574_v49 = vmul.f32 %v4564_v57, %v7331_v40  ;;  %v1571_v34 = vmul.f32 %v4564_v57, %v7332_v11  ;;  %v7333_v54 = vld [vmem:[#allocation107_spill] sm:$0xff] }
 0x397   : > { %v1573_v45 = vmul.f32 %v4564_v57, %v7333_v54  ;;  %v7347_v57 = vld [vmem:[#allocation116_spill] sm:$0xff]  ;;  %v7349_v11 = vld [vmem:[#allocation115_spill] sm:$0xff] }
 0x398   : > { %v2438_v2 = vpop.f32.mrb[148].mxu0  ;;  %v2663_v5 = vpop.f32.mrb[180].mxu1 }
 0x399   : > { %v6864_v4 = vadd.f32 %v2663_v5, %v2438_v2  ;;  %v2440_v21 = vpop.f32.mrb[149].mxu0  ;;  %v2665_v30 = vpop.f32.mrb[181].mxu1  ;;  %2992 = vmatmul.mubr.f32.gmra.mrb[254].mxu0 %v1555_v39  ;;  %3217 = vmatmul.mubr.f32.gmra.mrb[30].mxu1 %v1557_v41  ;;  %v1576_v39 = vmul.f32 %v4565_v0, %v7334_v58  ;;  %v1578_v41 = vmul.f32 %v4565_v0, %v7335_v17  ;;  %v7337_v5 = vld [vmem:[#allocation109_spill] sm:$0xff] }
 0x39a   : > { %2996 = vmatprep.mubr.f32.mxu0 %v1560_v31  ;;  %3221 = vmatprep.mubr.f32.mxu1 %v1562_v6  ;;  %v7336_v6 = vld [vmem:[#allocation58_spill] sm:$0xff]  ;;  %v1577_v21 = vmul.f32 %v4565_v0, %v7337_v5  ;;  %v4566_v30 = vld [vmem:[%s4644_s11 + $0xe8] sm:$0xff] }
 0x39b   : > { %v1575_v2 = vmul.f32 %v4565_v0, %v7336_v6 }
 0x39c   : > { %v2443_v14 = vpop.f32.mrb[150].mxu0  ;;  %v2668_v56 = vpop.f32.mrb[182].mxu1 }
 0x39d   : > { %v6871_v37 = vadd.f32 %v2668_v56, %v2443_v14  ;;  %v2445_v44 = vpop.f32.mrb[151].mxu0  ;;  %v2670_v13 = vpop.f32.mrb[183].mxu1  ;;  %2997 = vmatmul.mubr.f32.gmra.mrb[0].mxu0 %v1559_v36  ;;  %3222 = vmatmul.mubr.f32.gmra.mrb[32].mxu1 %v1561_v25  ;;  %v1580_v36 = vmul.f32 %v4566_v30, %v7338_v7  ;;  %v1582_v25 = vmul.f32 %v4566_v30, %v7339_v15  ;;  %v7340_v14 = vld [vmem:[#allocation60_spill] sm:$0xff] }
 0x39e   : > { %3001 = vmatprep.mubr.f32.mxu0 %v1564_v9  ;;  %3226 = vmatprep.mubr.f32.mxu1 %v1566_v35  ;;  %v1579_v56 = vmul.f32 %v4566_v30, %v7340_v14  ;;  %v7341_v44 = vld [vmem:[#allocation111_spill] sm:$0xff] }
 0x39f   : > { %v1581_v13 = vmul.f32 %v4566_v30, %v7341_v44 }
 0x3a0   : > { %v2448_v24 = vpop.f32.mrb[152].mxu0  ;;  %v2673_v26 = vpop.f32.mrb[184].mxu1 }
 0x3a1   : > { %v6878_v16 = vadd.f32 %v2673_v26, %v2448_v24  ;;  %v2450_v52 = vpop.f32.mrb[153].mxu0  ;;  %v2675_v60 = vpop.f32.mrb[185].mxu1  ;;  %3002 = vmatmul.mubr.f32.gmra.mrb[2].mxu0 %v1563_v38  ;;  %3227 = vmatmul.mubr.f32.gmra.mrb[34].mxu1 %v1565_v32  ;;  %v7342_v38 = vld [vmem:[#allocation63_spill] sm:$0xff]  ;;  %v7343_v32 = vld [vmem:[#allocation114_spill] sm:$0xff] }
 0x3a2   : > { %3006 = vmatprep.mubr.f32.mxu0 %v1568_v48  ;;  %3231 = vmatprep.mubr.f32.mxu1 %v1570_v29  ;;  %v1584_v59 = vmul.f32 %v4567_v53, %v7342_v38  ;;  %v1586_v51 = vmul.f32 %v4567_v53, %v7343_v32  ;;  %v7344_v26 = vld [vmem:[#allocation62_spill] sm:$0xff]  ;;  %v7345_v60 = vld [vmem:[#allocation113_spill] sm:$0xff] }
 0x3a3   : > { %v1583_v52 = vmul.f32 %v4567_v53, %v7344_v26  ;;  %v1585_v46 = vmul.f32 %v4567_v53, %v7345_v60 }
 0x3a4   : > { %v2453_v55 = vpop.f32.mrb[154].mxu0  ;;  %v2678_v63 = vpop.f32.mrb[186].mxu1 }
 0x3a5   : > { %v6885_v23 = vadd.f32 %v2678_v63, %v2453_v55  ;;  %v2455_v43 = vpop.f32.mrb[155].mxu0  ;;  %v2680_v19 = vpop.f32.mrb[187].mxu1  ;;  %3007 = vmatmul.mubr.f32.gmra.mrb[4].mxu0 %v1567_v27  ;;  %3232 = vmatmul.mubr.f32.gmra.mrb[36].mxu1 %v1569_v12  ;;  %v4568_v27 = vld [vmem:[%s4644_s11 + $0xf8] sm:$0xff] }
 0x3a6   : > { %3011 = vmatprep.mubr.f32.mxu0 %v1572_v42  ;;  %3236 = vmatprep.mubr.f32.mxu1 %v1574_v49  ;;  %v1588_v12 = vmul.f32 %v4568_v27, %v7346_v10  ;;  %v1590_v18 = vmul.f32 %v4568_v27, %v7347_v57  ;;  %v7348_v43 = vld [vmem:[#allocation64_spill] sm:$0xff] }
 0x3a7   : > { %v1587_v19 = vmul.f32 %v4568_v27, %v7348_v43 }
 0x3a8   : > { %v2458_v28 = vpop.f32.mrb[156].mxu0  ;;  %v2683_v8 = vpop.f32.mrb[188].mxu1 }
 0x3a9   : > { %v6892_v3 = vadd.f32 %v2683_v8, %v2458_v28  ;;  %v2460_v31 = vpop.f32.mrb[157].mxu0  ;;  %v2685_v50 = vpop.f32.mrb[189].mxu1  ;;  %3012 = vmatmul.mubr.f32.gmra.mrb[6].mxu0 %v1571_v34  ;;  %3237 = vmatmul.mubr.f32.gmra.mrb[38].mxu1 %v1573_v45  ;;  %v1589_v34 = vmul.f32 %v4568_v27, %v7349_v11 }
 0x3aa   : > { %3016 = vmatprep.mubr.f32.mxu0 %v1576_v39  ;;  %3241 = vmatprep.mubr.f32.mxu1 %v1578_v41 }
 0x3ac   : > { %v2463_v61 = vpop.f32.mrb[158].mxu0  ;;  %v2688_v1 = vpop.f32.mrb[190].mxu1 }
 0x3ad   : > { %v6899_v9 = vadd.f32 %v2688_v1, %v2463_v61  ;;  %v2465_v33 = vpop.f32.mrb[159].mxu0  ;;  %v2690_v35 = vpop.f32.mrb[191].mxu1  ;;  %3017 = vmatmul.mubr.f32.gmra.mrb[8].mxu0 %v1575_v2  ;;  %3242 = vmatmul.mubr.f32.gmra.mrb[40].mxu1 %v1577_v21 }
 0x3ae   : > { %3021 = vmatprep.mubr.f32.mxu0 %v1580_v36  ;;  %3246 = vmatprep.mubr.f32.mxu1 %v1582_v25 }
 0x3b0   : > { %v2468_v20 = vpop.f32.mrb[160].mxu0  ;;  %v2693_v48 = vpop.f32.mrb[192].mxu1 }
 0x3b1   : > { %v6906_v22 = vadd.f32 %v2693_v48, %v2468_v20  ;;  %v2470_v29 = vpop.f32.mrb[161].mxu0  ;;  %v2695_v24 = vpop.f32.mrb[193].mxu1  ;;  %3022 = vmatmul.mubr.f32.gmra.mrb[10].mxu0 %v1579_v56  ;;  %3247 = vmatmul.mubr.f32.gmra.mrb[42].mxu1 %v1581_v13 }
 0x3b2   : > { %3026 = vmatprep.mubr.f32.mxu0 %v1584_v59  ;;  %3251 = vmatprep.mubr.f32.mxu1 %v1586_v51 }
 0x3b4   : > { %v2473_v42 = vpop.f32.mrb[162].mxu0  ;;  %v2698_v40 = vpop.f32.mrb[194].mxu1 }
 0x3b5   : > { %v6913_v49 = vadd.f32 %v2698_v40, %v2473_v42  ;;  %v2475_v55 = vpop.f32.mrb[163].mxu0  ;;  %v2700_v63 = vpop.f32.mrb[195].mxu1  ;;  %3027 = vmatmul.mubr.f32.gmra.mrb[12].mxu0 %v1583_v52  ;;  %3252 = vmatmul.mubr.f32.gmra.mrb[44].mxu1 %v1585_v46 }
 0x3b6   : > { %3031 = vmatprep.mubr.f32.mxu0 %v1588_v12  ;;  %3256 = vmatprep.mubr.f32.mxu1 %v1590_v18 }
 0x3b8   : > { %v2478_v54 = vpop.f32.mrb[164].mxu0  ;;  %v2703_v45 = vpop.f32.mrb[196].mxu1 }
 0x3b9   : > { %v6917_v0 = vadd.f32 %v2703_v45, %v2478_v54  ;;  %v2480_v58 = vpop.f32.mrb[165].mxu0  ;;  %v2705_v39 = vpop.f32.mrb[197].mxu1  ;;  %3032 = vmatmul.mubr.f32.gmra.mrb[14].mxu0 %v1587_v19  ;;  %3257 = vmatmul.mubr.f32.gmra.mrb[46].mxu1 %v1589_v34 }
 0x3bc   : > { %v2483_v17 = vpop.f32.mrb[166].mxu0  ;;  %v2708_v41 = vpop.f32.mrb[198].mxu1 }
 0x3bd   : > { %v6919_v28 = vadd.f32 %v2708_v41, %v2483_v17  ;;  %v2485_v8 = vpop.f32.mrb[167].mxu0  ;;  %v2710_v31 = vpop.f32.mrb[199].mxu1 }
 0x3c0   : > { %v2488_v50 = vpop.f32.mrb[168].mxu0  ;;  %v2713_v6 = vpop.f32.mrb[200].mxu1 }
 0x3c1   : > { %v6921_v2 = vadd.f32 %v2713_v6, %v2488_v50  ;;  %v2490_v5 = vpop.f32.mrb[169].mxu0  ;;  %v2715_v21 = vpop.f32.mrb[201].mxu1 }
 0x3c4   : > { %v2493_v30 = vpop.f32.mrb[170].mxu0  ;;  %v2718_v7 = vpop.f32.mrb[202].mxu1 }
 0x3c5   : > { %v6923_v36 = vadd.f32 %v2718_v7, %v2493_v30  ;;  %v2495_v15 = vpop.f32.mrb[171].mxu0  ;;  %v2720_v25 = vpop.f32.mrb[203].mxu1 }
 0x3c8   : > { %v2498_v61 = vpop.f32.mrb[172].mxu0  ;;  %v2723_v1 = vpop.f32.mrb[204].mxu1 }
 0x3c9   : > { %v6925_v33 = vadd.f32 %v2723_v1, %v2498_v61  ;;  %v2500_v35 = vpop.f32.mrb[173].mxu0  ;;  %v2725_v14 = vpop.f32.mrb[205].mxu1 }
 0x3cc   : > { %v2503_v56 = vpop.f32.mrb[174].mxu0  ;;  %v2728_v44 = vpop.f32.mrb[206].mxu1 }
 0x3cd   : > { %v6927_v13 = vadd.f32 %v2728_v44, %v2503_v56  ;;  %v2505_v53 = vpop.f32.mrb[175].mxu0  ;;  %v2730_v38 = vpop.f32.mrb[207].mxu1 }
 0x3d0   : > { %v2508_v59 = vpop.f32.mrb[176].mxu0  ;;  %v2733_v32 = vpop.f32.mrb[208].mxu1 }
 0x3d1   : > { %v6929_v51 = vadd.f32 %v2733_v32, %v2508_v59  ;;  %v2510_v20 = vpop.f32.mrb[177].mxu0  ;;  %v2735_v48 = vpop.f32.mrb[209].mxu1 }
 0x3d4   : > { %v2513_v29 = vpop.f32.mrb[178].mxu0  ;;  %v2738_v24 = vpop.f32.mrb[210].mxu1 }
 0x3d5   : > { %v6931_v26 = vadd.f32 %v2738_v24, %v2513_v29  ;;  %v2515_v52 = vpop.f32.mrb[179].mxu0  ;;  %v2740_v60 = vpop.f32.mrb[211].mxu1 }
 0x3d8   : > { %v2518_v46 = vpop.f32.mrb[180].mxu0  ;;  %v2743_v27 = vpop.f32.mrb[212].mxu1 }
 0x3d9   : > { %v6933_v10 = vadd.f32 %v2743_v27, %v2518_v46  ;;  %v2520_v12 = vpop.f32.mrb[181].mxu0  ;;  %v2745_v57 = vpop.f32.mrb[213].mxu1 }
 0x3dc   : > { %v2523_v18 = vpop.f32.mrb[182].mxu0  ;;  %v2748_v42 = vpop.f32.mrb[214].mxu1 }
 0x3dd   : > { %v6935_v40 = vadd.f32 %v2748_v42, %v2523_v18  ;;  %v2525_v55 = vpop.f32.mrb[183].mxu0  ;;  %v2750_v63 = vpop.f32.mrb[215].mxu1 }
 0x3e0   : > { %v2528_v43 = vpop.f32.mrb[184].mxu0  ;;  %v2753_v19 = vpop.f32.mrb[216].mxu1 }
 0x3e1   : > { %v6937_v11 = vadd.f32 %v2753_v19, %v2528_v43  ;;  %v2530_v34 = vpop.f32.mrb[185].mxu0  ;;  %v2755_v54 = vpop.f32.mrb[217].mxu1 }
 0x3e4   : > { %v2533_v45 = vpop.f32.mrb[186].mxu0  ;;  %v2758_v58 = vpop.f32.mrb[218].mxu1 }
 0x3e5   : > { %v6939_v39 = vadd.f32 %v2758_v58, %v2533_v45  ;;  %v2535_v17 = vpop.f32.mrb[187].mxu0  ;;  %v2760_v41 = vpop.f32.mrb[219].mxu1 }
 0x3e8   : > { %v2538_v8 = vpop.f32.mrb[188].mxu0  ;;  %v2763_v31 = vpop.f32.mrb[220].mxu1 }
 0x3e9   : > { %v6941_v50 = vadd.f32 %v2763_v31, %v2538_v8  ;;  %v2540_v6 = vpop.f32.mrb[189].mxu0  ;;  %v2765_v5 = vpop.f32.mrb[221].mxu1 }
 0x3ec   : > { %v2543_v21 = vpop.f32.mrb[190].mxu0  ;;  %v2768_v30 = vpop.f32.mrb[222].mxu1 }
 0x3ed   : > { %v6943_v7 = vadd.f32 %v2768_v30, %v2543_v21  ;;  %v2545_v15 = vpop.f32.mrb[191].mxu0  ;;  %v2770_v25 = vpop.f32.mrb[223].mxu1 }
 0x3f0   : > { %v2548_v61 = vpop.f32.mrb[192].mxu0  ;;  %v2773_v1 = vpop.f32.mrb[224].mxu1 }
 0x3f1   : > { %v6945_v35 = vadd.f32 %v2773_v1, %v2548_v61  ;;  %v2550_v14 = vpop.f32.mrb[193].mxu0  ;;  %v2775_v56 = vpop.f32.mrb[225].mxu1 }
 0x3f4   : > { %v2553_v44 = vpop.f32.mrb[194].mxu0  ;;  %v2778_v53 = vpop.f32.mrb[226].mxu1 }
 0x3f5   : > { %v6947_v38 = vadd.f32 %v2778_v53, %v2553_v44  ;;  %v2555_v59 = vpop.f32.mrb[195].mxu0  ;;  %v2780_v32 = vpop.f32.mrb[227].mxu1  ;;  %v6965_v53 = vld [vmem:[%s7110_s1 + $0x488] ss:$0 sm:$0xff] }
 0x3f8   : > { %v2558_v20 = vpop.f32.mrb[196].mxu0  ;;  %v2783_v48 = vpop.f32.mrb[228].mxu1 }
 0x3f9   : > { %v6949_v29 = vadd.f32 %v2783_v48, %v2558_v20  ;;  %v2560_v24 = vpop.f32.mrb[197].mxu0  ;;  %v2785_v52 = vpop.f32.mrb[229].mxu1 }
 0x3fc   : > { %v2563_v60 = vpop.f32.mrb[198].mxu0  ;;  %v2788_v46 = vpop.f32.mrb[230].mxu1 }
 0x3fd   : > { %v6951_v27 = vadd.f32 %v2788_v46, %v2563_v60  ;;  %v2565_v12 = vpop.f32.mrb[199].mxu0  ;;  %v2790_v57 = vpop.f32.mrb[231].mxu1 }
 0x400   : > { %v2568_v18 = vpop.f32.mrb[200].mxu0  ;;  %v2793_v42 = vpop.f32.mrb[232].mxu1 }
 0x401   : > { %v6953_v55 = vadd.f32 %v2793_v42, %v2568_v18  ;;  %v2570_v63 = vpop.f32.mrb[201].mxu0  ;;  %v2795_v43 = vpop.f32.mrb[233].mxu1 }
 0x404   : > { %v2573_v19 = vpop.f32.mrb[202].mxu0  ;;  %v2798_v34 = vpop.f32.mrb[234].mxu1 }
 0x405   : > { %v6955_v54 = vadd.f32 %v2798_v34, %v2573_v19  ;;  %v2575_v45 = vpop.f32.mrb[203].mxu0  ;;  %v2800_v58 = vpop.f32.mrb[235].mxu1 }
 0x408   : > { %v2578_v17 = vpop.f32.mrb[204].mxu0  ;;  %v2803_v41 = vpop.f32.mrb[236].mxu1 }
 0x409   : > { %v6957_v8 = vadd.f32 %v2803_v41, %v2578_v17  ;;  %v2580_v31 = vpop.f32.mrb[205].mxu0  ;;  %v2805_v6 = vpop.f32.mrb[237].mxu1 }
 0x40c   : > { %v2583_v5 = vpop.f32.mrb[206].mxu0  ;;  %v2808_v21 = vpop.f32.mrb[238].mxu1 }
 0x40d   : > { %v6959_v30 = vadd.f32 %v2808_v21, %v2583_v5  ;;  %v2585_v15 = vpop.f32.mrb[207].mxu0  ;;  %v2810_v25 = vpop.f32.mrb[239].mxu1 }
 0x410   : > { %v2878_v61 = vpop.f32.mrb[208].mxu0  ;;  %v3103_v1 = vpop.f32.mrb[240].mxu1 }
 0x411   : > { %v2879_v14 = vadd.f32 %v2878_v61, %v6838_v62  ;;  %v2880_v56 = vpop.f32.mrb[209].mxu0  ;;  %v3105_v44 = vpop.f32.mrb[241].mxu1 }
 0x413   : > { %v3104_v59 = vadd.f32 %v3103_v1, %v2879_v14 }
 0x414   : > { %v2883_v32 = vpop.f32.mrb[210].mxu0  ;;  %v3108_v20 = vpop.f32.mrb[242].mxu1 }
 0x415   : > { %v3266_v48 = vadd.f32 %v6965_v53, %v3104_v59  ;;  %v2884_v24 = vadd.f32 %v2883_v32, %v6851_v47  ;;  %v2885_v52 = vpop.f32.mrb[211].mxu0  ;;  %v3110_v60 = vpop.f32.mrb[243].mxu1 }
 0x417   : > { %v3298_v46 = vmax.f32 %v3266_v48, 0.0  ;;  %v3109_v12 = vadd.f32 %v3108_v20, %v2884_v24 }
 0x418   : > { %v2888_v57 = vpop.f32.mrb[212].mxu0  ;;  %v3113_v62 = vpop.f32.mrb[244].mxu1 }
 0x419   : > { %v3267_v18 = vadd.f32 %v6965_v53, %v3109_v12  ;;  %v2889_v42 = vadd.f32 %v2888_v57, %v6864_v4  ;;  %v2890_v63 = vpop.f32.mrb[213].mxu0  ;;  %v3115_v43 = vpop.f32.mrb[245].mxu1  ;;  %4015 = vmatprep.mubr.f32.mxu0 %v3298_v46 }
 0x41b   : > { %v3299_v19 = vmax.f32 %v3267_v18, 0.0  ;;  %v3114_v34 = vadd.f32 %v3113_v62, %v2889_v42 }
 0x41c   : > { %v2893_v45 = vpop.f32.mrb[214].mxu0  ;;  %v3118_v58 = vpop.f32.mrb[246].mxu1 }
 0x41d   : > { %v3268_v17 = vadd.f32 %v6965_v53, %v3114_v34  ;;  %v2894_v47 = vadd.f32 %v2893_v45, %v6871_v37  ;;  %v2895_v41 = vpop.f32.mrb[215].mxu0  ;;  %v3120_v31 = vpop.f32.mrb[247].mxu1  ;;  %4016 = vmatmul.mubr.f32.vlgmr.msra.gmra.mrb[16].mxu0 %v3299_v19 }
 0x41f   : > { %v3300_v6 = vmax.f32 %v3268_v17, 0.0  ;;  %v3119_v5 = vadd.f32 %v3118_v58, %v2894_v47 }
 0x420   : > { %v2898_v21 = vpop.f32.mrb[216].mxu0  ;;  %v3123_v15 = vpop.f32.mrb[248].mxu1 }
 0x421   : > { %v3269_v4 = vadd.f32 %v6965_v53, %v3119_v5  ;;  %v2899_v25 = vadd.f32 %v2898_v21, %v6878_v16  ;;  %v2900_v61 = vpop.f32.mrb[217].mxu0  ;;  %v3125_v1 = vpop.f32.mrb[249].mxu1  ;;  %4018 = vmatprep.mubr.f32.mxu0 %v3300_v6 }
 0x423   : > { %v3301_v14 = vmax.f32 %v3269_v4, 0.0  ;;  %v3124_v56 = vadd.f32 %v3123_v15, %v2899_v25 }
 0x424   : > { %v2903_v44 = vpop.f32.mrb[218].mxu0  ;;  %v3128_v59 = vpop.f32.mrb[250].mxu1 }
 0x425   : > { %v3270_v37 = vadd.f32 %v6965_v53, %v3124_v56  ;;  %v2904_v32 = vadd.f32 %v2903_v44, %v6885_v23  ;;  %v2905_v20 = vpop.f32.mrb[219].mxu0  ;;  %v3130_v48 = vpop.f32.mrb[251].mxu1  ;;  %4019 = vmatmul.mubr.f32.gmra.mrb[18].mxu0 %v3301_v14 }
 0x427   : > { %v3302_v24 = vmax.f32 %v3270_v37, 0.0  ;;  %v3129_v52 = vadd.f32 %v3128_v59, %v2904_v32 }
 0x428   : > { %v2908_v60 = vpop.f32.mrb[220].mxu0  ;;  %v3133_v46 = vpop.f32.mrb[252].mxu1 }
 0x429   : > { %v3271_v16 = vadd.f32 %v6965_v53, %v3129_v52  ;;  %v2909_v12 = vadd.f32 %v2908_v60, %v6892_v3  ;;  %v2910_v57 = vpop.f32.mrb[221].mxu0  ;;  %v3135_v62 = vpop.f32.mrb[253].mxu1  ;;  %4021 = vmatprep.mubr.f32.mxu0 %v3302_v24 }
 0x42b   : > { %v3303_v18 = vmax.f32 %v3271_v16, 0.0  ;;  %v3134_v42 = vadd.f32 %v3133_v46, %v2909_v12 }
 0x42c   : > { %v2913_v63 = vpop.f32.mrb[222].mxu0  ;;  %v3138_v43 = vpop.f32.mrb[254].mxu1 }
 0x42d   : > { %v3272_v23 = vadd.f32 %v6965_v53, %v3134_v42  ;;  %v2914_v19 = vadd.f32 %v2913_v63, %v6899_v9  ;;  %v2915_v34 = vpop.f32.mrb[223].mxu0  ;;  %v3140_v45 = vpop.f32.mrb[255].mxu1  ;;  %4022 = vmatmul.mubr.f32.gmra.mrb[20].mxu0 %v3303_v18 }
 0x42f   : > { %v3304_v58 = vmax.f32 %v3272_v23, 0.0  ;;  %v3139_v17 = vadd.f32 %v3138_v43, %v2914_v19 }
 0x430   : > { %v2918_v47 = vpop.f32.mrb[224].mxu0  ;;  %v3143_v41 = vpop.f32.mrb[0].mxu1 }
 0x431   : > { %v3273_v3 = vadd.f32 %v6965_v53, %v3139_v17  ;;  %v2919_v31 = vadd.f32 %v2918_v47, %v6906_v22  ;;  %v2920_v6 = vpop.f32.mrb[225].mxu0  ;;  %v3145_v5 = vpop.f32.mrb[1].mxu1  ;;  %4024 = vmatprep.mubr.f32.mxu0 %v3304_v58 }
 0x433   : > { %v3305_v21 = vmax.f32 %v3273_v3, 0.0  ;;  %v3144_v15 = vadd.f32 %v3143_v41, %v2919_v31 }
 0x434   : > { %v2923_v4 = vpop.f32.mrb[226].mxu0  ;;  %v3148_v25 = vpop.f32.mrb[2].mxu1 }
 0x435   : > { %v3274_v9 = vadd.f32 %v6965_v53, %v3144_v15  ;;  %v2924_v61 = vadd.f32 %v2923_v4, %v6913_v49  ;;  %v2925_v1 = vpop.f32.mrb[227].mxu0  ;;  %v3150_v14 = vpop.f32.mrb[3].mxu1  ;;  %4025 = vmatmul.mubr.f32.gmra.mrb[22].mxu0 %v3305_v21 }
 0x437   : > { %v3306_v56 = vmax.f32 %v3274_v9, 0.0  ;;  %v3149_v44 = vadd.f32 %v3148_v25, %v2924_v61 }
 0x438   : > { %v2928_v59 = vpop.f32.mrb[228].mxu0  ;;  %v3153_v37 = vpop.f32.mrb[4].mxu1 }
 0x439   : > { %v3275_v22 = vadd.f32 %v6965_v53, %v3149_v44  ;;  %v2929_v32 = vadd.f32 %v2928_v59, %v6917_v0  ;;  %v2930_v20 = vpop.f32.mrb[229].mxu0  ;;  %v3155_v48 = vpop.f32.mrb[5].mxu1  ;;  %4027 = vmatprep.mubr.f32.mxu0 %v3306_v56 }
 0x43b   : > { %v3307_v24 = vmax.f32 %v3275_v22, 0.0  ;;  %v3154_v52 = vadd.f32 %v3153_v37, %v2929_v32 }
 0x43c   : > { %v2933_v60 = vpop.f32.mrb[230].mxu0  ;;  %v3158_v46 = vpop.f32.mrb[6].mxu1 }
 0x43d   : > { %v3276_v49 = vadd.f32 %v6965_v53, %v3154_v52  ;;  %v2934_v16 = vadd.f32 %v2933_v60, %v6919_v28  ;;  %v2935_v12 = vpop.f32.mrb[231].mxu0  ;;  %v3160_v57 = vpop.f32.mrb[7].mxu1  ;;  %4028 = vmatmul.mubr.f32.gmra.mrb[24].mxu0 %v3307_v24 }
 0x43f   : > { %v3308_v62 = vmax.f32 %v3276_v49, 0.0  ;;  %v3159_v18 = vadd.f32 %v3158_v46, %v2934_v16 }
 0x440   : > { %v2938_v42 = vpop.f32.mrb[232].mxu0  ;;  %v3163_v63 = vpop.f32.mrb[8].mxu1 }
 0x441   : > { %v3277_v0 = vadd.f32 %v6965_v53, %v3159_v18  ;;  %v2939_v43 = vadd.f32 %v2938_v42, %v6921_v2  ;;  %v2940_v23 = vpop.f32.mrb[233].mxu0  ;;  %v3165_v19 = vpop.f32.mrb[9].mxu1  ;;  %4030 = vmatprep.mubr.f32.mxu0 %v3308_v62 }
 0x443   : > { %v3309_v34 = vmax.f32 %v3277_v0, 0.0  ;;  %v3164_v45 = vadd.f32 %v3163_v63, %v2939_v43 }
 0x444   : > { %v2943_v58 = vpop.f32.mrb[234].mxu0  ;;  %v3168_v17 = vpop.f32.mrb[10].mxu1 }
 0x445   : > { %v3278_v28 = vadd.f32 %v6965_v53, %v3164_v45  ;;  %v2944_v47 = vadd.f32 %v2943_v58, %v6923_v36  ;;  %v2945_v41 = vpop.f32.mrb[235].mxu0  ;;  %v3170_v3 = vpop.f32.mrb[11].mxu1  ;;  %4031 = vmatmul.mubr.f32.gmra.mrb[26].mxu0 %v3309_v34 }
 0x447   : > { %v3310_v31 = vmax.f32 %v3278_v28, 0.0  ;;  %v3169_v6 = vadd.f32 %v3168_v17, %v2944_v47 }
 0x448   : > { %v2948_v5 = vpop.f32.mrb[236].mxu0  ;;  %v3173_v21 = vpop.f32.mrb[12].mxu1 }
 0x449   : > { %v3279_v2 = vadd.f32 %v6965_v53, %v3169_v6  ;;  %v2949_v15 = vadd.f32 %v2948_v5, %v6925_v33  ;;  %v2950_v4 = vpop.f32.mrb[237].mxu0  ;;  %v3175_v25 = vpop.f32.mrb[13].mxu1  ;;  %4033 = vmatprep.mubr.f32.mxu0 %v3310_v31 }
 0x44b   : > { %v3311_v9 = vmax.f32 %v3279_v2, 0.0  ;;  %v3174_v61 = vadd.f32 %v3173_v21, %v2949_v15 }
 0x44c   : > { %v2953_v1 = vpop.f32.mrb[238].mxu0  ;;  %v3178_v14 = vpop.f32.mrb[14].mxu1 }
 0x44d   : > { %v3280_v36 = vadd.f32 %v6965_v53, %v3174_v61  ;;  %v2954_v56 = vadd.f32 %v2953_v1, %v6927_v13  ;;  %v2955_v44 = vpop.f32.mrb[239].mxu0  ;;  %v3180_v59 = vpop.f32.mrb[15].mxu1  ;;  %4034 = vmatmul.mubr.f32.gmra.mrb[28].mxu0 %v3311_v9 }
 0x44f   : > { %v3312_v37 = vmax.f32 %v3280_v36, 0.0  ;;  %v3179_v22 = vadd.f32 %v3178_v14, %v2954_v56 }
 0x450   : > { %v2958_v32 = vpop.f32.mrb[240].mxu0  ;;  %v3183_v20 = vpop.f32.mrb[16].mxu1 }
 0x451   : > { %v3281_v33 = vadd.f32 %v6965_v53, %v3179_v22  ;;  %v2959_v48 = vadd.f32 %v2958_v32, %v6929_v51  ;;  %v2960_v24 = vpop.f32.mrb[241].mxu0  ;;  %v3185_v52 = vpop.f32.mrb[17].mxu1  ;;  %4036 = vmatprep.mubr.f32.mxu0 %v3312_v37 }
 0x453   : > { %v3313_v60 = vmax.f32 %v3281_v33, 0.0  ;;  %v3184_v46 = vadd.f32 %v3183_v20, %v2959_v48 }
 0x454   : > { %v2963_v49 = vpop.f32.mrb[242].mxu0  ;;  %v3188_v16 = vpop.f32.mrb[18].mxu1 }
 0x455   : > { %v3282_v13 = vadd.f32 %v6965_v53, %v3184_v46  ;;  %v2964_v12 = vadd.f32 %v2963_v49, %v6931_v26  ;;  %v2965_v57 = vpop.f32.mrb[243].mxu0  ;;  %v3190_v62 = vpop.f32.mrb[19].mxu1  ;;  %4037 = vmatmul.mubr.f32.gmra.mrb[30].mxu0 %v3313_v60 }
 0x457   : > { %v3314_v18 = vmax.f32 %v3282_v13, 0.0  ;;  %v3189_v42 = vadd.f32 %v3188_v16, %v2964_v12 }
 0x458   : > { %v2968_v63 = vpop.f32.mrb[244].mxu0  ;;  %v3193_v0 = vpop.f32.mrb[20].mxu1 }
 0x459   : > { %v3283_v51 = vadd.f32 %v6965_v53, %v3189_v42  ;;  %v2969_v43 = vadd.f32 %v2968_v63, %v6933_v10  ;;  %v2970_v23 = vpop.f32.mrb[245].mxu0  ;;  %v3195_v19 = vpop.f32.mrb[21].mxu1  ;;  %4039 = vmatprep.mubr.f32.mxu0 %v3314_v18 }
 0x45b   : > { %v3315_v34 = vmax.f32 %v3283_v51, 0.0  ;;  %v3194_v45 = vadd.f32 %v3193_v0, %v2969_v43 }
 0x45c   : > { %v2973_v58 = vpop.f32.mrb[246].mxu0  ;;  %v3198_v17 = vpop.f32.mrb[22].mxu1 }
 0x45d   : > { %v3284_v26 = vadd.f32 %v6965_v53, %v3194_v45  ;;  %v2974_v28 = vadd.f32 %v2973_v58, %v6935_v40  ;;  %v2975_v47 = vpop.f32.mrb[247].mxu0  ;;  %v3200_v41 = vpop.f32.mrb[23].mxu1  ;;  %4040 = vmatmul.mubr.f32.gmra.mrb[32].mxu0 %v3315_v34 }
 0x45f   : > { %v3316_v3 = vmax.f32 %v3284_v26, 0.0  ;;  %v3199_v31 = vadd.f32 %v3198_v17, %v2974_v28 }
 0x460   : > { %v2978_v6 = vpop.f32.mrb[248].mxu0  ;;  %v3203_v5 = vpop.f32.mrb[24].mxu1 }
 0x461   : > { %v3285_v10 = vadd.f32 %v6965_v53, %v3199_v31  ;;  %v2979_v21 = vadd.f32 %v2978_v6, %v6937_v11  ;;  %v2980_v2 = vpop.f32.mrb[249].mxu0  ;;  %v3205_v15 = vpop.f32.mrb[25].mxu1  ;;  %4042 = vmatprep.mubr.f32.mxu0 %v3316_v3 }
 0x463   : > { %v3317_v4 = vmax.f32 %v3285_v10, 0.0  ;;  %v3204_v25 = vadd.f32 %v3203_v5, %v2979_v21 }
 0x464   : > { %v2983_v9 = vpop.f32.mrb[250].mxu0  ;;  %v3208_v61 = vpop.f32.mrb[26].mxu1 }
 0x465   : > { %v3286_v40 = vadd.f32 %v6965_v53, %v3204_v25  ;;  %v2984_v1 = vadd.f32 %v2983_v9, %v6939_v39  ;;  %v2985_v14 = vpop.f32.mrb[251].mxu0  ;;  %v3210_v36 = vpop.f32.mrb[27].mxu1  ;;  %4043 = vmatmul.mubr.f32.gmra.mrb[34].mxu0 %v3317_v4 }
 0x467   : > { %v3318_v56 = vmax.f32 %v3286_v40, 0.0  ;;  %v3209_v44 = vadd.f32 %v3208_v61, %v2984_v1 }
 0x468   : > { %v2988_v59 = vpop.f32.mrb[252].mxu0  ;;  %v3213_v37 = vpop.f32.mrb[28].mxu1 }
 0x469   : > { %v3287_v11 = vadd.f32 %v6965_v53, %v3209_v44  ;;  %v2989_v22 = vadd.f32 %v2988_v59, %v6941_v50  ;;  %v2990_v32 = vpop.f32.mrb[253].mxu0  ;;  %v3215_v20 = vpop.f32.mrb[29].mxu1  ;;  %4045 = vmatprep.mubr.f32.mxu0 %v3318_v56 }
 0x46b   : > { %v3319_v33 = vmax.f32 %v3287_v11, 0.0  ;;  %v3214_v48 = vadd.f32 %v3213_v37, %v2989_v22 }
 0x46c   : > { %v2993_v24 = vpop.f32.mrb[254].mxu0  ;;  %v3218_v52 = vpop.f32.mrb[30].mxu1 }
 0x46d   : > { %v3288_v39 = vadd.f32 %v6965_v53, %v3214_v48  ;;  %v2994_v60 = vadd.f32 %v2993_v24, %v6943_v7  ;;  %v2995_v46 = vpop.f32.mrb[255].mxu0  ;;  %v3220_v49 = vpop.f32.mrb[31].mxu1  ;;  %4046 = vmatmul.mubr.f32.gmra.mrb[36].mxu0 %v3319_v33 }
 0x46f   : > { %v3320_v16 = vmax.f32 %v3288_v39, 0.0  ;;  %v3219_v13 = vadd.f32 %v3218_v52, %v2994_v60 }
 0x470   : > { %v2998_v12 = vpop.f32.mrb[0].mxu0  ;;  %v3223_v57 = vpop.f32.mrb[32].mxu1 }
 0x471   : > { %v3289_v50 = vadd.f32 %v6965_v53, %v3219_v13  ;;  %v2999_v62 = vadd.f32 %v2998_v12, %v6945_v35  ;;  %v3000_v18 = vpop.f32.mrb[1].mxu0  ;;  %v3225_v42 = vpop.f32.mrb[33].mxu1  ;;  %4048 = vmatprep.mubr.f32.mxu0 %v3320_v16 }
 0x472   : > { %v7033_v18 = vld [vmem:[%s7110_s1 + $0x510] ss:$0 sm:$0xff] }
 0x473   : > { %v3321_v63 = vmax.f32 %v3289_v50, 0.0  ;;  %v3224_v0 = vadd.f32 %v3223_v57, %v2999_v62 }
 0x474   : > { %v3003_v51 = vpop.f32.mrb[2].mxu0  ;;  %v3228_v43 = vpop.f32.mrb[34].mxu1 }
 0x475   : > { %v3290_v7 = vadd.f32 %v6965_v53, %v3224_v0  ;;  %v3004_v23 = vadd.f32 %v3003_v51, %v6947_v38  ;;  %v3005_v19 = vpop.f32.mrb[3].mxu0  ;;  %v3230_v34 = vpop.f32.mrb[35].mxu1  ;;  %4049 = vmatmul.mubr.f32.gmra.mrb[38].mxu0 %v3321_v63 }
 0x477   : > { %v3322_v45 = vmax.f32 %v3290_v7, 0.0  ;;  %v3229_v58 = vadd.f32 %v3228_v43, %v3004_v23 }
 0x478   : > { %v3008_v17 = vpop.f32.mrb[4].mxu0  ;;  %v3233_v26 = vpop.f32.mrb[36].mxu1 }
 0x479   : > { %v3291_v35 = vadd.f32 %v6965_v53, %v3229_v58  ;;  %v3009_v28 = vadd.f32 %v3008_v17, %v6949_v29  ;;  %v3010_v47 = vpop.f32.mrb[5].mxu0  ;;  %v3235_v41 = vpop.f32.mrb[37].mxu1  ;;  %4051 = vmatprep.mubr.f32.mxu0 %v3322_v45 }
 0x47b   : > { %v3323_v3 = vmax.f32 %v3291_v35, 0.0  ;;  %v3234_v31 = vadd.f32 %v3233_v26, %v3009_v28 }
 0x47c   : > { %v3013_v6 = vpop.f32.mrb[6].mxu0  ;;  %v3238_v5 = vpop.f32.mrb[38].mxu1 }
 0x47d   : > { %v3292_v38 = vadd.f32 %v6965_v53, %v3234_v31  ;;  %v3014_v10 = vadd.f32 %v3013_v6, %v6951_v27  ;;  %v3015_v21 = vpop.f32.mrb[7].mxu0  ;;  %v3240_v2 = vpop.f32.mrb[39].mxu1  ;;  %4052 = vmatmul.mubr.f32.gmra.mrb[40].mxu0 %v3323_v3 }
 0x47f   : > { %v3324_v15 = vmax.f32 %v3292_v38, 0.0  ;;  %v3239_v4 = vadd.f32 %v3238_v5, %v3014_v10 }
 0x480   : > { %v3018_v25 = vpop.f32.mrb[8].mxu0  ;;  %v3243_v9 = vpop.f32.mrb[40].mxu1 }
 0x481   : > { %v3293_v29 = vadd.f32 %v6965_v53, %v3239_v4  ;;  %v3019_v61 = vadd.f32 %v3018_v25, %v6953_v55  ;;  %v3020_v40 = vpop.f32.mrb[9].mxu0  ;;  %v3245_v1 = vpop.f32.mrb[41].mxu1  ;;  %4054 = vmatprep.mubr.f32.mxu0 %v3324_v15 }
 0x483   : > { %v3325_v14 = vmax.f32 %v3293_v29, 0.0  ;;  %v3244_v36 = vadd.f32 %v3243_v9, %v3019_v61 }
 0x484   : > { %v3023_v56 = vpop.f32.mrb[10].mxu0  ;;  %v3248_v44 = vpop.f32.mrb[42].mxu1 }
 0x485   : > { %v3294_v27 = vadd.f32 %v6965_v53, %v3244_v36  ;;  %v3024_v59 = vadd.f32 %v3023_v56, %v6955_v54  ;;  %v3025_v37 = vpop.f32.mrb[11].mxu0  ;;  %v3250_v11 = vpop.f32.mrb[43].mxu1  ;;  %4055 = vmatmul.mubr.f32.gmra.mrb[42].mxu0 %v3325_v14 }
 0x487   : > { %v3326_v22 = vmax.f32 %v3294_v27, 0.0  ;;  %v3249_v32 = vadd.f32 %v3248_v44, %v3024_v59 }
 0x488   : > { %v3028_v20 = vpop.f32.mrb[12].mxu0  ;;  %v3253_v33 = vpop.f32.mrb[44].mxu1 }
 0x489   : > { %v3295_v55 = vadd.f32 %v6965_v53, %v3249_v32  ;;  %v3029_v48 = vadd.f32 %v3028_v20, %v6957_v8  ;;  %v3030_v24 = vpop.f32.mrb[13].mxu0  ;;  %v3255_v52 = vpop.f32.mrb[45].mxu1  ;;  %4057 = vmatprep.mubr.f32.mxu0 %v3326_v22 }
 0x48b   : > { %v3327_v39 = vmax.f32 %v3295_v55, 0.0  ;;  %v3254_v60 = vadd.f32 %v3253_v33, %v3029_v48 }
 0x48c   : > { %v3033_v46 = vpop.f32.mrb[14].mxu0  ;;  %v3258_v49 = vpop.f32.mrb[46].mxu1 }
 0x48d   : > { %v3296_v54 = vadd.f32 %v6965_v53, %v3254_v60  ;;  %v3034_v16 = vadd.f32 %v3033_v46, %v6959_v30  ;;  %v3035_v13 = vpop.f32.mrb[15].mxu0  ;;  %v3260_v12 = vpop.f32.mrb[47].mxu1  ;;  %4058 = vmatmul.mubr.f32.gmra.mrb[44].mxu0 %v3327_v39 }
 0x48f   : > { %v3328_v57 = vmax.f32 %v3296_v54, 0.0  ;;  %v3259_v50 = vadd.f32 %v3258_v49, %v3034_v16 }
 0x491   : > { %v3297_v62 = vadd.f32 %v6965_v53, %v3259_v50  ;;  %4060 = vmatprep.mubr.f32.mxu0 %v3328_v57 }
 0x493   : > { %v3329_v8 = vmax.f32 %v3297_v62, 0.0 }
 0x495   : > { %4061 = vmatmul.mubr.f32.gmra.mrb[46].mxu0 %v3329_v8 }
 0x4f0   : > { %v4017_v30 = vpop.f32.mrb[16].mxu0 }
 0x4f1   : > { %v3423_v53 = vadd.f32 %v4017_v30, %v7033_v18  ;;  %v3417_v42 = vpop.f32.mrb[17].mxu0 }
 0x4f2   : > { %v3418_v63 = vadd.f32 %v7033_v18, %v3417_v42 }
 0x4f3   : > { %3577 = vst [vmem:[%s7040_s20 + $0x8] sm:$0xff] %v3423_v53 }
 0x4f4   : > { %3576 = vst [vmem:[%s7040_s20] sm:$0xff] %v3418_v63 }
 0x4f8   : > { %v4020_v0 = vpop.f32.mrb[18].mxu0 }
 0x4f9   : > { %v3433_v51 = vadd.f32 %v4020_v0, %v7033_v18  ;;  %v3427_v43 = vpop.f32.mrb[19].mxu0 }
 0x4fa   : > { %v3428_v7 = vadd.f32 %v7033_v18, %v3427_v43 }
 0x4fb   : > { %3579 = vst [vmem:[%s7040_s20 + $0x18] sm:$0xff] %v3433_v51 }
 0x4fc   : > { %3578 = vst [vmem:[%s7040_s20 + $0x10] sm:$0xff] %v3428_v7 }
 0x500   : > { %v4023_v23 = vpop.f32.mrb[20].mxu0 }
 0x501   : > { %v3443_v19 = vadd.f32 %v4023_v23, %v7033_v18  ;;  %v3437_v34 = vpop.f32.mrb[21].mxu0 }
 0x502   : > { %v3438_v45 = vadd.f32 %v7033_v18, %v3437_v34 }
 0x503   : > { %3581 = vst [vmem:[%s7040_s20 + $0x28] sm:$0xff] %v3443_v19 }
 0x504   : > { %3580 = vst [vmem:[%s7040_s20 + $0x20] sm:$0xff] %v3438_v45 }
 0x508   : > { %v4026_v58 = vpop.f32.mrb[22].mxu0 }
 0x509   : > { %v3453_v17 = vadd.f32 %v4026_v58, %v7033_v18  ;;  %v3447_v26 = vpop.f32.mrb[23].mxu0 }
 0x50a   : > { %v3448_v35 = vadd.f32 %v7033_v18, %v3447_v26 }
 0x50b   : > { %3583 = vst [vmem:[%s7040_s20 + $0x38] sm:$0xff] %v3453_v17 }
 0x50c   : > { %3582 = vst [vmem:[%s7040_s20 + $0x30] sm:$0xff] %v3448_v35 }
 0x510   : > { %v4029_v28 = vpop.f32.mrb[24].mxu0 }
 0x511   : > { %v3463_v47 = vadd.f32 %v4029_v28, %v7033_v18  ;;  %v3457_v41 = vpop.f32.mrb[25].mxu0 }
 0x512   : > { %v3458_v3 = vadd.f32 %v7033_v18, %v3457_v41 }
 0x513   : > { %3585 = vst [vmem:[%s7040_s20 + $0x48] sm:$0xff] %v3463_v47 }
 0x514   : > { %3584 = vst [vmem:[%s7040_s20 + $0x40] sm:$0xff] %v3458_v3 }
 0x518   : > { %v4032_v31 = vpop.f32.mrb[26].mxu0 }
 0x519   : > { %v3473_v6 = vadd.f32 %v4032_v31, %v7033_v18  ;;  %v3467_v5 = vpop.f32.mrb[27].mxu0 }
 0x51a   : > { %v3468_v38 = vadd.f32 %v7033_v18, %v3467_v5 }
 0x51b   : > { %3587 = vst [vmem:[%s7040_s20 + $0x58] sm:$0xff] %v3473_v6 }
 0x51c   : > { %3586 = vst [vmem:[%s7040_s20 + $0x50] sm:$0xff] %v3468_v38 }
 0x520   : > { %v4035_v10 = vpop.f32.mrb[28].mxu0 }
 0x521   : > { %v3483_v21 = vadd.f32 %v4035_v10, %v7033_v18  ;;  %v3477_v2 = vpop.f32.mrb[29].mxu0 }
 0x522   : > { %v3478_v15 = vadd.f32 %v7033_v18, %v3477_v2 }
 0x523   : > { %3589 = vst [vmem:[%s7040_s20 + $0x68] sm:$0xff] %v3483_v21 }
 0x524   : > { %3588 = vst [vmem:[%s7040_s20 + $0x60] sm:$0xff] %v3478_v15 }
 0x528   : > { %v4038_v4 = vpop.f32.mrb[30].mxu0 }
 0x529   : > { %v3493_v25 = vadd.f32 %v4038_v4, %v7033_v18  ;;  %v3487_v9 = vpop.f32.mrb[31].mxu0 }
 0x52a   : > { %v3488_v29 = vadd.f32 %v7033_v18, %v3487_v9 }
 0x52b   : > { %3591 = vst [vmem:[%s7040_s20 + $0x78] sm:$0xff] %v3493_v25 }
 0x52c   : > { %3590 = vst [vmem:[%s7040_s20 + $0x70] sm:$0xff] %v3488_v29 }
 0x530   : > { %v4041_v61 = vpop.f32.mrb[32].mxu0 }
 0x531   : > { %v3503_v40 = vadd.f32 %v4041_v61, %v7033_v18  ;;  %v3497_v1 = vpop.f32.mrb[33].mxu0 }
 0x532   : > { %v3498_v14 = vadd.f32 %v7033_v18, %v3497_v1 }
 0x533   : > { %3593 = vst [vmem:[%s7040_s20 + $0x88] sm:$0xff] %v3503_v40 }
 0x534   : > { %3592 = vst [vmem:[%s7040_s20 + $0x80] sm:$0xff] %v3498_v14 }
 0x538   : > { %v4044_v36 = vpop.f32.mrb[34].mxu0 }
 0x539   : > { %v3513_v56 = vadd.f32 %v4044_v36, %v7033_v18  ;;  %v3507_v44 = vpop.f32.mrb[35].mxu0 }
 0x53a   : > { %v3508_v27 = vadd.f32 %v7033_v18, %v3507_v44 }
 0x53b   : > { %3595 = vst [vmem:[%s7040_s20 + $0x98] sm:$0xff] %v3513_v56 }
 0x53c   : > { %3594 = vst [vmem:[%s7040_s20 + $0x90] sm:$0xff] %v3508_v27 }
 0x540   : > { %v4047_v59 = vpop.f32.mrb[36].mxu0 }
 0x541   : > { %v3523_v37 = vadd.f32 %v4047_v59, %v7033_v18  ;;  %v3517_v11 = vpop.f32.mrb[37].mxu0 }
 0x542   : > { %v3518_v22 = vadd.f32 %v7033_v18, %v3517_v11 }
 0x543   : > { %3597 = vst [vmem:[%s7040_s20 + $0xa8] sm:$0xff] %v3523_v37 }
 0x544   : > { %3596 = vst [vmem:[%s7040_s20 + $0xa0] sm:$0xff] %v3518_v22 }
 0x548   : > { %v4050_v32 = vpop.f32.mrb[38].mxu0 }
 0x549   : > { %v3533_v20 = vadd.f32 %v4050_v32, %v7033_v18  ;;  %v3527_v33 = vpop.f32.mrb[39].mxu0 }
 0x54a   : > { %v3528_v55 = vadd.f32 %v7033_v18, %v3527_v33 }
 0x54b   : > { %3599 = vst [vmem:[%s7040_s20 + $0xb8] sm:$0xff] %v3533_v20 }
 0x54c   : > { %3598 = vst [vmem:[%s7040_s20 + $0xb0] sm:$0xff] %v3528_v55 }
 0x550   : > { %v4053_v48 = vpop.f32.mrb[40].mxu0 }
 0x551   : > { %v3543_v24 = vadd.f32 %v4053_v48, %v7033_v18  ;;  %v3537_v52 = vpop.f32.mrb[41].mxu0 }
 0x552   : > { %v3538_v39 = vadd.f32 %v7033_v18, %v3537_v52 }
 0x553   : > { %3601 = vst [vmem:[%s7040_s20 + $0xc8] sm:$0xff] %v3543_v24 }
 0x554   : > { %3600 = vst [vmem:[%s7040_s20 + $0xc0] sm:$0xff] %v3538_v39 }
 0x558   : > { %v4056_v60 = vpop.f32.mrb[42].mxu0 }
 0x559   : > { %v3553_v46 = vadd.f32 %v4056_v60, %v7033_v18  ;;  %v3547_v49 = vpop.f32.mrb[43].mxu0 }
 0x55a   : > { %v3548_v54 = vadd.f32 %v7033_v18, %v3547_v49 }
 0x55b   : > { %3603 = vst [vmem:[%s7040_s20 + $0xd8] sm:$0xff] %v3553_v46 }
 0x55c   : > { %3602 = vst [vmem:[%s7040_s20 + $0xd0] sm:$0xff] %v3548_v54 }
 0x560   : > { %v4059_v16 = vpop.f32.mrb[44].mxu0 }
 0x561   : > { %v3563_v13 = vadd.f32 %v4059_v16, %v7033_v18  ;;  %v3557_v12 = vpop.f32.mrb[45].mxu0 }
 0x562   : > { %v3558_v57 = vadd.f32 %v7033_v18, %v3557_v12 }
 0x563   : > { %3605 = vst [vmem:[%s7040_s20 + $0xe8] sm:$0xff] %v3563_v13 }
 0x564   : > { %3604 = vst [vmem:[%s7040_s20 + $0xe0] sm:$0xff] %v3558_v57 }
 0x568   : > { %v4062_v50 = vpop.f32.mrb[46].mxu0 }
 0x569   : > { %v3573_v62 = vadd.f32 %v4062_v50, %v7033_v18  ;;  %v3567_v8 = vpop.f32.mrb[47].mxu0 }
 0x56a   : > { %v3568_v30 = vadd.f32 %v7033_v18, %v3567_v8 }
 0x56b   : > { %3607 = vst [vmem:[%s7040_s20 + $0xf8] sm:$0xff] %v3573_v62 }
 0x56c   : > { %3606 = vst [vmem:[%s7040_s20 + $0xf0] sm:$0xff] %v3568_v30 }
 0x56d PF: > { %s14_s15 = sadd.s32 1, %s4575_s15  }
 0x56e   : > { %p11_p4 = scmp.ge.s32.totalorder %s14_s15, 4  }
 0x570   :  { %13 = sbr.rel (!%p11_p4) target bundleno = 1 (0x1), region = 66 }

</bundles_post_ra>
